<compile_context>
chip_gen: v5e
topology: v5e:2x2
jax: 0.10.0
libtpu: 0.0.40
codegen_flags: <defaults>
</compile_context>

<pallas_src>
import numpy as np

import jax
import jax.numpy as jnp
from jax import lax
from jax.experimental import pallas as pl
from jax.experimental.pallas import tpu as pltpu


# ------------------------------ static geometry ------------------------------
IMG   = 28            # input / conv1 output spatial size (k=5, padding=2)
GP1   = 32            # zero-padded conv1 input grid (28 + 2*2)
FLAT1 = GP1 * GP1     # 1024: conv1 activations, flattened on lanes
XF_W  = 1280          # flat padded image width (1024 + slack for 25 shifts)
K1    = 32            # conv1 contraction dim: 25 taps padded to 32
C1    = 8             # conv1 out channels: 6 padded to 8 (sublanes)

G2    = 14            # pool1 output grid (14x14)
FLAT2 = G2 * G2       # 196: conv3 input, flattened on lanes
P1_W  = 256           # pool1 activation width: 196 valid + slack for shifts
C3    = 16            # conv3 out channels
K3    = 25 * C1       # 200: conv3 contraction dim (25 taps x 8 padded in-ch)

NFC   = 128           # folded FC-tail output padded to one full lane tile


# --------------------------------- kernel ------------------------------------
def _lenet_kernel(x_ref, w1_ref, b1_ref, pool1_ref, w3_ref, b3_ref,
                  mf_ref, bf_ref, out_ref, s1_ref):
    f32 = jnp.float32

    # --- stage 1: in-VMEM im2col + one MXU matmul (conv1 + bias + sigmoid) ---
    # Flat zero-padded image arrives lane-dense from the wrapper: (1, 1280).
    xflat = x_ref[0]                                      # (1, XF_W)
    # patch matrix S1[k, m] = xpad_flat[m + dy*32 + dx],  k = dy*5 + dx
    s1_ref[pl.ds(25, K1 - 25), :] = jnp.zeros((K1 - 25, FLAT1), f32)
    for k in range(25):
        dy, dx = divmod(k, 5)
        off = dy * GP1 + dx
        s1_ref[pl.ds(k, 1), :] = xflat[:, off:off + FLAT1]
    # (8, 32) @ (32, 1024) -> (8, 1024): flat spatial dim is lane-dense.
    a1 = jnp.dot(w1_ref[...], s1_ref[...], preferred_element_type=f32)
    a1 = jax.nn.sigmoid(a1 + b1_ref[...])

    # --- stage 2: 2x2/stride-2 avg-pool as a matmul (no stride-2 lane access)
    # (8, 1024) @ (1024, 256) -> (8, 256); also re-packs the valid 28x28 region
    # into the flat 14x14 grid conv3 wants, with zero slack columns.
    p1 = jnp.dot(a1, pool1_ref[...], preferred_element_type=f32)

    # --- stage 3: conv3 as one matmul over (tap, channel)-stacked shifts -----
    pieces = [p1[:, dy * G2 + dx: dy * G2 + dx + FLAT2]
              for dy in range(5) for dx in range(5)]
    s3 = jnp.concatenate(pieces, axis=0)                  # (200, 196)
    a3 = jnp.dot(w3_ref[...], s3, preferred_element_type=f32)   # (16, 196)
    a3 = jax.nn.sigmoid(a3 + b3_ref[...])

    # --- stage 4: folded [avg-pool 2x2 + flatten + f5 + f6 + f7] -------------
    # mf[c] = PoolSel2 @ W5_c^T @ W6^T @ W7^T (precomputed; its zero rows kill
    # the garbage columns of a3 outside the valid 10x10 region).
    h = bf_ref[...]                                       # (1, 128)
    for c in range(C3):
        h = h + jnp.dot(a3[c:c + 1, :], mf_ref[c], preferred_element_type=f32)
    out_ref[...] = h[None]                                # (1, 1, 128)


# --------------------------- one-time parameter prep --------------------------
def prepare_params(p):
    """Pack PyTorch-layout LeNet params into MXU-friendly padded matrices."""
    f32 = jnp.float32

    # conv1 -> (8, 32): taps padded 25 -> 32 (sublane-aligned K), out-ch 6 -> 8.
    w1 = jnp.pad(p["conv1_w"].reshape(6, 25), ((0, C1 - 6), (0, K1 - 25))).astype(f32)
    b1 = jnp.pad(p["conv1_b"], (0, C1 - 6)).reshape(C1, 1).astype(f32)

    # pool1 selection matrix: flat 32x32 conv1 grid (valid 28x28) -> flat 14x14.
    ps1 = np.zeros((FLAT1, P1_W), np.float32)
    for y in range(IMG):
        for x in range(IMG):
            ps1[y * GP1 + x, (y // 2) * G2 + (x // 2)] = 0.25
    pool1 = jnp.asarray(ps1)

    # conv3 -> (16, 200): column order (tap k, in-channel c padded to 8).
    w3 = p["conv3_w"].reshape(16, 6, 25).transpose(0, 2, 1)          # (16,25,6)
    w3 = jnp.pad(w3, ((0, 0), (0, 0), (0, C1 - 6))).reshape(C3, K3).astype(f32)
    b3 = p["conv3_b"].reshape(C3, 1).astype(f32)

    # pool2 + flatten + f5 + f6 + f7 folded (the FC tail is purely linear):
    #   mf[c] = PoolSel2 @ W5[:, c*25:(c+1)*25].T @ W6.T @ W7.T    (196, 10)
    #   bf    = b5 @ W6.T @ W7.T + b6 @ W7.T + b7                  (10,)
    ps2 = np.zeros((FLAT2, 25), np.float32)
    for y in range(10):
        for x in range(10):
            ps2[y * G2 + x, (y // 2) * 5 + (x // 2)] = 0.25
    w5r = p["f5_w"].reshape(120, 16, 25)                              # [n, c, s]
    m5 = jnp.einsum("ms,ncs->cmn", jnp.asarray(ps2), w5r)             # (16,196,120)
    lin67 = p["f6_w"].T @ p["f7_w"].T                                 # (120, 10)
    mf = jnp.einsum("cmn,nk->cmk", m5, lin67)                         # (16,196,10)
    mf = jnp.pad(mf, ((0, 0), (0, 0), (0, NFC - 10))).astype(f32)
    bf = p["f5_b"] @ lin67 + p["f6_b"] @ p["f7_w"].T + p["f7_b"]      # (10,)
    bf = jnp.pad(bf, (0, NFC - 10)).reshape(1, NFC).astype(f32)

    return dict(w1=w1, b1=b1, pool1=pool1, w3=w3, b3=b3, mf=mf, bf=bf)


# ---------------------------------- wrapper -----------------------------------
@jax.jit
def lenet_forward(x, prep):
    """x: (B, 1, 28, 28) NCHW float32 -> logits (B, 10)."""
    B = x.shape[0]
    xb = x.reshape(B, IMG, IMG).astype(jnp.float32)
    # Layout plumbing (not compute): zero-pad to the flat 32x32 grid the kernel
    # indexes, plus lane slack for the 25 im2col shifts -> lane-dense input.
    xp = jnp.pad(xb, ((0, 0), (2, 2), (2, 2))).reshape(B, 1, FLAT1)
    xf = jnp.pad(xp, ((0, 0), (0, 0), (0, XF_W - FLAT1)))

    flops = B * 2 * (C1 * K1 * FLAT1 + C1 * FLAT1 * P1_W
                     + C3 * K3 * FLAT2 + C3 * FLAT2 * NFC)
    transcendentals = B * (C1 * FLAT1 + C3 * FLAT2)
    param_bytes = sum(int(np.prod(v.shape)) * 4 for v in prep.values())
    bytes_accessed = param_bytes + B * (XF_W + NFC) * 4

    out = pl.pallas_call(
        _lenet_kernel,
        out_shape=jax.ShapeDtypeStruct((B, 1, NFC), jnp.float32),
        grid_spec=pltpu.PrefetchScalarGridSpec(
            num_scalar_prefetch=0,
            grid=(B,),
            in_specs=[
                pl.BlockSpec((1, 1, XF_W), lambda b: (b, 0, 0)),       # flat padded image
                pl.BlockSpec((C1, K1), lambda b: (0, 0)),              # w1
                pl.BlockSpec((C1, 1), lambda b: (0, 0)),               # b1
                pl.BlockSpec((FLAT1, P1_W), lambda b: (0, 0)),         # pool1 sel
                pl.BlockSpec((C3, K3), lambda b: (0, 0)),              # w3
                pl.BlockSpec((C3, 1), lambda b: (0, 0)),               # b3
                pl.BlockSpec((C3, FLAT2, NFC), lambda b: (0, 0, 0)),   # folded FC tail
                pl.BlockSpec((1, NFC), lambda b: (0, 0)),              # folded bias
            ],
            out_specs=pl.BlockSpec((1, 1, NFC), lambda b: (b, 0, 0)),
            scratch_shapes=[
                pltpu.VMEM((K1, FLAT1), jnp.float32),   # conv1 patch matrix
            ],
        ),
        compiler_params=pltpu.CompilerParams(
            dimension_semantics=("parallel",),
            vmem_limit_bytes=32 * 1024 * 1024,
        ),
        cost_estimate=pl.CostEstimate(
            flops=flops,
            transcendentals=transcendentals,
            bytes_accessed=bytes_accessed,
        ),
    )(xf, prep["w1"], prep["b1"], prep["pool1"], prep["w3"], prep["b3"],
      prep["mf"], prep["bf"])

    return out[:, 0, :10]


# ----------------------------- pure-JAX reference -----------------------------
def _avgpool_ref(x):
    B, C, H, W = x.shape
    return x.reshape(B, C, H // 2, 2, W // 2, 2).mean(axis=(3, 5))


def lenet_ref(x, p):
    dn = ("NCHW", "OIHW", "NCHW")
    y = lax.conv_general_dilated(x, p["conv1_w"], (1, 1), ((2, 2), (2, 2)),
                                 dimension_numbers=dn)
    y = jax.nn.sigmoid(y + p["conv1_b"][None, :, None, None])
    y = _avgpool_ref(y)
    y = lax.conv_general_dilated(y, p["conv3_w"], (1, 1), "VALID",
                                 dimension_numbers=dn)
    y = jax.nn.sigmoid(y + p["conv3_b"][None, :, None, None])
    y = _avgpool_ref(y)
    y = y.reshape(y.shape[0], -1)
    y = y @ p["f5_w"].T + p["f5_b"]
    y = y @ p["f6_w"].T + p["f6_b"]
    y = y @ p["f7_w"].T + p["f7_b"]
    return y


if __name__ == "__main__":
    key = jax.random.PRNGKey(0)
    ks = jax.random.split(key, 11)
    params = {
        "conv1_w": 0.10 * jax.random.normal(ks[0], (6, 1, 5, 5), jnp.float32),
        "conv1_b": 0.10 * jax.random.normal(ks[1], (6,), jnp.float32),
        "conv3_w": 0.10 * jax.random.normal(ks[2], (16, 6, 5, 5), jnp.float32),
        "conv3_b": 0.10 * jax.random.normal(ks[3], (16,), jnp.float32),
        "f5_w": 0.05 * jax.random.normal(ks[4], (120, 400), jnp.float32),
        "f5_b": 0.05 * jax.random.normal(ks[5], (120,), jnp.float32),
        "f6_w": 0.05 * jax.random.normal(ks[6], (84, 120), jnp.float32),
        "f6_b": 0.05 * jax.random.normal(ks[7], (84,), jnp.float32),
        "f7_w": 0.05 * jax.random.normal(ks[8], (10, 84), jnp.float32),
        "f7_b": 0.05 * jax.random.normal(ks[9], (10,), jnp.float32),
    }
    # LeNet-5 input: NCHW, 1 channel, 28x28 (padding=2 on conv1 keeps 28x28,
    # which the 16*5*5 flatten into f5 requires). Batch of 2.
    x = jax.random.normal(ks[10], (2, 1, 28, 28), jnp.float32)

    prep = prepare_params(params)
    out = jax.block_until_ready(lenet_forward(x, prep))
    assert out.shape == (2, 10), out.shape

    ref = jax.block_until_ready(lenet_ref(x, params))
    max_err = float(jnp.max(jnp.abs(out - ref)))
    assert max_err < 2e-3, f"mismatch vs reference: {max_err}"

    print("KERNEL_OK")
</pallas_src>

<mosaic_0001>
module attributes {stable_mosaic.version = 11 : i64} {
  func.func @_lenet_kernel(%arg0: i32, %arg1: memref<1x1x1280xf32, #tpu.memory_space<vmem>>, %arg2: memref<8x32xf32, #tpu.memory_space<vmem>>, %arg3: memref<8x1xf32, #tpu.memory_space<vmem>>, %arg4: memref<1024x256xf32, #tpu.memory_space<vmem>>, %arg5: memref<16x200xf32, #tpu.memory_space<vmem>>, %arg6: memref<16x1xf32, #tpu.memory_space<vmem>>, %arg7: memref<16x196x128xf32, #tpu.memory_space<vmem>>, %arg8: memref<1x128xf32, #tpu.memory_space<vmem>>, %arg9: memref<1x1x128xf32, #tpu.memory_space<vmem>>, %arg10: memref<32x1024xf32, #tpu.memory_space<vmem>>) attributes {dimension_semantics = [#tpu.dimension_semantics<parallel>], iteration_bounds = array<i64: 2>, scalar_prefetch = 0 : i64, scratch_operands = 1 : i64, tpu.core_type = #tpu.core_type<tc>, window_params = [{transform_indices = @transform_0, window_bounds = array<i64: 1, 1, 1280>}, {pipeline_mode = #tpu.pipeline_mode<synchronous>, transform_indices = @transform_1, window_bounds = array<i64: 8, 32>}, {pipeline_mode = #tpu.pipeline_mode<synchronous>, transform_indices = @transform_2, window_bounds = array<i64: 8, 1>}, {pipeline_mode = #tpu.pipeline_mode<synchronous>, transform_indices = @transform_3, window_bounds = array<i64: 1024, 256>}, {pipeline_mode = #tpu.pipeline_mode<synchronous>, transform_indices = @transform_4, window_bounds = array<i64: 16, 200>}, {pipeline_mode = #tpu.pipeline_mode<synchronous>, transform_indices = @transform_5, window_bounds = array<i64: 16, 1>}, {pipeline_mode = #tpu.pipeline_mode<synchronous>, transform_indices = @transform_6, window_bounds = array<i64: 16, 196, 128>}, {pipeline_mode = #tpu.pipeline_mode<synchronous>, transform_indices = @transform_7, window_bounds = array<i64: 1, 128>}, {transform_indices = @transform_8, window_bounds = array<i64: 1, 1, 128>}]} {
    %c0 = arith.constant 0 : index
    %c0_0 = arith.constant 0 : index
    %c0_1 = arith.constant 0 : index
    %0 = vector.load %arg1[%c0, %c0_0, %c0_1] : memref<1x1x1280xf32, #tpu.memory_space<vmem>>, vector<1x1x1280xf32>
    %1 = vector.shape_cast %0 : vector<1x1x1280xf32> to vector<1x1280xf32>
    %cst = arith.constant 0.000000e+00 : f32
    %2 = vector.broadcast %cst : f32 to vector<7x1024xf32>
    %c25 = arith.constant 25 : index
    %c0_2 = arith.constant 0 : index
    %3 = vector.load %arg10[%c25, %c0_2] : memref<32x1024xf32, #tpu.memory_space<vmem>>, vector<7x1024xf32>
    tpu.vector_store %arg10[%c25, %c0_2], %2 {strides = array<i32>} : memref<32x1024xf32, #tpu.memory_space<vmem>>, vector<7x1024xf32>,
    %4 = vector.extract_strided_slice %1 {offsets = [0, 0], sizes = [1, 1024], strides = [1, 1]} : vector<1x1280xf32> to vector<1x1024xf32>
    %c0_3 = arith.constant 0 : index
    %c0_4 = arith.constant 0 : index
    %5 = vector.load %arg10[%c0_3, %c0_4] : memref<32x1024xf32, #tpu.memory_space<vmem>>, vector<1x1024xf32>
    tpu.vector_store %arg10[%c0_3, %c0_4], %4 {strides = array<i32>} : memref<32x1024xf32, #tpu.memory_space<vmem>>, vector<1x1024xf32>,
    %6 = vector.extract_strided_slice %1 {offsets = [0, 1], sizes = [1, 1024], strides = [1, 1]} : vector<1x1280xf32> to vector<1x1024xf32>
    %c1 = arith.constant 1 : index
    %c0_5 = arith.constant 0 : index
    %7 = vector.load %arg10[%c1, %c0_5] : memref<32x1024xf32, #tpu.memory_space<vmem>>, vector<1x1024xf32>
    tpu.vector_store %arg10[%c1, %c0_5], %6 {strides = array<i32>} : memref<32x1024xf32, #tpu.memory_space<vmem>>, vector<1x1024xf32>,
    %8 = vector.extract_strided_slice %1 {offsets = [0, 2], sizes = [1, 1024], strides = [1, 1]} : vector<1x1280xf32> to vector<1x1024xf32>
    %c2 = arith.constant 2 : index
    %c0_6 = arith.constant 0 : index
    %9 = vector.load %arg10[%c2, %c0_6] : memref<32x1024xf32, #tpu.memory_space<vmem>>, vector<1x1024xf32>
    tpu.vector_store %arg10[%c2, %c0_6], %8 {strides = array<i32>} : memref<32x1024xf32, #tpu.memory_space<vmem>>, vector<1x1024xf32>,
    %10 = vector.extract_strided_slice %1 {offsets = [0, 3], sizes = [1, 1024], strides = [1, 1]} : vector<1x1280xf32> to vector<1x1024xf32>
    %c3 = arith.constant 3 : index
    %c0_7 = arith.constant 0 : index
    %11 = vector.load %arg10[%c3, %c0_7] : memref<32x1024xf32, #tpu.memory_space<vmem>>, vector<1x1024xf32>
    tpu.vector_store %arg10[%c3, %c0_7], %10 {strides = array<i32>} : memref<32x1024xf32, #tpu.memory_space<vmem>>, vector<1x1024xf32>,
    %12 = vector.extract_strided_slice %1 {offsets = [0, 4], sizes = [1, 1024], strides = [1, 1]} : vector<1x1280xf32> to vector<1x1024xf32>
    %c4 = arith.constant 4 : index
    %c0_8 = arith.constant 0 : index
    %13 = vector.load %arg10[%c4, %c0_8] : memref<32x1024xf32, #tpu.memory_space<vmem>>, vector<1x1024xf32>
    tpu.vector_store %arg10[%c4, %c0_8], %12 {strides = array<i32>} : memref<32x1024xf32, #tpu.memory_space<vmem>>, vector<1x1024xf32>,
    %14 = vector.extract_strided_slice %1 {offsets = [0, 32], sizes = [1, 1024], strides = [1, 1]} : vector<1x1280xf32> to vector<1x1024xf32>
    %c5 = arith.constant 5 : index
    %c0_9 = arith.constant 0 : index
    %15 = vector.load %arg10[%c5, %c0_9] : memref<32x1024xf32, #tpu.memory_space<vmem>>, vector<1x1024xf32>
    tpu.vector_store %arg10[%c5, %c0_9], %14 {strides = array<i32>} : memref<32x1024xf32, #tpu.memory_space<vmem>>, vector<1x1024xf32>,
    %16 = vector.extract_strided_slice %1 {offsets = [0, 33], sizes = [1, 1024], strides = [1, 1]} : vector<1x1280xf32> to vector<1x1024xf32>
    %c6 = arith.constant 6 : index
    %c0_10 = arith.constant 0 : index
    %17 = vector.load %arg10[%c6, %c0_10] : memref<32x1024xf32, #tpu.memory_space<vmem>>, vector<1x1024xf32>
    tpu.vector_store %arg10[%c6, %c0_10], %16 {strides = array<i32>} : memref<32x1024xf32, #tpu.memory_space<vmem>>, vector<1x1024xf32>,
    %18 = vector.extract_strided_slice %1 {offsets = [0, 34], sizes = [1, 1024], strides = [1, 1]} : vector<1x1280xf32> to vector<1x1024xf32>
    %c7 = arith.constant 7 : index
    %c0_11 = arith.constant 0 : index
    %19 = vector.load %arg10[%c7, %c0_11] : memref<32x1024xf32, #tpu.memory_space<vmem>>, vector<1x1024xf32>
    tpu.vector_store %arg10[%c7, %c0_11], %18 {strides = array<i32>} : memref<32x1024xf32, #tpu.memory_space<vmem>>, vector<1x1024xf32>,
    %20 = vector.extract_strided_slice %1 {offsets = [0, 35], sizes = [1, 1024], strides = [1, 1]} : vector<1x1280xf32> to vector<1x1024xf32>
    %c8 = arith.constant 8 : index
    %c0_12 = arith.constant 0 : index
    %21 = vector.load %arg10[%c8, %c0_12] : memref<32x1024xf32, #tpu.memory_space<vmem>>, vector<1x1024xf32>
    tpu.vector_store %arg10[%c8, %c0_12], %20 {strides = array<i32>} : memref<32x1024xf32, #tpu.memory_space<vmem>>, vector<1x1024xf32>,
    %22 = vector.extract_strided_slice %1 {offsets = [0, 36], sizes = [1, 1024], strides = [1, 1]} : vector<1x1280xf32> to vector<1x1024xf32>
    %c9 = arith.constant 9 : index
    %c0_13 = arith.constant 0 : index
    %23 = vector.load %arg10[%c9, %c0_13] : memref<32x1024xf32, #tpu.memory_space<vmem>>, vector<1x1024xf32>
    tpu.vector_store %arg10[%c9, %c0_13], %22 {strides = array<i32>} : memref<32x1024xf32, #tpu.memory_space<vmem>>, vector<1x1024xf32>,
    %24 = vector.extract_strided_slice %1 {offsets = [0, 64], sizes = [1, 1024], strides = [1, 1]} : vector<1x1280xf32> to vector<1x1024xf32>
    %c10 = arith.constant 10 : index
    %c0_14 = arith.constant 0 : index
    %25 = vector.load %arg10[%c10, %c0_14] : memref<32x1024xf32, #tpu.memory_space<vmem>>, vector<1x1024xf32>
    tpu.vector_store %arg10[%c10, %c0_14], %24 {strides = array<i32>} : memref<32x1024xf32, #tpu.memory_space<vmem>>, vector<1x1024xf32>,
    %26 = vector.extract_strided_slice %1 {offsets = [0, 65], sizes = [1, 1024], strides = [1, 1]} : vector<1x1280xf32> to vector<1x1024xf32>
    %c11 = arith.constant 11 : index
    %c0_15 = arith.constant 0 : index
    %27 = vector.load %arg10[%c11, %c0_15] : memref<32x1024xf32, #tpu.memory_space<vmem>>, vector<1x1024xf32>
    tpu.vector_store %arg10[%c11, %c0_15], %26 {strides = array<i32>} : memref<32x1024xf32, #tpu.memory_space<vmem>>, vector<1x1024xf32>,
    %28 = vector.extract_strided_slice %1 {offsets = [0, 66], sizes = [1, 1024], strides = [1, 1]} : vector<1x1280xf32> to vector<1x1024xf32>
    %c12 = arith.constant 12 : index
    %c0_16 = arith.constant 0 : index
    %29 = vector.load %arg10[%c12, %c0_16] : memref<32x1024xf32, #tpu.memory_space<vmem>>, vector<1x1024xf32>
    tpu.vector_store %arg10[%c12, %c0_16], %28 {strides = array<i32>} : memref<32x1024xf32, #tpu.memory_space<vmem>>, vector<1x1024xf32>,
    %30 = vector.extract_strided_slice %1 {offsets = [0, 67], sizes = [1, 1024], strides = [1, 1]} : vector<1x1280xf32> to vector<1x1024xf32>
    %c13 = arith.constant 13 : index
    %c0_17 = arith.constant 0 : index
    %31 = vector.load %arg10[%c13, %c0_17] : memref<32x1024xf32, #tpu.memory_space<vmem>>, vector<1x1024xf32>
    tpu.vector_store %arg10[%c13, %c0_17], %30 {strides = array<i32>} : memref<32x1024xf32, #tpu.memory_space<vmem>>, vector<1x1024xf32>,
    %32 = vector.extract_strided_slice %1 {offsets = [0, 68], sizes = [1, 1024], strides = [1, 1]} : vector<1x1280xf32> to vector<1x1024xf32>
    %c14 = arith.constant 14 : index
    %c0_18 = arith.constant 0 : index
    %33 = vector.load %arg10[%c14, %c0_18] : memref<32x1024xf32, #tpu.memory_space<vmem>>, vector<1x1024xf32>
    tpu.vector_store %arg10[%c14, %c0_18], %32 {strides = array<i32>} : memref<32x1024xf32, #tpu.memory_space<vmem>>, vector<1x1024xf32>,
    %34 = vector.extract_strided_slice %1 {offsets = [0, 96], sizes = [1, 1024], strides = [1, 1]} : vector<1x1280xf32> to vector<1x1024xf32>
    %c15 = arith.constant 15 : index
    %c0_19 = arith.constant 0 : index
    %35 = vector.load %arg10[%c15, %c0_19] : memref<32x1024xf32, #tpu.memory_space<vmem>>, vector<1x1024xf32>
    tpu.vector_store %arg10[%c15, %c0_19], %34 {strides = array<i32>} : memref<32x1024xf32, #tpu.memory_space<vmem>>, vector<1x1024xf32>,
    %36 = vector.extract_strided_slice %1 {offsets = [0, 97], sizes = [1, 1024], strides = [1, 1]} : vector<1x1280xf32> to vector<1x1024xf32>
    %c16 = arith.constant 16 : index
    %c0_20 = arith.constant 0 : index
    %37 = vector.load %arg10[%c16, %c0_20] : memref<32x1024xf32, #tpu.memory_space<vmem>>, vector<1x1024xf32>
    tpu.vector_store %arg10[%c16, %c0_20], %36 {strides = array<i32>} : memref<32x1024xf32, #tpu.memory_space<vmem>>, vector<1x1024xf32>,
    %38 = vector.extract_strided_slice %1 {offsets = [0, 98], sizes = [1, 1024], strides = [1, 1]} : vector<1x1280xf32> to vector<1x1024xf32>
    %c17 = arith.constant 17 : index
    %c0_21 = arith.constant 0 : index
    %39 = vector.load %arg10[%c17, %c0_21] : memref<32x1024xf32, #tpu.memory_space<vmem>>, vector<1x1024xf32>
    tpu.vector_store %arg10[%c17, %c0_21], %38 {strides = array<i32>} : memref<32x1024xf32, #tpu.memory_space<vmem>>, vector<1x1024xf32>,
    %40 = vector.extract_strided_slice %1 {offsets = [0, 99], sizes = [1, 1024], strides = [1, 1]} : vector<1x1280xf32> to vector<1x1024xf32>
    %c18 = arith.constant 18 : index
    %c0_22 = arith.constant 0 : index
    %41 = vector.load %arg10[%c18, %c0_22] : memref<32x1024xf32, #tpu.memory_space<vmem>>, vector<1x1024xf32>
    tpu.vector_store %arg10[%c18, %c0_22], %40 {strides = array<i32>} : memref<32x1024xf32, #tpu.memory_space<vmem>>, vector<1x1024xf32>,
    %42 = vector.extract_strided_slice %1 {offsets = [0, 100], sizes = [1, 1024], strides = [1, 1]} : vector<1x1280xf32> to vector<1x1024xf32>
    %c19 = arith.constant 19 : index
    %c0_23 = arith.constant 0 : index
    %43 = vector.load %arg10[%c19, %c0_23] : memref<32x1024xf32, #tpu.memory_space<vmem>>, vector<1x1024xf32>
    tpu.vector_store %arg10[%c19, %c0_23], %42 {strides = array<i32>} : memref<32x1024xf32, #tpu.memory_space<vmem>>, vector<1x1024xf32>,
    %44 = vector.extract_strided_slice %1 {offsets = [0, 128], sizes = [1, 1024], strides = [1, 1]} : vector<1x1280xf32> to vector<1x1024xf32>
    %c20 = arith.constant 20 : index
    %c0_24 = arith.constant 0 : index
    %45 = vector.load %arg10[%c20, %c0_24] : memref<32x1024xf32, #tpu.memory_space<vmem>>, vector<1x1024xf32>
    tpu.vector_store %arg10[%c20, %c0_24], %44 {strides = array<i32>} : memref<32x1024xf32, #tpu.memory_space<vmem>>, vector<1x1024xf32>,
    %46 = vector.extract_strided_slice %1 {offsets = [0, 129], sizes = [1, 1024], strides = [1, 1]} : vector<1x1280xf32> to vector<1x1024xf32>
    %c21 = arith.constant 21 : index
    %c0_25 = arith.constant 0 : index
    %47 = vector.load %arg10[%c21, %c0_25] : memref<32x1024xf32, #tpu.memory_space<vmem>>, vector<1x1024xf32>
    tpu.vector_store %arg10[%c21, %c0_25], %46 {strides = array<i32>} : memref<32x1024xf32, #tpu.memory_space<vmem>>, vector<1x1024xf32>,
    %48 = vector.extract_strided_slice %1 {offsets = [0, 130], sizes = [1, 1024], strides = [1, 1]} : vector<1x1280xf32> to vector<1x1024xf32>
    %c22 = arith.constant 22 : index
    %c0_26 = arith.constant 0 : index
    %49 = vector.load %arg10[%c22, %c0_26] : memref<32x1024xf32, #tpu.memory_space<vmem>>, vector<1x1024xf32>
    tpu.vector_store %arg10[%c22, %c0_26], %48 {strides = array<i32>} : memref<32x1024xf32, #tpu.memory_space<vmem>>, vector<1x1024xf32>,
    %50 = vector.extract_strided_slice %1 {offsets = [0, 131], sizes = [1, 1024], strides = [1, 1]} : vector<1x1280xf32> to vector<1x1024xf32>
    %c23 = arith.constant 23 : index
    %c0_27 = arith.constant 0 : index
    %51 = vector.load %arg10[%c23, %c0_27] : memref<32x1024xf32, #tpu.memory_space<vmem>>, vector<1x1024xf32>
    tpu.vector_store %arg10[%c23, %c0_27], %50 {strides = array<i32>} : memref<32x1024xf32, #tpu.memory_space<vmem>>, vector<1x1024xf32>,
    %52 = vector.extract_strided_slice %1 {offsets = [0, 132], sizes = [1, 1024], strides = [1, 1]} : vector<1x1280xf32> to vector<1x1024xf32>
    %c24 = arith.constant 24 : index
    %c0_28 = arith.constant 0 : index
    %53 = vector.load %arg10[%c24, %c0_28] : memref<32x1024xf32, #tpu.memory_space<vmem>>, vector<1x1024xf32>
    tpu.vector_store %arg10[%c24, %c0_28], %52 {strides = array<i32>} : memref<32x1024xf32, #tpu.memory_space<vmem>>, vector<1x1024xf32>,
    %c0_29 = arith.constant 0 : index
    %c0_30 = arith.constant 0 : index
    %54 = vector.load %arg2[%c0_29, %c0_30] : memref<8x32xf32, #tpu.memory_space<vmem>>, vector<8x32xf32>
    %c0_31 = arith.constant 0 : index
    %c0_32 = arith.constant 0 : index
    %55 = vector.load %arg10[%c0_31, %c0_32] : memref<32x1024xf32, #tpu.memory_space<vmem>>, vector<32x1024xf32>
    %cst_33 = arith.constant dense<0.000000e+00> : vector<8x1024xf32>
    %56 = tpu.matmul %54, %55, %cst_33 {dimension_numbers = #tpu.dot_dimension_numbers<[1], [0], [0], [1], [0, 0, 1, 1], [], []>} : vector<8x32xf32>, vector<32x1024xf32>, vector<8x1024xf32> -> vector<8x1024xf32>
    %c0_34 = arith.constant 0 : index
    %c0_35 = arith.constant 0 : index
    %57 = vector.load %arg3[%c0_34, %c0_35] : memref<8x1xf32, #tpu.memory_space<vmem>>, vector<8x1xf32>
    %58 = vector.broadcast %57 : vector<8x1xf32> to vector<8x1024xf32>
    %59 = arith.addf %56, %58 : vector<8x1024xf32>
    %60 = arith.negf %59 : vector<8x1024xf32>
    %61 = math.exp %60 : vector<8x1024xf32>
    %cst_36 = arith.constant 1.000000e+00 : f32
    %62 = vector.broadcast %cst_36 : f32 to vector<8x1024xf32>
    %63 = arith.addf %62, %61 : vector<8x1024xf32>
    %64 = arith.divf %62, %63 : vector<8x1024xf32>
    %c0_37 = arith.constant 0 : index
    %c0_38 = arith.constant 0 : index
    %65 = vector.load %arg4[%c0_37, %c0_38] : memref<1024x256xf32, #tpu.memory_space<vmem>>, vector<1024x256xf32>
    %cst_39 = arith.constant dense<0.000000e+00> : vector<8x256xf32>
    %66 = tpu.matmul %64, %65, %cst_39 {dimension_numbers = #tpu.dot_dimension_numbers<[1], [0], [0], [1], [0, 0, 1, 1], [], []>} : vector<8x1024xf32>, vector<1024x256xf32>, vector<8x256xf32> -> vector<8x256xf32>
    %67 = vector.extract_strided_slice %66 {offsets = [0, 0], sizes = [8, 196], strides = [1, 1]} : vector<8x256xf32> to vector<8x196xf32>
    %68 = vector.extract_strided_slice %66 {offsets = [0, 1], sizes = [8, 196], strides = [1, 1]} : vector<8x256xf32> to vector<8x196xf32>
    %69 = vector.extract_strided_slice %66 {offsets = [0, 2], sizes = [8, 196], strides = [1, 1]} : vector<8x256xf32> to vector<8x196xf32>
    %70 = vector.extract_strided_slice %66 {offsets = [0, 3], sizes = [8, 196], strides = [1, 1]} : vector<8x256xf32> to vector<8x196xf32>
    %71 = vector.extract_strided_slice %66 {offsets = [0, 4], sizes = [8, 196], strides = [1, 1]} : vector<8x256xf32> to vector<8x196xf32>
    %72 = vector.extract_strided_slice %66 {offsets = [0, 14], sizes = [8, 196], strides = [1, 1]} : vector<8x256xf32> to vector<8x196xf32>
    %73 = vector.extract_strided_slice %66 {offsets = [0, 15], sizes = [8, 196], strides = [1, 1]} : vector<8x256xf32> to vector<8x196xf32>
    %74 = vector.extract_strided_slice %66 {offsets = [0, 16], sizes = [8, 196], strides = [1, 1]} : vector<8x256xf32> to vector<8x196xf32>
    %75 = vector.extract_strided_slice %66 {offsets = [0, 17], sizes = [8, 196], strides = [1, 1]} : vector<8x256xf32> to vector<8x196xf32>
    %76 = vector.extract_strided_slice %66 {offsets = [0, 18], sizes = [8, 196], strides = [1, 1]} : vector<8x256xf32> to vector<8x196xf32>
    %77 = vector.extract_strided_slice %66 {offsets = [0, 28], sizes = [8, 196], strides = [1, 1]} : vector<8x256xf32> to vector<8x196xf32>
    %78 = vector.extract_strided_slice %66 {offsets = [0, 29], sizes = [8, 196], strides = [1, 1]} : vector<8x256xf32> to vector<8x196xf32>
    %79 = vector.extract_strided_slice %66 {offsets = [0, 30], sizes = [8, 196], strides = [1, 1]} : vector<8x256xf32> to vector<8x196xf32>
    %80 = vector.extract_strided_slice %66 {offsets = [0, 31], sizes = [8, 196], strides = [1, 1]} : vector<8x256xf32> to vector<8x196xf32>
    %81 = vector.extract_strided_slice %66 {offsets = [0, 32], sizes = [8, 196], strides = [1, 1]} : vector<8x256xf32> to vector<8x196xf32>
    %82 = vector.extract_strided_slice %66 {offsets = [0, 42], sizes = [8, 196], strides = [1, 1]} : vector<8x256xf32> to vector<8x196xf32>
    %83 = vector.extract_strided_slice %66 {offsets = [0, 43], sizes = [8, 196], strides = [1, 1]} : vector<8x256xf32> to vector<8x196xf32>
    %84 = vector.extract_strided_slice %66 {offsets = [0, 44], sizes = [8, 196], strides = [1, 1]} : vector<8x256xf32> to vector<8x196xf32>
    %85 = vector.extract_strided_slice %66 {offsets = [0, 45], sizes = [8, 196], strides = [1, 1]} : vector<8x256xf32> to vector<8x196xf32>
    %86 = vector.extract_strided_slice %66 {offsets = [0, 46], sizes = [8, 196], strides = [1, 1]} : vector<8x256xf32> to vector<8x196xf32>
    %87 = vector.extract_strided_slice %66 {offsets = [0, 56], sizes = [8, 196], strides = [1, 1]} : vector<8x256xf32> to vector<8x196xf32>
    %88 = vector.extract_strided_slice %66 {offsets = [0, 57], sizes = [8, 196], strides = [1, 1]} : vector<8x256xf32> to vector<8x196xf32>
    %89 = vector.extract_strided_slice %66 {offsets = [0, 58], sizes = [8, 196], strides = [1, 1]} : vector<8x256xf32> to vector<8x196xf32>
    %90 = vector.extract_strided_slice %66 {offsets = [0, 59], sizes = [8, 196], strides = [1, 1]} : vector<8x256xf32> to vector<8x196xf32>
    %91 = vector.extract_strided_slice %66 {offsets = [0, 60], sizes = [8, 196], strides = [1, 1]} : vector<8x256xf32> to vector<8x196xf32>
    %92 = tpu.concatenate %67, %68, %69, %70, %71, %72, %73, %74, %75, %76, %77, %78, %79, %80, %81, %82 in 0 : vector<8x196xf32>, vector<8x196xf32>, vector<8x196xf32>, vector<8x196xf32>, vector<8x196xf32>, vector<8x196xf32>, vector<8x196xf32>, vector<8x196xf32>, vector<8x196xf32>, vector<8x196xf32>, vector<8x196xf32>, vector<8x196xf32>, vector<8x196xf32>, vector<8x196xf32>, vector<8x196xf32>, vector<8x196xf32> -> vector<128x196xf32>
    %93 = tpu.concatenate %83, %84, %85, %86, %87, %88, %89, %90, %91 in 0 : vector<8x196xf32>, vector<8x196xf32>, vector<8x196xf32>, vector<8x196xf32>, vector<8x196xf32>, vector<8x196xf32>, vector<8x196xf32>, vector<8x196xf32>, vector<8x196xf32> -> vector<72x196xf32>
    %94 = tpu.concatenate %92, %93 in 0 : vector<128x196xf32>, vector<72x196xf32> -> vector<200x196xf32>
    %c0_40 = arith.constant 0 : index
    %c0_41 = arith.constant 0 : index
    %95 = vector.load %arg5[%c0_40, %c0_41] : memref<16x200xf32, #tpu.memory_space<vmem>>, vector<16x200xf32>
    %cst_42 = arith.constant dense<0.000000e+00> : vector<16x196xf32>
    %96 = tpu.matmul %95, %94, %cst_42 {dimension_numbers = #tpu.dot_dimension_numbers<[1], [0], [0], [1], [0, 0, 1, 1], [], []>} : vector<16x200xf32>, vector<200x196xf32>, vector<16x196xf32> -> vector<16x196xf32>
    %c0_43 = arith.constant 0 : index
    %c0_44 = arith.constant 0 : index
    %97 = vector.load %arg6[%c0_43, %c0_44] : memref<16x1xf32, #tpu.memory_space<vmem>>, vector<16x1xf32>
    %98 = vector.broadcast %97 : vector<16x1xf32> to vector<16x196xf32>
    %99 = arith.addf %96, %98 : vector<16x196xf32>
    %100 = arith.negf %99 : vector<16x196xf32>
    %101 = math.exp %100 : vector<16x196xf32>
    %cst_45 = arith.constant 1.000000e+00 : f32
    %102 = vector.broadcast %cst_45 : f32 to vector<16x196xf32>
    %103 = arith.addf %102, %101 : vector<16x196xf32>
    %104 = arith.divf %102, %103 : vector<16x196xf32>
    %c0_46 = arith.constant 0 : index
    %c0_47 = arith.constant 0 : index
    %105 = vector.load %arg8[%c0_46, %c0_47] : memref<1x128xf32, #tpu.memory_space<vmem>>, vector<1x128xf32>
    %106 = vector.extract_strided_slice %104 {offsets = [0, 0], sizes = [1, 196], strides = [1, 1]} : vector<16x196xf32> to vector<1x196xf32>
    %c0_48 = arith.constant 0 : index
    %c0_49 = arith.constant 0 : index
    %c0_50 = arith.constant 0 : index
    %107 = vector.load %arg7[%c0_48, %c0_49, %c0_50] : memref<16x196x128xf32, #tpu.memory_space<vmem>>, vector<1x196x128xf32>
    %108 = vector.shape_cast %107 : vector<1x196x128xf32> to vector<196x128xf32>
    %cst_51 = arith.constant dense<0.000000e+00> : vector<1x128xf32>
    %109 = tpu.matmul %106, %108, %cst_51 {dimension_numbers = #tpu.dot_dimension_numbers<[1], [0], [0], [1], [0, 0, 1, 1], [], []>} : vector<1x196xf32>, vector<196x128xf32>, vector<1x128xf32> -> vector<1x128xf32>
    %110 = arith.addf %105, %109 : vector<1x128xf32>
    %111 = vector.extract_strided_slice %104 {offsets = [1, 0], sizes = [1, 196], strides = [1, 1]} : vector<16x196xf32> to vector<1x196xf32>
    %c1_52 = arith.constant 1 : index
    %c0_53 = arith.constant 0 : index
    %c0_54 = arith.constant 0 : index
    %112 = vector.load %arg7[%c1_52, %c0_53, %c0_54] : memref<16x196x128xf32, #tpu.memory_space<vmem>>, vector<1x196x128xf32>
    %113 = vector.shape_cast %112 : vector<1x196x128xf32> to vector<196x128xf32>
    %cst_55 = arith.constant dense<0.000000e+00> : vector<1x128xf32>
    %114 = tpu.matmul %111, %113, %cst_55 {dimension_numbers = #tpu.dot_dimension_numbers<[1], [0], [0], [1], [0, 0, 1, 1], [], []>} : vector<1x196xf32>, vector<196x128xf32>, vector<1x128xf32> -> vector<1x128xf32>
    %115 = arith.addf %110, %114 : vector<1x128xf32>
    %116 = vector.extract_strided_slice %104 {offsets = [2, 0], sizes = [1, 196], strides = [1, 1]} : vector<16x196xf32> to vector<1x196xf32>
    %c2_56 = arith.constant 2 : index
    %c0_57 = arith.constant 0 : index
    %c0_58 = arith.constant 0 : index
    %117 = vector.load %arg7[%c2_56, %c0_57, %c0_58] : memref<16x196x128xf32, #tpu.memory_space<vmem>>, vector<1x196x128xf32>
    %118 = vector.shape_cast %117 : vector<1x196x128xf32> to vector<196x128xf32>
    %cst_59 = arith.constant dense<0.000000e+00> : vector<1x128xf32>
    %119 = tpu.matmul %116, %118, %cst_59 {dimension_numbers = #tpu.dot_dimension_numbers<[1], [0], [0], [1], [0, 0, 1, 1], [], []>} : vector<1x196xf32>, vector<196x128xf32>, vector<1x128xf32> -> vector<1x128xf32>
    %120 = arith.addf %115, %119 : vector<1x128xf32>
    %121 = vector.extract_strided_slice %104 {offsets = [3, 0], sizes = [1, 196], strides = [1, 1]} : vector<16x196xf32> to vector<1x196xf32>
    %c3_60 = arith.constant 3 : index
    %c0_61 = arith.constant 0 : index
    %c0_62 = arith.constant 0 : index
    %122 = vector.load %arg7[%c3_60, %c0_61, %c0_62] : memref<16x196x128xf32, #tpu.memory_space<vmem>>, vector<1x196x128xf32>
    %123 = vector.shape_cast %122 : vector<1x196x128xf32> to vector<196x128xf32>
    %cst_63 = arith.constant dense<0.000000e+00> : vector<1x128xf32>
    %124 = tpu.matmul %121, %123, %cst_63 {dimension_numbers = #tpu.dot_dimension_numbers<[1], [0], [0], [1], [0, 0, 1, 1], [], []>} : vector<1x196xf32>, vector<196x128xf32>, vector<1x128xf32> -> vector<1x128xf32>
    %125 = arith.addf %120, %124 : vector<1x128xf32>
    %126 = vector.extract_strided_slice %104 {offsets = [4, 0], sizes = [1, 196], strides = [1, 1]} : vector<16x196xf32> to vector<1x196xf32>
    %c4_64 = arith.constant 4 : index
    %c0_65 = arith.constant 0 : index
    %c0_66 = arith.constant 0 : index
    %127 = vector.load %arg7[%c4_64, %c0_65, %c0_66] : memref<16x196x128xf32, #tpu.memory_space<vmem>>, vector<1x196x128xf32>
    %128 = vector.shape_cast %127 : vector<1x196x128xf32> to vector<196x128xf32>
    %cst_67 = arith.constant dense<0.000000e+00> : vector<1x128xf32>
    %129 = tpu.matmul %126, %128, %cst_67 {dimension_numbers = #tpu.dot_dimension_numbers<[1], [0], [0], [1], [0, 0, 1, 1], [], []>} : vector<1x196xf32>, vector<196x128xf32>, vector<1x128xf32> -> vector<1x128xf32>
    %130 = arith.addf %125, %129 : vector<1x128xf32>
    %131 = vector.extract_strided_slice %104 {offsets = [5, 0], sizes = [1, 196], strides = [1, 1]} : vector<16x196xf32> to vector<1x196xf32>
    %c5_68 = arith.constant 5 : index
    %c0_69 = arith.constant 0 : index
    %c0_70 = arith.constant 0 : index
    %132 = vector.load %arg7[%c5_68, %c0_69, %c0_70] : memref<16x196x128xf32, #tpu.memory_space<vmem>>, vector<1x196x128xf32>
    %133 = vector.shape_cast %132 : vector<1x196x128xf32> to vector<196x128xf32>
    %cst_71 = arith.constant dense<0.000000e+00> : vector<1x128xf32>
    %134 = tpu.matmul %131, %133, %cst_71 {dimension_numbers = #tpu.dot_dimension_numbers<[1], [0], [0], [1], [0, 0, 1, 1], [], []>} : vector<1x196xf32>, vector<196x128xf32>, vector<1x128xf32> -> vector<1x128xf32>
    %135 = arith.addf %130, %134 : vector<1x128xf32>
    %136 = vector.extract_strided_slice %104 {offsets = [6, 0], sizes = [1, 196], strides = [1, 1]} : vector<16x196xf32> to vector<1x196xf32>
    %c6_72 = arith.constant 6 : index
    %c0_73 = arith.constant 0 : index
    %c0_74 = arith.constant 0 : index
    %137 = vector.load %arg7[%c6_72, %c0_73, %c0_74] : memref<16x196x128xf32, #tpu.memory_space<vmem>>, vector<1x196x128xf32>
    %138 = vector.shape_cast %137 : vector<1x196x128xf32> to vector<196x128xf32>
    %cst_75 = arith.constant dense<0.000000e+00> : vector<1x128xf32>
    %139 = tpu.matmul %136, %138, %cst_75 {dimension_numbers = #tpu.dot_dimension_numbers<[1], [0], [0], [1], [0, 0, 1, 1], [], []>} : vector<1x196xf32>, vector<196x128xf32>, vector<1x128xf32> -> vector<1x128xf32>
    %140 = arith.addf %135, %139 : vector<1x128xf32>
    %141 = vector.extract_strided_slice %104 {offsets = [7, 0], sizes = [1, 196], strides = [1, 1]} : vector<16x196xf32> to vector<1x196xf32>
    %c7_76 = arith.constant 7 : index
    %c0_77 = arith.constant 0 : index
    %c0_78 = arith.constant 0 : index
    %142 = vector.load %arg7[%c7_76, %c0_77, %c0_78] : memref<16x196x128xf32, #tpu.memory_space<vmem>>, vector<1x196x128xf32>
    %143 = vector.shape_cast %142 : vector<1x196x128xf32> to vector<196x128xf32>
    %cst_79 = arith.constant dense<0.000000e+00> : vector<1x128xf32>
    %144 = tpu.matmul %141, %143, %cst_79 {dimension_numbers = #tpu.dot_dimension_numbers<[1], [0], [0], [1], [0, 0, 1, 1], [], []>} : vector<1x196xf32>, vector<196x128xf32>, vector<1x128xf32> -> vector<1x128xf32>
    %145 = arith.addf %140, %144 : vector<1x128xf32>
    %146 = vector.extract_strided_slice %104 {offsets = [8, 0], sizes = [1, 196], strides = [1, 1]} : vector<16x196xf32> to vector<1x196xf32>
    %c8_80 = arith.constant 8 : index
    %c0_81 = arith.constant 0 : index
    %c0_82 = arith.constant 0 : index
    %147 = vector.load %arg7[%c8_80, %c0_81, %c0_82] : memref<16x196x128xf32, #tpu.memory_space<vmem>>, vector<1x196x128xf32>
    %148 = vector.shape_cast %147 : vector<1x196x128xf32> to vector<196x128xf32>
    %cst_83 = arith.constant dense<0.000000e+00> : vector<1x128xf32>
    %149 = tpu.matmul %146, %148, %cst_83 {dimension_numbers = #tpu.dot_dimension_numbers<[1], [0], [0], [1], [0, 0, 1, 1], [], []>} : vector<1x196xf32>, vector<196x128xf32>, vector<1x128xf32> -> vector<1x128xf32>
    %150 = arith.addf %145, %149 : vector<1x128xf32>
    %151 = vector.extract_strided_slice %104 {offsets = [9, 0], sizes = [1, 196], strides = [1, 1]} : vector<16x196xf32> to vector<1x196xf32>
    %c9_84 = arith.constant 9 : index
    %c0_85 = arith.constant 0 : index
    %c0_86 = arith.constant 0 : index
    %152 = vector.load %arg7[%c9_84, %c0_85, %c0_86] : memref<16x196x128xf32, #tpu.memory_space<vmem>>, vector<1x196x128xf32>
    %153 = vector.shape_cast %152 : vector<1x196x128xf32> to vector<196x128xf32>
    %cst_87 = arith.constant dense<0.000000e+00> : vector<1x128xf32>
    %154 = tpu.matmul %151, %153, %cst_87 {dimension_numbers = #tpu.dot_dimension_numbers<[1], [0], [0], [1], [0, 0, 1, 1], [], []>} : vector<1x196xf32>, vector<196x128xf32>, vector<1x128xf32> -> vector<1x128xf32>
    %155 = arith.addf %150, %154 : vector<1x128xf32>
    %156 = vector.extract_strided_slice %104 {offsets = [10, 0], sizes = [1, 196], strides = [1, 1]} : vector<16x196xf32> to vector<1x196xf32>
    %c10_88 = arith.constant 10 : index
    %c0_89 = arith.constant 0 : index
    %c0_90 = arith.constant 0 : index
    %157 = vector.load %arg7[%c10_88, %c0_89, %c0_90] : memref<16x196x128xf32, #tpu.memory_space<vmem>>, vector<1x196x128xf32>
    %158 = vector.shape_cast %157 : vector<1x196x128xf32> to vector<196x128xf32>
    %cst_91 = arith.constant dense<0.000000e+00> : vector<1x128xf32>
    %159 = tpu.matmul %156, %158, %cst_91 {dimension_numbers = #tpu.dot_dimension_numbers<[1], [0], [0], [1], [0, 0, 1, 1], [], []>} : vector<1x196xf32>, vector<196x128xf32>, vector<1x128xf32> -> vector<1x128xf32>
    %160 = arith.addf %155, %159 : vector<1x128xf32>
    %161 = vector.extract_strided_slice %104 {offsets = [11, 0], sizes = [1, 196], strides = [1, 1]} : vector<16x196xf32> to vector<1x196xf32>
    %c11_92 = arith.constant 11 : index
    %c0_93 = arith.constant 0 : index
    %c0_94 = arith.constant 0 : index
    %162 = vector.load %arg7[%c11_92, %c0_93, %c0_94] : memref<16x196x128xf32, #tpu.memory_space<vmem>>, vector<1x196x128xf32>
    %163 = vector.shape_cast %162 : vector<1x196x128xf32> to vector<196x128xf32>
    %cst_95 = arith.constant dense<0.000000e+00> : vector<1x128xf32>
    %164 = tpu.matmul %161, %163, %cst_95 {dimension_numbers = #tpu.dot_dimension_numbers<[1], [0], [0], [1], [0, 0, 1, 1], [], []>} : vector<1x196xf32>, vector<196x128xf32>, vector<1x128xf32> -> vector<1x128xf32>
    %165 = arith.addf %160, %164 : vector<1x128xf32>
    %166 = vector.extract_strided_slice %104 {offsets = [12, 0], sizes = [1, 196], strides = [1, 1]} : vector<16x196xf32> to vector<1x196xf32>
    %c12_96 = arith.constant 12 : index
    %c0_97 = arith.constant 0 : index
    %c0_98 = arith.constant 0 : index
    %167 = vector.load %arg7[%c12_96, %c0_97, %c0_98] : memref<16x196x128xf32, #tpu.memory_space<vmem>>, vector<1x196x128xf32>
    %168 = vector.shape_cast %167 : vector<1x196x128xf32> to vector<196x128xf32>
    %cst_99 = arith.constant dense<0.000000e+00> : vector<1x128xf32>
    %169 = tpu.matmul %166, %168, %cst_99 {dimension_numbers = #tpu.dot_dimension_numbers<[1], [0], [0], [1], [0, 0, 1, 1], [], []>} : vector<1x196xf32>, vector<196x128xf32>, vector<1x128xf32> -> vector<1x128xf32>
    %170 = arith.addf %165, %169 : vector<1x128xf32>
    %171 = vector.extract_strided_slice %104 {offsets = [13, 0], sizes = [1, 196], strides = [1, 1]} : vector<16x196xf32> to vector<1x196xf32>
    %c13_100 = arith.constant 13 : index
    %c0_101 = arith.constant 0 : index
    %c0_102 = arith.constant 0 : index
    %172 = vector.load %arg7[%c13_100, %c0_101, %c0_102] : memref<16x196x128xf32, #tpu.memory_space<vmem>>, vector<1x196x128xf32>
    %173 = vector.shape_cast %172 : vector<1x196x128xf32> to vector<196x128xf32>
    %cst_103 = arith.constant dense<0.000000e+00> : vector<1x128xf32>
    %174 = tpu.matmul %171, %173, %cst_103 {dimension_numbers = #tpu.dot_dimension_numbers<[1], [0], [0], [1], [0, 0, 1, 1], [], []>} : vector<1x196xf32>, vector<196x128xf32>, vector<1x128xf32> -> vector<1x128xf32>
    %175 = arith.addf %170, %174 : vector<1x128xf32>
    %176 = vector.extract_strided_slice %104 {offsets = [14, 0], sizes = [1, 196], strides = [1, 1]} : vector<16x196xf32> to vector<1x196xf32>
    %c14_104 = arith.constant 14 : index
    %c0_105 = arith.constant 0 : index
    %c0_106 = arith.constant 0 : index
    %177 = vector.load %arg7[%c14_104, %c0_105, %c0_106] : memref<16x196x128xf32, #tpu.memory_space<vmem>>, vector<1x196x128xf32>
    %178 = vector.shape_cast %177 : vector<1x196x128xf32> to vector<196x128xf32>
    %cst_107 = arith.constant dense<0.000000e+00> : vector<1x128xf32>
    %179 = tpu.matmul %176, %178, %cst_107 {dimension_numbers = #tpu.dot_dimension_numbers<[1], [0], [0], [1], [0, 0, 1, 1], [], []>} : vector<1x196xf32>, vector<196x128xf32>, vector<1x128xf32> -> vector<1x128xf32>
    %180 = arith.addf %175, %179 : vector<1x128xf32>
    %181 = vector.extract_strided_slice %104 {offsets = [15, 0], sizes = [1, 196], strides = [1, 1]} : vector<16x196xf32> to vector<1x196xf32>
    %c15_108 = arith.constant 15 : index
    %c0_109 = arith.constant 0 : index
    %c0_110 = arith.constant 0 : index
    %182 = vector.load %arg7[%c15_108, %c0_109, %c0_110] : memref<16x196x128xf32, #tpu.memory_space<vmem>>, vector<1x196x128xf32>
    %183 = vector.shape_cast %182 : vector<1x196x128xf32> to vector<196x128xf32>
    %cst_111 = arith.constant dense<0.000000e+00> : vector<1x128xf32>
    %184 = tpu.matmul %181, %183, %cst_111 {dimension_numbers = #tpu.dot_dimension_numbers<[1], [0], [0], [1], [0, 0, 1, 1], [], []>} : vector<1x196xf32>, vector<196x128xf32>, vector<1x128xf32> -> vector<1x128xf32>
    %185 = arith.addf %180, %184 : vector<1x128xf32>
    %186 = vector.shape_cast %185 : vector<1x128xf32> to vector<1x1x128xf32>
    %c0_112 = arith.constant 0 : index
    %c0_113 = arith.constant 0 : index
    %c0_114 = arith.constant 0 : index
    %187 = vector.load %arg9[%c0_112, %c0_113, %c0_114] : memref<1x1x128xf32, #tpu.memory_space<vmem>>, vector<1x1x128xf32>
    tpu.vector_store %arg9[%c0_112, %c0_113, %c0_114], %186 {strides = array<i32>} : memref<1x1x128xf32, #tpu.memory_space<vmem>>, vector<1x1x128xf32>,
    return
  }
  func.func @transform_0(%arg0: i32) -> (i32, i32, i32) {
    %c0_i32 = arith.constant 0 : i32
    %c0_i32_0 = arith.constant 0 : i32
    %c0_i32_1 = arith.constant 0 : i32
    return %arg0, %c0_i32, %c0_i32_0 : i32, i32, i32
  }
  func.func @transform_1(%arg0: i32) -> (i32, i32) {
    %c0_i32 = arith.constant 0 : i32
    %c0_i32_0 = arith.constant 0 : i32
    %c0_i32_1 = arith.constant 0 : i32
    return %c0_i32, %c0_i32_0 : i32, i32
  }
  func.func @transform_2(%arg0: i32) -> (i32, i32) {
    %c0_i32 = arith.constant 0 : i32
    %c0_i32_0 = arith.constant 0 : i32
    %c0_i32_1 = arith.constant 0 : i32
    return %c0_i32, %c0_i32_0 : i32, i32
  }
  func.func @transform_3(%arg0: i32) -> (i32, i32) {
    %c0_i32 = arith.constant 0 : i32
    %c0_i32_0 = arith.constant 0 : i32
    %c0_i32_1 = arith.constant 0 : i32
    return %c0_i32, %c0_i32_0 : i32, i32
  }
  func.func @transform_4(%arg0: i32) -> (i32, i32) {
    %c0_i32 = arith.constant 0 : i32
    %c0_i32_0 = arith.constant 0 : i32
    %c0_i32_1 = arith.constant 0 : i32
    return %c0_i32, %c0_i32_0 : i32, i32
  }
  func.func @transform_5(%arg0: i32) -> (i32, i32) {
    %c0_i32 = arith.constant 0 : i32
    %c0_i32_0 = arith.constant 0 : i32
    %c0_i32_1 = arith.constant 0 : i32
    return %c0_i32, %c0_i32_0 : i32, i32
  }
  func.func @transform_6(%arg0: i32) -> (i32, i32, i32) {
    %c0_i32 = arith.constant 0 : i32
    %c0_i32_0 = arith.constant 0 : i32
    %c0_i32_1 = arith.constant 0 : i32
    %c0_i32_2 = arith.constant 0 : i32
    return %c0_i32, %c0_i32_0, %c0_i32_1 : i32, i32, i32
  }
  func.func @transform_7(%arg0: i32) -> (i32, i32) {
    %c0_i32 = arith.constant 0 : i32
    %c0_i32_0 = arith.constant 0 : i32
    %c0_i32_1 = arith.constant 0 : i32
    return %c0_i32, %c0_i32_0 : i32, i32
  }
  func.func @transform_8(%arg0: i32) -> (i32, i32, i32) {
    %c0_i32 = arith.constant 0 : i32
    %c0_i32_0 = arith.constant 0 : i32
    %c0_i32_1 = arith.constant 0 : i32
    return %arg0, %c0_i32, %c0_i32_0 : i32, i32, i32
  }
}

</mosaic_0001>

<bundles_post_ra>
// kernel: lenet_forward.1
= control target key start
LH: loop header
LB: loop body
LE: loop exit
PB: predicated region body
PF: predicated region fallthrough
CT: control target
= control target key end

     0   :  { %13 = vsyncpa [#allocation4], 0  ;;  %s6635_s0 = inlined_call_operand.vmem [shape: f32[2,1,1280], index: 0, kind: input, shape index: {}]   ;;  %s6636_s1 = inlined_call_operand.vmem [shape: f32[8,32], index: 1, kind: input, shape index: {}]   ;;  %s6637_s2 = inlined_call_operand.vmem [shape: f32[8,1], index: 2, kind: input, shape index: {}]   ;;  %s6638_s3 = inlined_call_operand.vmem [shape: f32[1024,256], index: 3, kind: input, shape index: {}]   ;;  %s6639_s4 = inlined_call_operand.vmem [shape: f32[16,200], index: 4, kind: input, shape index: {}]   ;;  %s6640_s5 = inlined_call_operand.vmem [shape: f32[16,1], index: 5, kind: input, shape index: {}]   ;;  %s6641_s6 = inlined_call_operand.vmem [shape: f32[16,196,128], index: 6, kind: input, shape index: {}]   ;;  %s6642_s7 = inlined_call_operand.vmem [shape: f32[1,128], index: 7, kind: input, shape index: {}]   ;;  %s6643_s8 = inlined_call_operand.hbm [shape: f32[2,1,128], index: 8, kind: output, shape index: {}]  }
   0x1   :  { %15 = vsyncpa [#allocation4 + $0x1], 0  ;;  %s4001_s27 = smov 0   ;;  %s4003_s28 = smov 0  }
   0x2   :  { %s4005_s29 = smov 0   ;;  %s4007_s30 = smov 0  }
   0x3 LB: > { %s4022_s9 = sadd.s32 4294967295, %s3921_s30   ;;  %s3179_s10 = sadd.s32 4294967294, %s3921_s30   ;;  %s3921_s30 = sphi %s4007_s30, %s6672_s30   ;;  %s3917_s29 = sphi %s4005_s29, %s6671_s29   ;;  %s3913_s28 = sphi %s4003_s28, %s6670_s28   ;;  %s3909_s27 = sphi %s4001_s27, %s6669_s27  }
   0x4   : > { %s4026_s11 = sadd.s32 1, %s3921_s30   ;;  %s201_s12 = sadd.s32 1, %s3917_s29 }
   0x5   : > { %s198_s13 = ssub.s32 %s3921_s30, %s4026_s11  ;;  %p211_p0 = scmp.ne.s32.totalorder %s3917_s29, %s3913_s28 }
   0x6   : > { %p199_p1 = scmp.eq.s32.totalorder %s198_s13, 0  ;;  %p212_p2 = scmp.eq.s32.totalorder %s4022_s9, 1 }
   0x7   : > { %p217_p3 = scmp.ne.s32.totalorder %s3913_s28, %s3909_s27  ;;  %p218_p4 = scmp.eq.s32.totalorder %s3179_s10, 1 }
   0x8   : > { %s4037_s14 = scalar_select %p199_p1, %s3917_s29, %s201_s12  }
   0x9   : > { %p4039_p5 = por %p212_p2, %p211_p0  ;;  %p4043_p6 = por %p218_p4, %p217_p3 }
   0xa   : > { %p3182_p7 = scmp.ge.s32.totalorder %s3921_s30, 1  ;;  %p264_p8 = scmp.lt.s32.totalorder %s3921_s30, 3 }
   0xc   : > { %p265_p9 = pnand %p3182_p7, %p264_p8 }
   0xd   : > { %p296_p10 = scmp.lt.s32.totalorder (!%p265_p9), %s4022_s9, 1  ;;  %s3923_s22 = smov (!%p265_p9), 127  }
   0xe   : > { %268 = sbr.rel (%p265_p9) target bundleno = 1354 (0x54a), region = 52  ;;  %s6644_s23 = smov (!%p265_p9), 124  }
   0xf   : > { %s3925_s24 = smov (!%p265_p9), 126   ;;  %s3926_s25 = smov (!%p265_p9), 125  }
  0x10   : > { %s3927_s26 = smov (!%p265_p9), 31   ;;  %s3928_s10 = smov (!%p265_p9), 30  }
  0x11   : > { %s3929_s12 = smov (!%p265_p9), 29   ;;  %s3930_s13 = smov (!%p265_p9), 28  }
  0x12   : > { %s3933_s19 = smov (!%p265_p9), 64   ;;  %s3934_s20 = smov (!%p265_p9), 63  }
  0x13   : > { %s297_s17 = scalar_select %p296_p10, %s4022_s9, 1  ;;  %vm320_vm0 = vcmask 1046528   ;;  %vm571_vm1 = vcmask 1045504   ;;  %vm335_vm2 = vcmask 1031168   ;;  %v3942_v10 = vmov 0.0  }
  0x14   : > { %302 = vst [vmem:[#allocation2 + $0xc0] sm:$0xfe] %v3942_v10  ;;  %vm322_vm3 = vcmask 1039360   ;;  %vm361_vm4 = vcmask 1014784   ;;  %vm348_vm5 = vcmask 1022976   ;;  %vm530_vm6 = vcmask 244736  }
  0x15   : > { %s3616_s18 = smul.u32 10, %s297_s17  ;;  %s3931_s17 = smov 93   ;;  %303 = vst [vmem:[#allocation2 + $0xc8] sm:$0xfe] %v3942_v10  ;;  %vm517_vm7 = vcmask 252928   ;;  %vm543_vm8 = vcmask 236544  }
  0x16   : > { %304 = vst [vmem:[#allocation2 + $0xd0] sm:$0xfe] %v3942_v10  ;;  %vm413_vm9 = vcmask 760832   ;;  %vm556_vm10 = vcmask 228352   ;;  %vm426_vm11 = vcmask 752640   ;;  %vm452_vm12 = vcmask 515072  }
  0x17   : > { %s299_s21 = scalar_lea.vmem %s6635_s0, %s3616_s18  ;;  %s3932_s18 = smov 92   ;;  %305 = vst [vmem:[#allocation2 + $0xd8] sm:$0xfe] %v3942_v10  ;;  %vm439_vm13 = vcmask 523264   ;;  %vm465_vm14 = vcmask 506880   ;;  %vm491_vm15 = vcmask 490496  }
  0x18   : > { %v4054_v0 = vld [vmem:[%s299_s21] sm:$0xff]  ;;  %v4064_v1 = vld [vmem:[%s299_s21 + $0x8] sm:$0x3]  ;;  %s3935_s21 = smov 62   ;;  %306 = vst [vmem:[#allocation2 + $0xe0] sm:$0xfe] %v3942_v10 }
  0x19   : > { %314 = vrot.lane.b32.xlu1 %v4054_v0, %s3923_s22  ;;  %310 = vst [vmem:[#allocation2] ss:$8 sm:$0xf] %v4054_v0  ;;  %354 = vrot.lane.b32.xlu0 %v4054_v0, %s6644_s23  ;;  %v562_v43 = vrot.slane %v4054_v0, 1  ;;  %v563_v44 = vrot.slane %v4064_v1, 1 }
  0x1a   : > { %311 = vst [vmem:[#allocation2] ss:$8 sm:$0xf0] %v4054_v0  ;;  %328 = vrot.lane.b32.xlu2 %v4054_v0, %s3925_s24 }
  0x1b   : > { %307 = vst [vmem:[#allocation2 + $0xe8] sm:$0xfe] %v3942_v10  ;;  %v564_v48 = vsel %vm320_vm0, %v562_v43, %v563_v44 }
  0x1c   : > { %308 = vst [vmem:[#allocation2 + $0xf0] sm:$0xfe] %v3942_v10 }
  0x1d   : > { %309 = vst [vmem:[#allocation2 + $0xf8] sm:$0xfe] %v3942_v10 }
  0x1e   : > { %567 = vst [vmem:[#allocation2 + $0x84] ss:$8 sm:$0xf] %v564_v48 }
  0x1f   : > { %568 = vst [vmem:[#allocation2 + $0x84] ss:$8 sm:$0xf0] %v564_v48 }
  0x21   : > { %316 = vrot.lane.b32.xlu1 %v4064_v1, %s3923_s22  ;;  %356 = vrot.lane.b32.xlu0 %v4064_v1, %s6644_s23  ;;  %s6659_s23 = smov 96  }
  0x22   : > { %330 = vrot.lane.b32.xlu2 %v4064_v1, %s3925_s24 }
  0x29   : > { %343 = vrot.lane.b32.xlu1 %v4064_v1, %s3926_s25  ;;  %341 = vrot.lane.b32.xlu0 %v4054_v0, %s3926_s25 }
  0x2a   : > { %510 = vrot.lane.b32.xlu2 %v4054_v0, %s3927_s26 }
  0x31   : > { %523 = vrot.lane.b32.xlu1 %v4054_v0, %s3928_s10  ;;  %512 = vrot.lane.b32.xlu0 %v4064_v1, %s3927_s26  ;;  %s3936_s26 = smov 61  }
  0x32   : > { %525 = vrot.lane.b32.xlu2 %v4064_v1, %s3928_s10  ;;  %s3937_s10 = smov 60  }
  0x39   : > { %538 = vrot.lane.b32.xlu1 %v4064_v1, %s3929_s12  ;;  %536 = vrot.lane.b32.xlu0 %v4054_v0, %s3929_s12  ;;  %s3938_s12 = smov 32  }
  0x3a   : > { %549 = vrot.lane.b32.xlu2 %v4054_v0, %s3930_s13 }
  0x41   : > { %406 = vrot.lane.b32.xlu1 %v4054_v0, %s3931_s17  ;;  %551 = vrot.lane.b32.xlu0 %v4064_v1, %s3930_s13  ;;  %s6646_s13 = smov 96  }
  0x42   : > { %408 = vrot.lane.b32.xlu2 %v4064_v1, %s3931_s17  ;;  %s3940_s17 = smov 95  }
  0x49   : > { %421 = vrot.lane.b32.xlu1 %v4064_v1, %s3932_s18  ;;  %419 = vrot.lane.b32.xlu0 %v4054_v0, %s3932_s18  ;;  %s3941_s18 = smov 94  }
  0x4a   : > { %432 = vrot.lane.b32.xlu2 %v4054_v0, %s3933_s19 }
  0x51   : > { %445 = vrot.lane.b32.xlu1 %v4054_v0, %s3934_s20  ;;  %434 = vrot.lane.b32.xlu0 %v4064_v1, %s3933_s19  ;;  %s3948_s19 = smov 114  }
  0x52   : > { %447 = vrot.lane.b32.xlu2 %v4064_v1, %s3934_s20  ;;  %s3949_s20 = smov 86  }
  0x59   : > { %460 = vrot.lane.b32.xlu1 %v4064_v1, %s3935_s21  ;;  %458 = vrot.lane.b32.xlu0 %v4054_v0, %s3935_s21  ;;  %s3950_s21 = smov 98  }
  0x5a   : > { %471 = vrot.lane.b32.xlu2 %v4054_v0, %s3936_s26 }
  0x61   : > { %484 = vrot.lane.b32.xlu1 %v4054_v0, %s3937_s10  ;;  %473 = vrot.lane.b32.xlu0 %v4064_v1, %s3936_s26  ;;  %s3951_s26 = smov 97  }
  0x62   : > { %486 = vrot.lane.b32.xlu2 %v4064_v1, %s3937_s10  ;;  %s3944_s10 = smov 113  }
  0x69   : > { %499 = vrot.lane.b32.xlu1 %v4064_v1, %s3938_s12  ;;  %497 = vrot.lane.b32.xlu0 %v4054_v0, %s3938_s12  ;;  %s3945_s12 = smov 112  }
  0x6a   : > { %367 = vrot.lane.b32.xlu2 %v4054_v0, %s6646_s13 }
  0x71   : > { %380 = vrot.lane.b32.xlu1 %v4054_v0, %s3940_s17  ;;  %369 = vrot.lane.b32.xlu0 %v4064_v1, %s6646_s13  ;;  %s3952_s13 = smov 110  }
  0x72   : > { %382 = vrot.lane.b32.xlu2 %v4064_v1, %s3940_s17  ;;  %s3946_s17 = smov 111  }
  0x74   : > { %v329_v2 = vpop.permute.xlu2 %328 }
  0x75   : > { %v332_v3 = vrot.slane %v329_v2, 1  ;;  %v578_v4 = vrot.slane %v329_v2, 2 }
  0x79   : > { %395 = vrot.lane.b32.xlu1 %v4064_v1, %s3941_s18  ;;  %393 = vrot.lane.b32.xlu0 %v4054_v0, %s3941_s18  ;;  %s3947_s18 = smov 115  }
  0x7c   : > { %v331_v5 = vpop.permute.xlu2 %330 }
  0x7d   : > { %v333_v6 = vrot.slane %v331_v5, 1  ;;  %v579_v7 = vrot.slane %v331_v5, 2 }
  0x7f   : > { %v334_v8 = vsel %vm320_vm0, %v332_v3, %v333_v6  ;;  %v580_v9 = vsel %vm571_vm1, %v578_v4, %v579_v7 }
  0x80   : > { %v336_v11 = vsel %vm335_vm2, %v329_v2, %v334_v8  ;;  %v581_v12 = vsel %vm335_vm2, %v334_v8, %v580_v9 }
  0x81   : > { %339 = vst [vmem:[#allocation2 + $0x2] ss:$8 sm:$0xf] %v336_v11 }
  0x82   : > { %340 = vst [vmem:[#allocation2 + $0x2] ss:$8 sm:$0xf0] %v336_v11 }
  0x83   : > { %584 = vst [vmem:[#allocation2 + $0x86] ss:$8 sm:$0xf] %v581_v12 }
  0x84   : > { %585 = vst [vmem:[#allocation2 + $0x86] ss:$8 sm:$0xf0] %v581_v12  ;;  %v4112_v13 = vpop.permute.xlu2 %510 }
  0x85   : > { %v514_v49 = vrot.slane %v4112_v13, 1 }
  0x8b   : > { %v315_v14 = vpop.permute.xlu1 %314  ;;  %v355_v15 = vpop.permute.xlu0 %354 }
  0x8c   : > { %v4114_v16 = vpop.permute.xlu2 %525  ;;  %v318_v17 = vrot.slane %v315_v14, 1  ;;  %v569_v18 = vrot.slane %v315_v14, 2  ;;  %v358_v19 = vrot.slane %v355_v15, 1  ;;  %v594_v26 = vrot.slane %v355_v15, 2 }
  0x8d   : > { %v528_v50 = vrot.slane %v4114_v16, 1 }
  0x93   : > { %v317_v20 = vpop.permute.xlu1 %316  ;;  %v357_v21 = vpop.permute.xlu0 %356 }
  0x94   : > { %v319_v22 = vrot.slane %v317_v20, 1  ;;  %v570_v23 = vrot.slane %v317_v20, 2  ;;  %v359_v24 = vrot.slane %v357_v21, 1  ;;  %v595_v25 = vrot.slane %v357_v21, 2  ;;  %v4122_v33 = vpop.permute.xlu2 %549 }
  0x95   : > { %v553_v7 = vrot.slane %v4122_v33, 1 }
  0x96   : > { %v321_v27 = vsel %vm320_vm0, %v318_v17, %v319_v22  ;;  %v572_v28 = vsel %vm571_vm1, %v569_v18, %v570_v23  ;;  %v360_v29 = vsel %vm320_vm0, %v358_v19, %v359_v24  ;;  %v596_v32 = vsel %vm571_vm1, %v594_v26, %v595_v25 }
  0x97   : > { %v323_v30 = vsel %vm322_vm3, %v315_v14, %v321_v27  ;;  %v573_v31 = vsel %vm322_vm3, %v321_v27, %v572_v28  ;;  %v362_v34 = vsel %vm361_vm4, %v355_v15, %v360_v29  ;;  %v597_v35 = vsel %vm361_vm4, %v360_v29, %v596_v32 }
  0x98   : > { %326 = vst [vmem:[#allocation2 + $0x1] ss:$8 sm:$0xf] %v323_v30 }
  0x99   : > { %327 = vst [vmem:[#allocation2 + $0x1] ss:$8 sm:$0xf0] %v323_v30 }
  0x9a   : > { %576 = vst [vmem:[#allocation2 + $0x85] ss:$8 sm:$0xf] %v573_v31 }
  0x9b   : > { %577 = vst [vmem:[#allocation2 + $0x85] ss:$8 sm:$0xf0] %v573_v31  ;;  %v344_v36 = vpop.permute.xlu1 %343  ;;  %v342_v37 = vpop.permute.xlu0 %341 }
  0x9c   : > { %365 = vst [vmem:[#allocation2 + $0x4] ss:$8 sm:$0xf] %v362_v34  ;;  %v346_v38 = vrot.slane %v344_v36, 1  ;;  %v587_v39 = vrot.slane %v344_v36, 2  ;;  %v345_v40 = vrot.slane %v342_v37, 1  ;;  %v409_v51 = vpop.permute.xlu2 %408 }
  0x9d   : > { %366 = vst [vmem:[#allocation2 + $0x4] ss:$8 sm:$0xf0] %v362_v34  ;;  %v586_v41 = vrot.slane %v342_v37, 2  ;;  %v411_v8 = vrot.slane %v409_v51, 1 }
  0x9e   : > { %600 = vst [vmem:[#allocation2 + $0xc0] ss:$8 sm:$0xf] %v597_v35  ;;  %v347_v42 = vsel %vm320_vm0, %v345_v40, %v346_v38 }
  0x9f   : > { %601 = vst [vmem:[#allocation2 + $0xc0] ss:$8 sm:$0xf0] %v597_v35  ;;  %v349_v45 = vsel %vm348_vm5, %v342_v37, %v347_v42  ;;  %v588_v46 = vsel %vm571_vm1, %v586_v41, %v587_v39  ;;  %vm478_vm1 = vcmask 498688  }
  0xa0   : > { %352 = vst [vmem:[#allocation2 + $0x3] ss:$8 sm:$0xf] %v349_v45  ;;  %v589_v47 = vsel %vm348_vm5, %v347_v42, %v588_v46 }
  0xa1   : > { %353 = vst [vmem:[#allocation2 + $0x3] ss:$8 sm:$0xf0] %v349_v45 }
  0xa2   : > { %592 = vst [vmem:[#allocation2 + $0x87] ss:$8 sm:$0xf] %v589_v47 }
  0xa3   : > { %593 = vst [vmem:[#allocation2 + $0x87] ss:$8 sm:$0xf0] %v589_v47  ;;  %v524_v52 = vpop.permute.xlu1 %523  ;;  %v513_v53 = vpop.permute.xlu0 %512 }
  0xa4   : > { %v527_v54 = vrot.slane %v524_v52, 1  ;;  %v515_v55 = vrot.slane %v513_v53, 1  ;;  %v433_v4 = vpop.permute.xlu2 %432 }
  0xa5   : > { %v627_v56 = vld [vmem:[#allocation2 + $0xc0] sm:$0xff]  ;;  %v629_v57 = vld [vmem:[#allocation2 + $0xd0] sm:$0xff]  ;;  %v436_v27 = vrot.slane %v433_v4, 1 }
  0xa6   : > { %656 = vmatpush.msra.mxu1 %v627_v56  ;;  %696 = vmatpush.msra.mxu3 %v629_v57  ;;  %v631_v58 = vld [vmem:[#allocation2 + $0xe0] sm:$0xff]  ;;  %v633_v59 = vld [vmem:[#allocation2 + $0xf0] sm:$0xff]  ;;  %v529_v60 = vsel %vm320_vm0, %v527_v54, %v528_v50  ;;  %v516_v61 = vsel %vm320_vm0, %v514_v49, %v515_v55 }
  0xa7   : > { %736 = vmatpush.msra.mxu0 %v631_v58  ;;  %776 = vmatpush.msra.mxu2 %v633_v59  ;;  %v531_v62 = vsel %vm530_vm6, %v524_v52, %v529_v60  ;;  %v518_v63 = vsel %vm517_vm7, %v4112_v13, %v516_v61  ;;  %vm504_vm6 = vcmask 261120   ;;  %vm387_vm7 = vcmask 777216  }
  0xa8   : > { %534 = vst [vmem:[#allocation2 + $0x81] ss:$8 sm:$0xf] %v531_v62 }
  0xa9   : > { %535 = vst [vmem:[#allocation2 + $0x81] ss:$8 sm:$0xf0] %v531_v62 }
  0xaa   : > { %521 = vst [vmem:[#allocation2 + $0x80] ss:$8 sm:$0xf] %v518_v63 }
  0xab   : > { %522 = vst [vmem:[#allocation2 + $0x80] ss:$8 sm:$0xf0] %v518_v63  ;;  %v539_v0 = vpop.permute.xlu1 %538  ;;  %v537_v1 = vpop.permute.xlu0 %536 }
  0xac   : > { %v541_v2 = vrot.slane %v539_v0, 1  ;;  %v540_v3 = vrot.slane %v537_v1, 1  ;;  %v448_v15 = vpop.permute.xlu2 %447 }
  0xad   : > { %v450_v30 = vrot.slane %v448_v15, 1 }
  0xae   : > { %v542_v5 = vsel %vm320_vm0, %v540_v3, %v541_v2 }
  0xaf   : > { %v544_v6 = vsel %vm543_vm8, %v537_v1, %v542_v5  ;;  %vm374_vm8 = vcmask 785408  }
  0xb0   : > { %547 = vst [vmem:[#allocation2 + $0x82] ss:$8 sm:$0xf] %v544_v6 }
  0xb1   : > { %548 = vst [vmem:[#allocation2 + $0x82] ss:$8 sm:$0xf0] %v544_v6 }
  0xb3   : > { %v407_v9 = vpop.permute.xlu1 %406  ;;  %v552_v10 = vpop.permute.xlu0 %551 }
  0xb4   : > { %v410_v11 = vrot.slane %v407_v9, 1  ;;  %v554_v12 = vrot.slane %v552_v10, 1  ;;  %v472_v24 = vpop.permute.xlu2 %471 }
  0xb5   : > { %v475_v46 = vrot.slane %v472_v24, 1 }
  0xb6   : > { %v412_v13 = vsel %vm320_vm0, %v410_v11, %v411_v8  ;;  %v555_v14 = vsel %vm320_vm0, %v553_v7, %v554_v12 }
  0xb7   : > { %v414_v16 = vsel %vm413_vm9, %v407_v9, %v412_v13  ;;  %v557_v17 = vsel %vm556_vm10, %v4122_v33, %v555_v14  ;;  %vm400_vm9 = vcmask 769024  }
  0xb8   : > { %417 = vst [vmem:[#allocation2 + $0x40] ss:$8 sm:$0xf] %v414_v16 }
  0xb9   : > { %418 = vst [vmem:[#allocation2 + $0x40] ss:$8 sm:$0xf0] %v414_v16  ;;  %v635_v16 = vld [vmem:[%s6637_s2] sm:$0xff] }
  0xba   : > { %560 = vst [vmem:[#allocation2 + $0x83] ss:$8 sm:$0xf] %v557_v17 }
  0xbb   : > { %561 = vst [vmem:[#allocation2 + $0x83] ss:$8 sm:$0xf0] %v557_v17  ;;  %v422_v18 = vpop.permute.xlu1 %421  ;;  %v420_v19 = vpop.permute.xlu0 %419 }
  0xbc   : > { %v424_v20 = vrot.slane %v422_v18, 1  ;;  %v423_v21 = vrot.slane %v420_v19, 1  ;;  %v487_v39 = vpop.permute.xlu2 %486 }
  0xbd   : > { %v489_v47 = vrot.slane %v487_v39, 1  ;;  %v632_v39 = vld [vmem:[#allocation2 + $0xe8] sm:$0xff] }
  0xbe   : > { %v425_v22 = vsel %vm320_vm0, %v423_v21, %v424_v20 }
  0xbf   : > { %v427_v23 = vsel %vm426_vm11, %v420_v19, %v425_v22  ;;  %v3943_v19 = vmov 0  }
  0xc0   : > { %430 = vst [vmem:[#allocation2 + $0x41] ss:$8 sm:$0xf] %v427_v23  ;;  %3689 = vset.pattern.permute.xlu2 %v3943_v19  ;;  %3810 = vset.pattern.permute.xlu0 %v3943_v19  ;;  %v962_v19 = vld [vmem:[%s6638_s3 + $0x30] sm:$0xff] }
  0xc1   : > { %431 = vst [vmem:[#allocation2 + $0x41] ss:$8 sm:$0xf0] %v427_v23  ;;  %v619_v25 = vld [vmem:[#allocation2 + $0x80] sm:$0xff]  ;;  %v621_v26 = vld [vmem:[#allocation2 + $0x90] sm:$0xff]  ;;  %638 = vperm.xlu2 %3689, %v635_v16  }
  0xc2   : > { %657 = vmatpush.msra.mxu1 %v619_v25  ;;  %697 = vmatpush.msra.mxu3 %v621_v26  ;;  %v623_v28 = vld [vmem:[#allocation2 + $0xa0] sm:$0xff]  ;;  %v625_v29 = vld [vmem:[#allocation2 + $0xb0] sm:$0xff] }
  0xc3   : > { %737 = vmatpush.msra.mxu0 %v623_v28  ;;  %777 = vmatpush.msra.mxu2 %v625_v29  ;;  %v446_v31 = vpop.permute.xlu1 %445  ;;  %v435_v32 = vpop.permute.xlu0 %434  ;;  %v630_v28 = vld [vmem:[#allocation2 + $0xd8] sm:$0xff]  ;;  %v986_v29 = vld [vmem:[%s6638_s3 + $0xf0] sm:$0xff]  ;;  %v1004_v16 = vld [vmem:[%s6638_s3 + $0x180] sm:$0xff] }
  0xc4   : > { %v449_v33 = vrot.slane %v446_v31, 1  ;;  %v437_v34 = vrot.slane %v435_v32, 1  ;;  %v368_v52 = vpop.permute.xlu2 %367  ;;  %v622_v32 = vld [vmem:[#allocation2 + $0x98] sm:$0xff] }
  0xc5   : > { %v371_v0 = vrot.slane %v368_v52, 1 }
  0xc6   : > { %v451_v35 = vsel %vm320_vm0, %v449_v33, %v450_v30  ;;  %v438_v36 = vsel %vm320_vm0, %v436_v27, %v437_v34  ;;  %v628_v27 = vld [vmem:[#allocation2 + $0xc8] sm:$0xff]  ;;  %v1050_v30 = vld [vmem:[%s6638_s3 + $0x2f0] sm:$0xff]  ;;  %v984_v33 = vld [vmem:[%s6638_s3 + $0xe0] sm:$0xff] }
  0xc7   : > { %v453_v37 = vsel %vm452_vm12, %v446_v31, %v451_v35  ;;  %v440_v38 = vsel %vm439_vm13, %v433_v4, %v438_v36  ;;  %v620_v31 = vld [vmem:[#allocation2 + $0x88] sm:$0xff]  ;;  %v1048_v34 = vld [vmem:[%s6638_s3 + $0x2e0] sm:$0xff] }
  0xc8   : > { %456 = vst [vmem:[#allocation2 + $0x43] ss:$8 sm:$0xf] %v453_v37 }
  0xc9   : > { %457 = vst [vmem:[#allocation2 + $0x43] ss:$8 sm:$0xf0] %v453_v37 }
  0xca   : > { %443 = vst [vmem:[#allocation2 + $0x42] ss:$8 sm:$0xf] %v440_v38 }
  0xcb   : > { %444 = vst [vmem:[#allocation2 + $0x42] ss:$8 sm:$0xf0] %v440_v38  ;;  %v461_v40 = vpop.permute.xlu1 %460  ;;  %v459_v41 = vpop.permute.xlu0 %458 }
  0xcc   : > { %v463_v42 = vrot.slane %v461_v40, 1  ;;  %v462_v43 = vrot.slane %v459_v41, 1  ;;  %v383_v63 = vpop.permute.xlu2 %382  ;;  %v634_v40 = vld [vmem:[#allocation2 + $0xf8] sm:$0xff] }
  0xcd   : > { %v385_v1 = vrot.slane %v383_v63, 1  ;;  %v972_v63 = vld [vmem:[%s6638_s3 + $0x80] sm:$0xff] }
  0xce   : > { %v464_v44 = vsel %vm320_vm0, %v462_v43, %v463_v42  ;;  %v1046_v42 = vld [vmem:[%s6638_s3 + $0x2d0] sm:$0xff]  ;;  %v624_v43 = vld [vmem:[#allocation2 + $0xa8] sm:$0xff] }
  0xcf   : > { %v466_v45 = vsel %vm465_vm14, %v459_v41, %v464_v44  ;;  %v982_v41 = vld [vmem:[%s6638_s3 + $0xd0] sm:$0xff]  ;;  %v626_v44 = vld [vmem:[#allocation2 + $0xb8] sm:$0xff] }
  0xd0   : > { %469 = vst [vmem:[#allocation2 + $0x44] ss:$8 sm:$0xf] %v466_v45 }
  0xd1   : > { %470 = vst [vmem:[#allocation2 + $0x44] ss:$8 sm:$0xf0] %v466_v45  ;;  %v980_v45 = vld [vmem:[%s6638_s3 + $0xc0] sm:$0xff] }
  0xd3   : > { %v485_v48 = vpop.permute.xlu1 %484  ;;  %v474_v49 = vpop.permute.xlu0 %473 }
  0xd4   : > { %v488_v50 = vrot.slane %v485_v48, 1  ;;  %v476_v51 = vrot.slane %v474_v49, 1  ;;  %v978_v49 = vld [vmem:[%s6638_s3 + $0xb0] sm:$0xff] }
  0xd6   : > { %v490_v53 = vsel %vm320_vm0, %v488_v50, %v489_v47  ;;  %v477_v54 = vsel %vm320_vm0, %v475_v46, %v476_v51  ;;  %v1044_v46 = vld [vmem:[%s6638_s3 + $0x2c0] sm:$0xff]  ;;  %v1018_v50 = vld [vmem:[%s6638_s3 + $0x1f0] sm:$0xff] }
  0xd7   : > { %v492_v55 = vsel %vm491_vm15, %v485_v48, %v490_v53  ;;  %v479_v56 = vsel %vm478_vm1, %v472_v24, %v477_v54  ;;  %v4162_v24 = vld [vmem:[%s6636_s1] sm:$0xff]  ;;  %v1042_v51 = vld [vmem:[%s6638_s3 + $0x2b0] sm:$0xff] }
  0xd8   : > { %495 = vst [vmem:[#allocation2 + $0x46] ss:$8 sm:$0xf] %v492_v55  ;;  %v1082_v54 = vld [vmem:[%s6638_s3 + $0x3f0] sm:$0xff] }
  0xd9   : > { %496 = vst [vmem:[#allocation2 + $0x46] ss:$8 sm:$0xf0] %v492_v55  ;;  %v976_v55 = vld [vmem:[%s6638_s3 + $0xa0] sm:$0xff] }
  0xda   : > { %482 = vst [vmem:[#allocation2 + $0x45] ss:$8 sm:$0xf] %v479_v56 }
  0xdb   : > { %483 = vst [vmem:[#allocation2 + $0x45] ss:$8 sm:$0xf0] %v479_v56  ;;  %v500_v57 = vpop.permute.xlu1 %499  ;;  %v498_v58 = vpop.permute.xlu0 %497  ;;  %v1016_v56 = vld [vmem:[%s6638_s3 + $0x1e0] sm:$0xff] }
  0xdc   : > { %v502_v59 = vrot.slane %v500_v57, 1  ;;  %v501_v60 = vrot.slane %v498_v58, 1  ;;  %v1040_v57 = vld [vmem:[%s6638_s3 + $0x2a0] sm:$0xff] }
  0xde   : > { %v503_v61 = vsel %vm320_vm0, %v501_v60, %v502_v59  ;;  %v974_v59 = vld [vmem:[%s6638_s3 + $0x90] sm:$0xff] }
  0xdf   : > { %v505_v62 = vsel %vm504_vm6, %v498_v58, %v503_v61  ;;  %v1080_v58 = vld [vmem:[%s6638_s3 + $0x3e0] sm:$0xff]  ;;  %v1014_v60 = vld [vmem:[%s6638_s3 + $0x1d0] sm:$0xff] }
  0xe0   : > { %508 = vst [vmem:[#allocation2 + $0x47] ss:$8 sm:$0xf] %v505_v62  ;;  %v1038_v61 = vld [vmem:[%s6638_s3 + $0x290] sm:$0xff] }
  0xe1   : > { %509 = vst [vmem:[#allocation2 + $0x47] ss:$8 sm:$0xf0] %v505_v62  ;;  %v1078_v62 = vld [vmem:[%s6638_s3 + $0x3d0] sm:$0xff] }
  0xe3   : > { %v381_v2 = vpop.permute.xlu1 %380  ;;  %v370_v3 = vpop.permute.xlu0 %369 }
  0xe4   : > { %v384_v4 = vrot.slane %v381_v2, 1  ;;  %v372_v5 = vrot.slane %v370_v3, 1  ;;  %v970_v3 = vld [vmem:[%s6638_s3 + $0x70] sm:$0xff] }
  0xe6   : > { %v386_v6 = vsel %vm320_vm0, %v384_v4, %v385_v1  ;;  %v373_v7 = vsel %vm320_vm0, %v371_v0, %v372_v5  ;;  %v1012_v0 = vld [vmem:[%s6638_s3 + $0x1c0] sm:$0xff]  ;;  %v1010_v4 = vld [vmem:[%s6638_s3 + $0x1b0] sm:$0xff] }
  0xe7   : > { %v388_v8 = vsel %vm387_vm7, %v381_v2, %v386_v6  ;;  %v375_v9 = vsel %vm374_vm8, %v368_v52, %v373_v7  ;;  %v611_v10 = vld [vmem:[#allocation2 + $0x40] sm:$0xff]  ;;  %v613_v11 = vld [vmem:[#allocation2 + $0x50] sm:$0xff]  ;;  %v612_v35 = vld [vmem:[#allocation2 + $0x48] sm:$0xff] }
  0xe8   : > { %391 = vst [vmem:[#allocation2 + $0x6] ss:$8 sm:$0xf] %v388_v8  ;;  %658 = vmatpush.msra.mxu1 %v611_v10  ;;  %698 = vmatpush.msra.mxu3 %v613_v11  ;;  %v615_v12 = vld [vmem:[#allocation2 + $0x60] sm:$0xff]  ;;  %v617_v13 = vld [vmem:[#allocation2 + $0x70] sm:$0xff]  ;;  %v614_v36 = vld [vmem:[#allocation2 + $0x58] sm:$0xff] }
  0xe9   : > { %392 = vst [vmem:[#allocation2 + $0x6] ss:$8 sm:$0xf0] %v388_v8  ;;  %738 = vmatpush.msra.mxu0 %v615_v12  ;;  %778 = vmatpush.msra.mxu2 %v617_v13  ;;  %v616_v47 = vld [vmem:[#allocation2 + $0x68] sm:$0xff]  ;;  %v618_v48 = vld [vmem:[#allocation2 + $0x78] sm:$0xff]  ;;  %v1036_v1 = vld [vmem:[%s6638_s3 + $0x280] sm:$0xff] }
  0xea   : > { %378 = vst [vmem:[#allocation2 + $0x5] ss:$8 sm:$0xf] %v375_v9  ;;  %v1076_v2 = vld [vmem:[%s6638_s3 + $0x3c0] sm:$0xff]  ;;  %v1034_v5 = vld [vmem:[%s6638_s3 + $0x270] sm:$0xff] }
  0xeb   : > { %379 = vst [vmem:[#allocation2 + $0x5] ss:$8 sm:$0xf0] %v375_v9  ;;  %v396_v14 = vpop.permute.xlu1 %395  ;;  %v394_v15 = vpop.permute.xlu0 %393  ;;  %v1074_v6 = vld [vmem:[%s6638_s3 + $0x3b0] sm:$0xff]  ;;  %v968_v7 = vld [vmem:[%s6638_s3 + $0x60] sm:$0xff] }
  0xec   : > { %v398_v17 = vrot.slane %v396_v14, 1  ;;  %v397_v18 = vrot.slane %v394_v15, 1  ;;  %v1008_v8 = vld [vmem:[%s6638_s3 + $0x1a0] sm:$0xff]  ;;  %v966_v11 = vld [vmem:[%s6638_s3 + $0x50] sm:$0xff] }
  0xed   : > { %v1032_v9 = vld [vmem:[%s6638_s3 + $0x260] sm:$0xff]  ;;  %v1006_v12 = vld [vmem:[%s6638_s3 + $0x190] sm:$0xff] }
  0xee   : > { %v399_v20 = vsel %vm320_vm0, %v397_v18, %v398_v17  ;;  %v1072_v10 = vld [vmem:[%s6638_s3 + $0x3a0] sm:$0xff]  ;;  %v1030_v13 = vld [vmem:[%s6638_s3 + $0x250] sm:$0xff] }
  0xef   : > { %v401_v21 = vsel %vm400_vm9, %v394_v15, %v399_v20  ;;  %v1070_v14 = vld [vmem:[%s6638_s3 + $0x390] sm:$0xff]  ;;  %v964_v15 = vld [vmem:[%s6638_s3 + $0x40] sm:$0xff] }
  0xf0   : > { %404 = vst [vmem:[#allocation2 + $0x7] ss:$8 sm:$0xf] %v401_v21  ;;  %v1028_v17 = vld [vmem:[%s6638_s3 + $0x240] sm:$0xff]  ;;  %v1002_v20 = vld [vmem:[%s6638_s3 + $0x170] sm:$0xff] }
  0xf1   : > { %405 = vst [vmem:[#allocation2 + $0x7] ss:$8 sm:$0xf0] %v401_v21  ;;  %v1068_v18 = vld [vmem:[%s6638_s3 + $0x380] sm:$0xff]  ;;  %v1026_v21 = vld [vmem:[%s6638_s3 + $0x230] sm:$0xff] }
  0xf7   : > { %v603_v22 = vld [vmem:[#allocation2] sm:$0xff]  ;;  %v605_v23 = vld [vmem:[#allocation2 + $0x10] sm:$0xff]  ;;  %v604_v37 = vld [vmem:[#allocation2 + $0x8] sm:$0xff] }
  0xf8   : > { %659 = vmatpush.msra.mxu1 %v603_v22  ;;  %699 = vmatpush.msra.mxu3 %v605_v23  ;;  %v607_v25 = vld [vmem:[#allocation2 + $0x20] sm:$0xff]  ;;  %v609_v26 = vld [vmem:[#allocation2 + $0x30] sm:$0xff]  ;;  %v606_v38 = vld [vmem:[#allocation2 + $0x18] sm:$0xff] }
  0xf9   : > { %739 = vmatpush.msra.mxu0 %v607_v25  ;;  %779 = vmatpush.msra.mxu2 %v609_v26  ;;  %v608_v52 = vld [vmem:[#allocation2 + $0x28] sm:$0xff]  ;;  %v610_v53 = vld [vmem:[#allocation2 + $0x38] sm:$0xff]  ;;  %v1066_v22 = vld [vmem:[%s6638_s3 + $0x370] sm:$0xff] }
  0xfa   : > { %3183 = vmatmul.msk.f32.vlgmr.msra.gmra.mxu1 %vm504_vm6, %v4162_v24  ;;  %3185 = vmatmul.msk.f32.vlgmr.msra.gmra.mxu3 %vm504_vm6, %v4162_v24  ;;  %v960_v23 = vld [vmem:[%s6638_s3 + $0x20] sm:$0xff]  ;;  %v958_v25 = vld [vmem:[%s6638_s3 + $0x10] sm:$0xff] }
  0xfb   : > { %676 = vmatpush.msrb.mxu1 %v628_v27  ;;  %716 = vmatpush.msrb.mxu3 %v630_v28  ;;  %v998_v26 = vld [vmem:[%s6638_s3 + $0x150] sm:$0xff]  ;;  %v956_v27 = vld [vmem:[%s6638_s3] sm:$0xff] }
  0xfc   : > { %3187 = vmatmul.msk.f32.vlgmr.msra.gmra.mxu0 %vm504_vm6, %v4162_v24  ;;  %3189 = vmatmul.msk.f32.vlgmr.msra.gmra.mxu2 %vm504_vm6, %v4162_v24  ;;  %v996_v28 = vld [vmem:[%s6638_s3 + $0x140] sm:$0xff] }
  0xfd   : > { %677 = vmatpush.msrb.mxu1 %v620_v31  ;;  %717 = vmatpush.msrb.mxu3 %v622_v32  ;;  %v1024_v31 = vld [vmem:[%s6638_s3 + $0x220] sm:$0xff] }
  0xfe   : > { %1212 = vmatpush.msrb.mxu0 %v986_v29  ;;  %1252 = vmatpush.msrb.mxu2 %v1050_v30  ;;  %v1114_v29 = vld [vmem:[%s6638_s3 + $0x4f0] sm:$0xff]  ;;  %v1064_v32 = vld [vmem:[%s6638_s3 + $0x360] sm:$0xff] }
  0xff   : > { %678 = vmatpush.msrb.mxu1 %v612_v35  ;;  %718 = vmatpush.msrb.mxu3 %v614_v36  ;;  %v994_v30 = vld [vmem:[%s6638_s3 + $0x130] sm:$0xff] }
 0x100   : > { %1213 = vmatpush.msrb.mxu0 %v984_v33  ;;  %1253 = vmatpush.msrb.mxu2 %v1048_v34  ;;  %v1112_v33 = vld [vmem:[%s6638_s3 + $0x4e0] sm:$0xff]  ;;  %v1022_v35 = vld [vmem:[%s6638_s3 + $0x210] sm:$0xff] }
 0x101   : > { %679 = vmatpush.msrb.mxu1 %v604_v37  ;;  %719 = vmatpush.msrb.mxu3 %v606_v38  ;;  %v992_v34 = vld [vmem:[%s6638_s3 + $0x120] sm:$0xff]  ;;  %v1062_v36 = vld [vmem:[%s6638_s3 + $0x350] sm:$0xff] }
 0x102   : > { %3184 = vmatmul.msk.f32.vlgmr.msrb.gmra.mxu1 %vm504_vm6, %v4162_v24  ;;  %3186 = vmatmul.msk.f32.vlgmr.msrb.gmra.mxu3 %vm504_vm6, %v4162_v24  ;;  %v1110_v37 = vld [vmem:[%s6638_s3 + $0x4d0] sm:$0xff] }
 0x103   : > { %756 = vmatpush.msra.mxu1 %v632_v39  ;;  %796 = vmatpush.msra.mxu3 %v634_v40  ;;  %v990_v38 = vld [vmem:[%s6638_s3 + $0x110] sm:$0xff]  ;;  %v1020_v39 = vld [vmem:[%s6638_s3 + $0x200] sm:$0xff] }
 0x104   : > { %1214 = vmatpush.msrb.mxu0 %v982_v41  ;;  %1254 = vmatpush.msrb.mxu2 %v1046_v42  ;;  %v1060_v40 = vld [vmem:[%s6638_s3 + $0x340] sm:$0xff]  ;;  %v1178_v42 = vld [vmem:[%s6638_s3 + $0x6f0] sm:$0xff] }
 0x105   : > { %757 = vmatpush.msra.mxu1 %v624_v43  ;;  %797 = vmatpush.msra.mxu3 %v626_v44  ;;  %v1108_v41 = vld [vmem:[%s6638_s3 + $0x4c0] sm:$0xff]  ;;  %v1058_v44 = vld [vmem:[%s6638_s3 + $0x330] sm:$0xff] }
 0x106   : > { %1215 = vmatpush.msrb.mxu0 %v980_v45  ;;  %1255 = vmatpush.msrb.mxu2 %v1044_v46  ;;  %v988_v43 = vld [vmem:[%s6638_s3 + $0x100] sm:$0xff]  ;;  %v1106_v45 = vld [vmem:[%s6638_s3 + $0x4b0] sm:$0xff] }
 0x107   : > { %758 = vmatpush.msra.mxu1 %v616_v47  ;;  %798 = vmatpush.msra.mxu3 %v618_v48  ;;  %v1146_v46 = vld [vmem:[%s6638_s3 + $0x5f0] sm:$0xff]  ;;  %v1176_v47 = vld [vmem:[%s6638_s3 + $0x6e0] sm:$0xff] }
 0x108   : > { %1216 = vmatpush.msrb.mxu0 %v978_v49  ;;  %1256 = vmatpush.msrb.mxu2 %v1042_v51  ;;  %v1056_v48 = vld [vmem:[%s6638_s3 + $0x320] sm:$0xff]  ;;  %v1174_v51 = vld [vmem:[%s6638_s3 + $0x6d0] sm:$0xff] }
 0x109   : > { %759 = vmatpush.msra.mxu1 %v608_v52  ;;  %799 = vmatpush.msra.mxu3 %v610_v53  ;;  %v1104_v49 = vld [vmem:[%s6638_s3 + $0x4a0] sm:$0xff]  ;;  %v1054_v52 = vld [vmem:[%s6638_s3 + $0x310] sm:$0xff] }
 0x10a   : > { %3188 = vmatmul.msk.f32.vlgmr.msra.gmra.mxu1 %vm504_vm6, %v4162_v24  ;;  %3190 = vmatmul.msk.f32.vlgmr.msra.gmra.mxu3 %vm504_vm6, %v4162_v24  ;;  %v1000_v24 = vld [vmem:[%s6638_s3 + $0x160] sm:$0xff]  ;;  %v1102_v53 = vld [vmem:[%s6638_s3 + $0x490] sm:$0xff] }
 0x10b   : > { %1232 = vmatpush.msrb.mxu1 %v1018_v50  ;;  %1272 = vmatpush.msrb.mxu3 %v1082_v54  ;;  %v1144_v50 = vld [vmem:[%s6638_s3 + $0x5e0] sm:$0xff]  ;;  %v1142_v54 = vld [vmem:[%s6638_s3 + $0x5d0] sm:$0xff] }
 0x10c   : > { %1217 = vmatpush.msrb.mxu0 %v976_v55  ;;  %1257 = vmatpush.msrb.mxu2 %v1040_v57  ;;  %v1172_v55 = vld [vmem:[%s6638_s3 + $0x6c0] sm:$0xff] }
 0x10d   : > { %1233 = vmatpush.msrb.mxu1 %v1016_v56  ;;  %1273 = vmatpush.msrb.mxu3 %v1080_v58  ;;  %v1052_v56 = vld [vmem:[%s6638_s3 + $0x300] sm:$0xff] }
 0x10e   : > { %1218 = vmatpush.msrb.mxu0 %v974_v59  ;;  %1258 = vmatpush.msrb.mxu2 %v1038_v61  ;;  %v1100_v57 = vld [vmem:[%s6638_s3 + $0x480] sm:$0xff]  ;;  %v1170_v59 = vld [vmem:[%s6638_s3 + $0x6b0] sm:$0xff] }
 0x10f   : > { %1234 = vmatpush.msrb.mxu1 %v1014_v60  ;;  %1274 = vmatpush.msrb.mxu3 %v1078_v62  ;;  %v1140_v58 = vld [vmem:[%s6638_s3 + $0x5c0] sm:$0xff]  ;;  %v1210_v60 = vld [vmem:[%s6638_s3 + $0x7f0] sm:$0xff] }
 0x110   : > { %1219 = vmatpush.msrb.mxu0 %v972_v63  ;;  %1259 = vmatpush.msrb.mxu2 %v1036_v1  ;;  %v1098_v61 = vld [vmem:[%s6638_s3 + $0x470] sm:$0xff]  ;;  %v1168_v63 = vld [vmem:[%s6638_s3 + $0x6a0] sm:$0xff] }
 0x111   : > { %1235 = vmatpush.msrb.mxu1 %v1012_v0  ;;  %1275 = vmatpush.msrb.mxu3 %v1076_v2  ;;  %v1138_v62 = vld [vmem:[%s6638_s3 + $0x5b0] sm:$0xff]  ;;  %v1208_v0 = vld [vmem:[%s6638_s3 + $0x7e0] sm:$0xff] }
 0x112   : > { %1220 = vmatpush.msrb.mxu0 %v970_v3  ;;  %1260 = vmatpush.msrb.mxu2 %v1034_v5  ;;  %v1096_v1 = vld [vmem:[%s6638_s3 + $0x460] sm:$0xff]  ;;  %v1166_v3 = vld [vmem:[%s6638_s3 + $0x690] sm:$0xff] }
 0x113   : > { %1236 = vmatpush.msrb.mxu1 %v1010_v4  ;;  %1276 = vmatpush.msrb.mxu3 %v1074_v6  ;;  %v1136_v2 = vld [vmem:[%s6638_s3 + $0x5a0] sm:$0xff]  ;;  %v1206_v4 = vld [vmem:[%s6638_s3 + $0x7d0] sm:$0xff] }
 0x114   : > { %1221 = vmatpush.msrb.mxu0 %v968_v7  ;;  %1261 = vmatpush.msrb.mxu2 %v1032_v9  ;;  %v1094_v5 = vld [vmem:[%s6638_s3 + $0x450] sm:$0xff]  ;;  %v1164_v7 = vld [vmem:[%s6638_s3 + $0x680] sm:$0xff] }
 0x115   : > { %1237 = vmatpush.msrb.mxu1 %v1008_v8  ;;  %1277 = vmatpush.msrb.mxu3 %v1072_v10  ;;  %v1134_v6 = vld [vmem:[%s6638_s3 + $0x590] sm:$0xff]  ;;  %v1204_v8 = vld [vmem:[%s6638_s3 + $0x7c0] sm:$0xff] }
 0x116   : > { %1222 = vmatpush.msrb.mxu0 %v966_v11  ;;  %1262 = vmatpush.msrb.mxu2 %v1030_v13  ;;  %v1092_v9 = vld [vmem:[%s6638_s3 + $0x440] sm:$0xff]  ;;  %v1162_v11 = vld [vmem:[%s6638_s3 + $0x670] sm:$0xff] }
 0x117   : > { %1238 = vmatpush.msrb.mxu1 %v1006_v12  ;;  %1278 = vmatpush.msrb.mxu3 %v1070_v14  ;;  %v1132_v10 = vld [vmem:[%s6638_s3 + $0x580] sm:$0xff]  ;;  %v1202_v12 = vld [vmem:[%s6638_s3 + $0x7b0] sm:$0xff] }
 0x118   : > { %1223 = vmatpush.msrb.mxu0 %v964_v15  ;;  %1263 = vmatpush.msrb.mxu2 %v1028_v17  ;;  %v1090_v14 = vld [vmem:[%s6638_s3 + $0x430] sm:$0xff]  ;;  %v1200_v17 = vld [vmem:[%s6638_s3 + $0x7a0] sm:$0xff] }
 0x119   : > { %1239 = vmatpush.msrb.mxu1 %v1004_v16  ;;  %1279 = vmatpush.msrb.mxu3 %v1068_v18  ;;  %v1130_v15 = vld [vmem:[%s6638_s3 + $0x570] sm:$0xff]  ;;  %v1160_v16 = vld [vmem:[%s6638_s3 + $0x660] sm:$0xff] }
 0x11a   : > { %1224 = vmatpush.msrb.mxu0 %v962_v19  ;;  %1264 = vmatpush.msrb.mxu2 %v1026_v21  ;;  %v1088_v19 = vld [vmem:[%s6638_s3 + $0x420] sm:$0xff]  ;;  %v1158_v21 = vld [vmem:[%s6638_s3 + $0x650] sm:$0xff] }
 0x11b   : > { %1240 = vmatpush.msrb.mxu1 %v1002_v20  ;;  %1280 = vmatpush.msrb.mxu3 %v1066_v22  ;;  %v4474_v13 = vpop.permute.xlu2 %638  ;;  %v1128_v20 = vld [vmem:[%s6638_s3 + $0x560] sm:$0xff] }
 0x11c   : > { %1225 = vmatpush.msrb.mxu0 %v960_v23  ;;  %1265 = vmatpush.msrb.mxu2 %v1024_v31  ;;  %v1198_v23 = vld [vmem:[%s6638_s3 + $0x790] sm:$0xff]  ;;  %v1084_v31 = vld [vmem:[%s6638_s3 + $0x400] sm:$0xff] }
 0x11d   : > { %1241 = vmatpush.msrb.mxu1 %v1000_v24  ;;  %1281 = vmatpush.msrb.mxu3 %v1064_v32  ;;  %v1124_v32 = vld [vmem:[%s6638_s3 + $0x540] sm:$0xff] }
 0x11e   : > { %1226 = vmatpush.msrb.mxu0 %v958_v25  ;;  %1266 = vmatpush.msrb.mxu2 %v1022_v35  ;;  %v1086_v25 = vld [vmem:[%s6638_s3 + $0x410] sm:$0xff] }
 0x11f   : > { %1242 = vmatpush.msrb.mxu1 %v998_v26  ;;  %1282 = vmatpush.msrb.mxu3 %v1062_v36  ;;  %v1126_v26 = vld [vmem:[%s6638_s3 + $0x550] sm:$0xff] }
 0x120   : > { %1227 = vmatpush.msrb.mxu0 %v956_v27  ;;  %1267 = vmatpush.msrb.mxu2 %v1020_v39  ;;  %v1156_v27 = vld [vmem:[%s6638_s3 + $0x640] sm:$0xff]  ;;  %v1194_v35 = vld [vmem:[%s6638_s3 + $0x770] sm:$0xff] }
 0x121   : > { %1243 = vmatpush.msrb.mxu1 %v996_v28  ;;  %1283 = vmatpush.msrb.mxu3 %v1060_v40  ;;  %v1122_v36 = vld [vmem:[%s6638_s3 + $0x530] sm:$0xff]  ;;  %v1192_v39 = vld [vmem:[%s6638_s3 + $0x760] sm:$0xff] }
 0x122   : > { %1292 = vmatpush.msra.mxu0 %v1114_v29  ;;  %1332 = vmatpush.msra.mxu2 %v1178_v42  ;;  %v1150_v42 = vld [vmem:[%s6638_s3 + $0x610] sm:$0xff] }
 0x123   : > { %1244 = vmatpush.msrb.mxu1 %v994_v30  ;;  %1284 = vmatpush.msrb.mxu3 %v1058_v44  ;;  %v1196_v30 = vld [vmem:[%s6638_s3 + $0x780] sm:$0xff]  ;;  %v1190_v44 = vld [vmem:[%s6638_s3 + $0x750] sm:$0xff] }
 0x124   : > { %1293 = vmatpush.msra.mxu0 %v1112_v33  ;;  %1333 = vmatpush.msra.mxu2 %v1176_v47  ;;  %v1154_v33 = vld [vmem:[%s6638_s3 + $0x630] sm:$0xff] }
 0x125   : > { %1245 = vmatpush.msrb.mxu1 %v992_v34  ;;  %1285 = vmatpush.msrb.mxu3 %v1056_v48  ;;  %v1118_v48 = vld [vmem:[%s6638_s3 + $0x510] sm:$0xff] }
 0x126   : > { %1294 = vmatpush.msra.mxu0 %v1110_v37  ;;  %1334 = vmatpush.msra.mxu2 %v1174_v51  ;;  %v1188_v51 = vld [vmem:[%s6638_s3 + $0x740] sm:$0xff] }
 0x127   : > { %1246 = vmatpush.msrb.mxu1 %v990_v38  ;;  %1286 = vmatpush.msrb.mxu3 %v1054_v52  ;;  %v1152_v38 = vld [vmem:[%s6638_s3 + $0x620] sm:$0xff] }
 0x128   : > { %1295 = vmatpush.msra.mxu0 %v1108_v41  ;;  %1335 = vmatpush.msra.mxu2 %v1172_v55  ;;  %v1120_v41 = vld [vmem:[%s6638_s3 + $0x520] sm:$0xff] }
 0x129   : > { %1247 = vmatpush.msrb.mxu1 %v988_v43  ;;  %1287 = vmatpush.msrb.mxu3 %v1052_v56 }
 0x12a   : > { %1296 = vmatpush.msra.mxu0 %v1106_v45  ;;  %1336 = vmatpush.msra.mxu2 %v1170_v59 }
 0x12b   : > { %1312 = vmatpush.msra.mxu1 %v1146_v46  ;;  %1352 = vmatpush.msra.mxu3 %v1210_v60  ;;  %v1184_v60 = vld [vmem:[%s6638_s3 + $0x720] sm:$0xff] }
 0x12c   : > { %1297 = vmatpush.msra.mxu0 %v1104_v49  ;;  %1337 = vmatpush.msra.mxu2 %v1168_v63  ;;  %v1148_v49 = vld [vmem:[%s6638_s3 + $0x600] sm:$0xff]  ;;  %v1182_v63 = vld [vmem:[%s6638_s3 + $0x710] sm:$0xff] }
 0x12d   : > { %1313 = vmatpush.msra.mxu1 %v1144_v50  ;;  %1353 = vmatpush.msra.mxu3 %v1208_v0 }
 0x12e   : > { %1298 = vmatpush.msra.mxu0 %v1102_v53  ;;  %1338 = vmatpush.msra.mxu2 %v1166_v3 }
 0x12f   : > { %1314 = vmatpush.msra.mxu1 %v1142_v54  ;;  %1354 = vmatpush.msra.mxu3 %v1206_v4  ;;  %v1116_v54 = vld [vmem:[%s6638_s3 + $0x500] sm:$0xff] }
 0x130   : > { %1299 = vmatpush.msra.mxu0 %v1100_v57  ;;  %1339 = vmatpush.msra.mxu2 %v1164_v7  ;;  %v1186_v57 = vld [vmem:[%s6638_s3 + $0x730] sm:$0xff] }
 0x131   : > { %1315 = vmatpush.msra.mxu1 %v1140_v58  ;;  %1355 = vmatpush.msra.mxu3 %v1204_v8 }
 0x132   : > { %1300 = vmatpush.msra.mxu0 %v1098_v61  ;;  %1340 = vmatpush.msra.mxu2 %v1162_v11 }
 0x133   : > { %1316 = vmatpush.msra.mxu1 %v1138_v62  ;;  %1356 = vmatpush.msra.mxu3 %v1202_v12 }
 0x134   : > { %1301 = vmatpush.msra.mxu0 %v1096_v1  ;;  %1341 = vmatpush.msra.mxu2 %v1160_v16 }
 0x135   : > { %1317 = vmatpush.msra.mxu1 %v1136_v2  ;;  %1357 = vmatpush.msra.mxu3 %v1200_v17 }
 0x136   : > { %1302 = vmatpush.msra.mxu0 %v1094_v5  ;;  %1342 = vmatpush.msra.mxu2 %v1158_v21  ;;  %v1180_v5 = vld [vmem:[%s6638_s3 + $0x700] sm:$0xff] }
 0x137   : > { %1318 = vmatpush.msra.mxu1 %v1134_v6  ;;  %1358 = vmatpush.msra.mxu3 %v1198_v23 }
 0x138   : > { %1303 = vmatpush.msra.mxu0 %v1092_v9  ;;  %1343 = vmatpush.msra.mxu2 %v1156_v27 }
 0x139   : > { %1319 = vmatpush.msra.mxu1 %v1132_v10  ;;  %1359 = vmatpush.msra.mxu3 %v1196_v30 }
 0x13a   : > { %1304 = vmatpush.msra.mxu0 %v1090_v14  ;;  %1344 = vmatpush.msra.mxu2 %v1154_v33 }
 0x13b   : > { %1320 = vmatpush.msra.mxu1 %v1130_v15  ;;  %1360 = vmatpush.msra.mxu3 %v1194_v35 }
 0x13c   : > { %1305 = vmatpush.msra.mxu0 %v1088_v19  ;;  %1345 = vmatpush.msra.mxu2 %v1152_v38 }
 0x13d   : > { %1321 = vmatpush.msra.mxu1 %v1128_v20  ;;  %1361 = vmatpush.msra.mxu3 %v1192_v39 }
 0x13e   : > { %1306 = vmatpush.msra.mxu0 %v1086_v25  ;;  %1346 = vmatpush.msra.mxu2 %v1150_v42 }
 0x13f   : > { %1322 = vmatpush.msra.mxu1 %v1126_v26  ;;  %1362 = vmatpush.msra.mxu3 %v1190_v44 }
 0x140   : > { %1307 = vmatpush.msra.mxu0 %v1084_v31  ;;  %1347 = vmatpush.msra.mxu2 %v1148_v49  ;;  %v1083_v49 = vld [vmem:[%s6638_s3 + $0x3f8] sm:$0xff] }
 0x141   : > { %1323 = vmatpush.msra.mxu1 %v1124_v32  ;;  %1363 = vmatpush.msra.mxu3 %v1188_v51 }
 0x143   : > { %1324 = vmatpush.msra.mxu1 %v1122_v36  ;;  %1364 = vmatpush.msra.mxu3 %v1186_v57 }
 0x145   : > { %1325 = vmatpush.msra.mxu1 %v1120_v41  ;;  %1365 = vmatpush.msra.mxu3 %v1184_v60 }
 0x147   : > { %1326 = vmatpush.msra.mxu1 %v1118_v48  ;;  %1366 = vmatpush.msra.mxu3 %v1182_v63  ;;  %v981_v63 = vld [vmem:[%s6638_s3 + $0xc8] sm:$0xff] }
 0x149   : > { %1327 = vmatpush.msra.mxu1 %v1116_v54  ;;  %1367 = vmatpush.msra.mxu3 %v1180_v5 }
 0x177   : > { %v661_v18 = vpop.f32.mrf.mxu1 }
 0x178   : > { %v662_v22 = vadd.f32 %v661_v18, %v4474_v13 }
 0x179   : > { %v741_v24 = vpop.f32.mrf.mxu0 }
 0x17a   : > { %v3191_v28 = vmul.f32 -1.442695, %v662_v22  ;;  %v742_v29 = vadd.f32 %v741_v24, %v4474_v13  ;;  %v1047_v22 = vld [vmem:[%s6638_s3 + $0x2d8] sm:$0xff] }
 0x17c   : > { %3811 = vpow2.f32 %v3191_v28  ;;  %v3195_v34 = vmul.f32 -1.442695, %v742_v29 }
 0x17d   : > { %v701_v37 = vpop.f32.mrf.mxu3 }
 0x17e   : > { %3813 = vpow2.f32 %v3195_v34  ;;  %v702_v40 = vadd.f32 %v701_v37, %v4474_v13  ;;  %v987_v37 = vld [vmem:[%s6638_s3 + $0xf8] sm:$0xff] }
 0x17f   : > { %v781_v43 = vpop.f32.mrf.mxu2  ;;  %v681_v47 = vpop.f32.mrf.mxu1 }
 0x180   : > { %v3193_v45 = vmul.f32 -1.442695, %v702_v40  ;;  %v782_v46 = vadd.f32 %v781_v43, %v4474_v13  ;;  %v682_v50 = vadd.f32 %v681_v47, %v4474_v13 }
 0x182   : > { %v3812_v52 = vpop.eup %3811  ;;  %3815 = vpow2.f32 %v3193_v45  ;;  %v3197_v53 = vmul.f32 -1.442695, %v782_v46  ;;  %v3192_v56 = vmul.f32 -1.442695, %v682_v50  ;;  %v985_v45 = vld [vmem:[%s6638_s3 + $0xe8] sm:$0xff] }
 0x183   : > { %v4559_v55 = vadd.f32 1.0, %v3812_v52  ;;  %v983_v52 = vld [vmem:[%s6638_s3 + $0xd8] sm:$0xff] }
 0x184   : > { %v3814_v58 = vpop.eup %3813  ;;  %3817 = vpow2.f32 %v3197_v53 }
 0x185   : > { %3819 = vrcp.f32 %v4559_v55  ;;  %v4565_v59 = vadd.f32 1.0, %v3814_v58  ;;  %v721_v61 = vpop.f32.mrf.mxu3  ;;  %v845_v12 = vand.u32 2147483647, %v4559_v55  ;;  %v847_v16 = vand.u32 2147483648, %v4559_v55 }
 0x186   : > { %3821 = vpow2.f32 %v3192_v56  ;;  %v722_v62 = vadd.f32 %v721_v61, %v4474_v13  ;;  %vm841_vm0 = vweird.f32 %v4559_v55 }
 0x187   : > { %3823 = vrcp.f32 %v4565_v59  ;;  %v761_v1 = vpop.f32.mrf.mxu1  ;;  %vm4597_vm11 = vcmp.eq.f32.partialorder %v845_v12, 8.507059e+37  ;;  %v848_v26 = vor.u32 1.1754944e-38, %v847_v16  ;;  %vm901_vm12 = vweird.f32 %v4565_v59 }
 0x188   : > { %v3816_v0 = vpop.eup %3815  ;;  %v3194_v3 = vmul.f32 -1.442695, %v722_v62  ;;  %v762_v4 = vadd.f32 %v761_v1, %v4474_v13  ;;  %v905_v27 = vand.u32 2147483647, %v4565_v59  ;;  %v907_v31 = vand.u32 2147483648, %v4565_v59 }
 0x189   : > { %v4575_v2 = vadd.f32 1.0, %v3816_v0  ;;  %v1051_v0 = vld [vmem:[%s6638_s3 + $0x2f8] sm:$0xff] }
 0x18a   : > { %v3818_v6 = vpop.eup %3817  ;;  %v3196_v9 = vmul.f32 -1.442695, %v762_v4  ;;  %vm4645_vm6 = vcmp.eq.f32.partialorder %v905_v27, 8.507059e+37  ;;  %v908_v51 = vor.u32 1.1754944e-38, %v907_v31  ;;  %v975_v27 = vld [vmem:[%s6638_s3 + $0x98] sm:$0xff] }
 0x18b   : > { %v3820_v7 = vpop.eup %3819  ;;  %3825 = vrcp.f32 %v4575_v2  ;;  %v4582_v8 = vadd.f32 1.0, %v3818_v6  ;;  %v875_v30 = vand.u32 2147483647, %v4575_v2  ;;  %v877_v39 = vand.u32 2147483648, %v4575_v2  ;;  %v979_v6 = vld [vmem:[%s6638_s3 + $0xb8] sm:$0xff] }
 0x18c   : > { %v3822_v10 = vpop.eup %3821  ;;  %3827 = vpow2.f32 %v3194_v3  ;;  %v837_v11 = vmul.f32 %v3820_v7, %v4559_v55  ;;  %vm842_vm10 = vweird.f32 %v3820_v7  ;;  %vm871_vm7 = vweird.f32 %v4575_v2 }
 0x18d   : > { %v4586_v14 = vpop.eup %3823  ;;  %3829 = vrcp.f32 %v4582_v8  ;;  %v4589_v15 = vadd.f32 1.0, %v3822_v10  ;;  %v801_v17 = vpop.f32.mrf.mxu3  ;;  %vm843_vm13 = vmor %vm841_vm0, %vm842_vm10  ;;  %vm4651_vm9 = vcmp.eq.f32.partialorder %v875_v30, 8.507059e+37  ;;  %v878_v54 = vor.u32 1.1754944e-38, %v877_v39  ;;  %v1045_v30 = vld [vmem:[%s6638_s3 + $0x2c8] sm:$0xff] }
 0x18e   : > { %3831 = vpow2.f32 %v3196_v9  ;;  %v838_v18 = vsub.f32 1.0, %v837_v11  ;;  %v897_v19 = vmul.f32 %v4586_v14, %v4565_v59  ;;  %v802_v20 = vadd.f32 %v801_v17, %v4474_v13  ;;  %v1019_v17 = vld [vmem:[%s6638_s3 + $0x1f8] sm:$0xff]  ;;  %v973_v39 = vld [vmem:[%s6638_s3 + $0x88] sm:$0xff] }
 0x18f   : > { %3833 = vrcp.f32 %v4589_v15  ;;  %vm902_vm14 = vweird.f32 %v4586_v14  ;;  %v860_v58 = vand.u32 2147483647, %v4589_v15  ;;  %v862_v59 = vand.u32 2147483648, %v4589_v15 }
 0x190   : > { %v839_v21 = vmul.f32 %v3820_v7, %v838_v18  ;;  %v898_v23 = vsub.f32 1.0, %v897_v19  ;;  %v3198_v25 = vmul.f32 -1.442695, %v802_v20  ;;  %vm4641_vm1 = vmor %vm901_vm12, %vm902_vm14  ;;  %vm931_vm12 = vweird.f32 %v4582_v8  ;;  %v977_v18 = vld [vmem:[%s6638_s3 + $0xa8] sm:$0xff] }
 0x191   : > { %v3826_v24 = vpop.eup %3825  ;;  %v937_v10 = vand.u32 2147483648, %v4582_v8  ;;  %v863_v12 = vor.u32 1.1754944e-38, %v862_v59 }
 0x192   : > { %v3828_v28 = vpop.eup %3827  ;;  %v840_v29 = vadd.f32 %v3820_v7, %v839_v21  ;;  %v867_v13 = vmul.f32 %v3826_v24, %v4575_v2  ;;  %3835 = vpow2.f32 %v3198_v25  ;;  %v899_v34 = vmul.f32 %v4586_v14, %v898_v23 }
 0x193   : > { %v4606_v32 = vpop.eup %3829  ;;  %v4608_v33 = vadd.f32 1.0, %v3828_v28  ;;  %vm872_vm15 = vweird.f32 %v3826_v24  ;;  %v935_v25 = vand.u32 2147483647, %v4582_v8 }
 0x194   : > { %v3832_v35 = vpop.eup %3831  ;;  %v844_v36 = vsel %vm843_vm13, %v3820_v7, %v840_v29  ;;  %v868_v38 = vsub.f32 1.0, %v867_v13  ;;  %v927_v40 = vmul.f32 %v4606_v32, %v4582_v8  ;;  %v900_v44 = vadd.f32 %v4586_v14, %v899_v34  ;;  %vm873_vm0 = vmor %vm871_vm7, %vm872_vm15  ;;  %v1049_v7 = vld [vmem:[%s6638_s3 + $0x2e8] sm:$0xff] }
 0x195   : > { %v4621_v41 = vpop.eup %3833  ;;  %3837 = vrcp.f32 %v4608_v33  ;;  %v4624_v42 = vadd.f32 1.0, %v3832_v35  ;;  %v4628_v43 = vsel %vm4597_vm11, %v848_v26, %v844_v36  ;;  %vm856_vm11 = vweird.f32 %v4589_v15  ;;  %v1017_v26 = vld [vmem:[%s6638_s3 + $0x1e8] sm:$0xff]  ;;  %v1015_v36 = vld [vmem:[%s6638_s3 + $0x1d8] sm:$0xff] }
 0x196   : > { %1228 = vmatmul.f32.vlgmr.msrb.gmra.mxu0 %v4628_v43  ;;  %v869_v46 = vmul.f32 %v3826_v24, %v868_v38  ;;  %v852_v47 = vmul.f32 %v4621_v41, %v4589_v15  ;;  %v928_v56 = vsub.f32 1.0, %v927_v40  ;;  %vm857_vm10 = vweird.f32 %v4621_v41  ;;  %v957_v29 = vld [vmem:[%s6638_s3 + $0x8] sm:$0xff] }
 0x197   : > { %3839 = vrcp.f32 %v4624_v42  ;;  %1372 = vmatpush.msrb.mxu0 %v987_v37  ;;  %v904_v60 = vsel %vm4641_vm1, %v4586_v14, %v900_v44  ;;  %vm858_vm13 = vmor %vm856_vm11, %vm857_vm10  ;;  %vm932_vm14 = vweird.f32 %v4606_v32  ;;  %vm861_vm15 = vcmp.eq.f32.partialorder %v860_v58, 8.507059e+37 }
 0x198   : > { %v870_v53 = vadd.f32 %v3826_v24, %v869_v46  ;;  %v853_v55 = vsub.f32 1.0, %v852_v47  ;;  %v3836_v57 = vpop.eup %3835  ;;  %v929_v2 = vmul.f32 %v4606_v32, %v928_v56  ;;  %v4701_v14 = vsel %vm4645_vm6, %v908_v51, %v904_v60  ;;  %vm4736_vm6 = vmor %vm931_vm12, %vm932_vm14  ;;  %v1043_v46 = vld [vmem:[%s6638_s3 + $0x2b8] sm:$0xff]  ;;  %v1041_v56 = vld [vmem:[%s6638_s3 + $0x2a8] sm:$0xff] }
 0x199   : > { %1373 = vmatpush.msrb.mxu0 %v985_v45  ;;  %v4665_v61 = vadd.f32 1.0, %v3836_v57  ;;  %v890_v23 = vand.u32 2147483647, %v4608_v33  ;;  %vm886_vm7 = vweird.f32 %v4608_v33  ;;  %v938_v34 = vor.u32 1.1754944e-38, %v937_v10  ;;  %v1013_v45 = vld [vmem:[%s6638_s3 + $0x1c8] sm:$0xff] }
 0x19a   : > { %v874_v62 = vsel %vm873_vm0, %v3826_v24, %v870_v53  ;;  %v854_v1 = vmul.f32 %v4621_v41, %v853_v55  ;;  %v930_v15 = vadd.f32 %v4606_v32, %v929_v2  ;;  %v892_v24 = vand.u32 2147483648, %v4608_v33  ;;  %v1011_v53 = vld [vmem:[%s6638_s3 + $0x1b8] sm:$0xff]  ;;  %v1081_v57 = vld [vmem:[%s6638_s3 + $0x3e8] sm:$0xff] }
 0x19b   : > { %v4675_v3 = vpop.eup %3837  ;;  %1374 = vmatpush.msrb.mxu0 %v983_v52  ;;  %v4679_v4 = vsel %vm4651_vm9, %v878_v54, %v874_v62  ;;  %3841 = vrcp.f32 %v4665_v61  ;;  %v922_v8 = vand.u32 2147483648, %v4624_v42  ;;  %vm891_vm10 = vcmp.eq.f32.partialorder %v890_v23, 8.507059e+37  ;;  %v969_v60 = vld [vmem:[%s6638_s3 + $0x68] sm:$0xff]  ;;  %v967_v2 = vld [vmem:[%s6638_s3 + $0x58] sm:$0xff] }
 0x19c   : > { %1268 = vmatmul.f32.vlgmr.msrb.gmra.mxu2 %v4679_v4  ;;  %v855_v5 = vadd.f32 %v4621_v41, %v854_v1  ;;  %v882_v9 = vmul.f32 %v4675_v3, %v4608_v33  ;;  %vm887_vm1 = vweird.f32 %v4675_v3  ;;  %v934_v31 = vsel %vm4736_vm6, %v4606_v32, %v930_v15  ;;  %v1009_v62 = vld [vmem:[%s6638_s3 + $0x1a8] sm:$0xff]  ;;  %v1075_v15 = vld [vmem:[%s6638_s3 + $0x3b8] sm:$0xff] }
 0x19d   : > { %v4695_v11 = vpop.eup %3839  ;;  %1375 = vmatpush.msrb.mxu0 %v981_v63  ;;  %1412 = vmatpush.msrb.mxu2 %v1051_v0  ;;  %v920_v33 = vand.u32 2147483647, %v4624_v42  ;;  %vm888_vm0 = vmor %vm886_vm7, %vm887_vm1  ;;  %v893_v32 = vor.u32 1.1754944e-38, %v892_v24  ;;  %vm936_vm11 = vcmp.eq.f32.partialorder %v935_v25, 8.507059e+37  ;;  %vm916_vm12 = vweird.f32 %v4624_v42  ;;  %v1039_v63 = vld [vmem:[%s6638_s3 + $0x298] sm:$0xff]  ;;  %v965_v10 = vld [vmem:[%s6638_s3 + $0x48] sm:$0xff] }
 0x19e   : > { %v859_v16 = vsel %vm858_vm13, %v4621_v41, %v855_v5  ;;  %1308 = vmatmul.f32.vlgmr.msra.gmra.mxu0 %v4701_v14  ;;  %v883_v19 = vsub.f32 1.0, %v882_v9  ;;  %v912_v20 = vmul.f32 %v4695_v11, %v4624_v42  ;;  %vm917_vm9 = vweird.f32 %v4695_v11  ;;  %v971_v42 = vld [vmem:[%s6638_s3 + $0x78] sm:$0xff] }
 0x19f   : > { %v4715_v21 = vsel %vm861_vm15, %v863_v12, %v859_v16  ;;  %1376 = vmatpush.msrb.mxu0 %v979_v6  ;;  %1413 = vmatpush.msrb.mxu2 %v1049_v7  ;;  %v4765_v44 = vsel %vm936_vm11, %v938_v34, %v934_v31  ;;  %vm918_vm13 = vmor %vm916_vm12, %vm917_vm9  ;;  %v923_v50 = vor.u32 1.1754944e-38, %v922_v8  ;;  %vm921_vm14 = vcmp.eq.f32.partialorder %v920_v33, 8.507059e+37  ;;  %v1079_v0 = vld [vmem:[%s6638_s3 + $0x3d8] sm:$0xff]  ;;  %v1077_v6 = vld [vmem:[%s6638_s3 + $0x3c8] sm:$0xff] }
 0x1a0   : > { %1248 = vmatmul.f32.vlgmr.msrb.gmra.mxu1 %v4715_v21  ;;  %v884_v28 = vmul.f32 %v4675_v3, %v883_v19  ;;  %v913_v13 = vsub.f32 1.0, %v912_v20  ;;  %v952_v54 = vand.u32 2147483648, %v4665_v61  ;;  %v950_v59 = vand.u32 2147483647, %v4665_v61  ;;  %v1035_v12 = vld [vmem:[%s6638_s3 + $0x278] sm:$0xff]  ;;  %v1073_v19 = vld [vmem:[%s6638_s3 + $0x3a8] sm:$0xff] }
 0x1a1   : > { %1392 = vmatpush.msrb.mxu1 %v1019_v17  ;;  %1377 = vmatpush.msrb.mxu0 %v977_v18  ;;  %v4748_v35 = vpop.eup %3841  ;;  %vm946_vm1 = vweird.f32 %v4665_v61  ;;  %v963_v16 = vld [vmem:[%s6638_s3 + $0x38] sm:$0xff]  ;;  %v1033_v18 = vld [vmem:[%s6638_s3 + $0x268] sm:$0xff]  ;;  %vm1645_vm9 = vcmask 703488   ;;  %vm1590_vm11 = vcmask 908288   ;;  %vm1566_vm12 = vcmask 932864  }
 0x1a2   : > { %1414 = vmatpush.msrb.mxu2 %v1047_v22  ;;  %v885_v37 = vadd.f32 %v4675_v3, %v884_v28  ;;  %v914_v38 = vmul.f32 %v4695_v11, %v913_v13  ;;  %v942_v40 = vmul.f32 %v4748_v35, %v4665_v61  ;;  %vm947_vm15 = vweird.f32 %v4748_v35  ;;  %v1037_v61 = vld [vmem:[%s6638_s3 + $0x288] sm:$0xff]  ;;  %v1003_v17 = vld [vmem:[%s6638_s3 + $0x178] sm:$0xff] }
 0x1a3   : > { %1393 = vmatpush.msrb.mxu1 %v1017_v26  ;;  %1378 = vmatpush.msrb.mxu0 %v975_v27  ;;  %vm948_vm6 = vmor %vm946_vm1, %vm947_vm15  ;;  %v953_v5 = vor.u32 1.1754944e-38, %v952_v54  ;;  %vm951_vm7 = vcmp.eq.f32.partialorder %v950_v59, 8.507059e+37  ;;  %v961_v20 = vld [vmem:[%s6638_s3 + $0x28] sm:$0xff]  ;;  %v1031_v23 = vld [vmem:[%s6638_s3 + $0x258] sm:$0xff]  ;;  %vm1691_vm15 = vcmask 695296   ;;  %vm1735_vm1 = vcmask 588800  }
 0x1a4   : > { %1415 = vmatpush.msrb.mxu2 %v1045_v30  ;;  %v889_v41 = vsel %vm888_vm0, %v4675_v3, %v885_v37  ;;  %v915_v47 = vadd.f32 %v4695_v11, %v914_v38  ;;  %v943_v51 = vsub.f32 1.0, %v942_v40  ;;  %v1007_v3 = vld [vmem:[%s6638_s3 + $0x198] sm:$0xff]  ;;  %v1001_v22 = vld [vmem:[%s6638_s3 + $0x168] sm:$0xff]  ;;  %vm1574_vm0 = vcmask 924672  }
 0x1a5   : > { %1394 = vmatpush.msrb.mxu1 %v1015_v36  ;;  %v4775_v48 = vsel %vm891_vm10, %v893_v32, %v889_v41  ;;  %1348 = vmatmul.f32.vlgmr.msra.gmra.mxu2 %v4765_v44  ;;  %v1071_v24 = vld [vmem:[%s6638_s3 + $0x398] sm:$0xff]  ;;  %v1029_v27 = vld [vmem:[%s6638_s3 + $0x248] sm:$0xff]  ;;  %vm1582_vm10 = vcmask 916480  }
 0x1a6   : > { %1288 = vmatmul.f32.vlgmr.msrb.gmra.mxu3 %v4775_v48  ;;  %1379 = vmatpush.msrb.mxu0 %v973_v39  ;;  %v919_v52 = vsel %vm918_vm13, %v4695_v11, %v915_v47  ;;  %v944_v58 = vmul.f32 %v4748_v35, %v943_v51  ;;  %v1005_v11 = vld [vmem:[%s6638_s3 + $0x188] sm:$0xff]  ;;  %v959_v25 = vld [vmem:[%s6638_s3 + $0x18] sm:$0xff]  ;;  %vm1653_vm13 = vcmask 941056  }
 0x1a7   : > { %1395 = vmatpush.msrb.mxu1 %v1013_v45  ;;  %1416 = vmatpush.msrb.mxu2 %v1043_v46  ;;  %v4792_v55 = vsel %vm921_vm14, %v923_v50, %v919_v52  ;;  %v999_v26 = vld [vmem:[%s6638_s3 + $0x158] sm:$0xff]  ;;  %v1069_v28 = vld [vmem:[%s6638_s3 + $0x388] sm:$0xff]  ;;  %vm1630_vm14 = vcmask 793600  }
 0x1a8   : > { %1432 = vmatpush.msrb.mxu3 %v1083_v49  ;;  %1328 = vmatmul.f32.vlgmr.msra.gmra.mxu1 %v4792_v55  ;;  %v945_v1 = vadd.f32 %v4748_v35, %v944_v58  ;;  %v997_v13 = vld [vmem:[%s6638_s3 + $0x148] sm:$0xff]  ;;  %v1027_v30 = vld [vmem:[%s6638_s3 + $0x238] sm:$0xff] }
 0x1a9   : > { %1380 = vmatpush.msrb.mxu0 %v971_v42  ;;  %1396 = vmatpush.msrb.mxu1 %v1011_v53  ;;  %v1067_v31 = vld [vmem:[%s6638_s3 + $0x378] sm:$0xff]  ;;  %v1065_v36 = vld [vmem:[%s6638_s3 + $0x368] sm:$0xff] }
 0x1aa   : > { %1417 = vmatpush.msrb.mxu2 %v1041_v56  ;;  %1433 = vmatpush.msrb.mxu3 %v1081_v57  ;;  %v949_v7 = vsel %vm948_vm6, %v4748_v35, %v945_v1  ;;  %v1115_v34 = vld [vmem:[%s6638_s3 + $0x4f8] sm:$0xff]  ;;  %v1025_v35 = vld [vmem:[%s6638_s3 + $0x228] sm:$0xff] }
 0x1ab   : > { %1381 = vmatpush.msrb.mxu0 %v969_v60  ;;  %1397 = vmatpush.msrb.mxu1 %v1009_v62  ;;  %v4833_v9 = vsel %vm951_vm7, %v953_v5, %v949_v7  ;;  %v995_v8 = vld [vmem:[%s6638_s3 + $0x138] sm:$0xff]  ;;  %v1113_v37 = vld [vmem:[%s6638_s3 + $0x4e8] sm:$0xff] }
 0x1ac   : > { %1418 = vmatpush.msrb.mxu2 %v1039_v63  ;;  %1434 = vmatpush.msrb.mxu3 %v1079_v0  ;;  %v993_v38 = vld [vmem:[%s6638_s3 + $0x128] sm:$0xff]  ;;  %v1023_v33 = vld [vmem:[%s6638_s3 + $0x218] sm:$0xff] }
 0x1ad   : > { %1382 = vmatpush.msrb.mxu0 %v967_v2  ;;  %1398 = vmatpush.msrb.mxu1 %v1007_v3  ;;  %v1063_v32 = vld [vmem:[%s6638_s3 + $0x358] sm:$0xff]  ;;  %v1021_v40 = vld [vmem:[%s6638_s3 + $0x208] sm:$0xff] }
 0x1ae   : > { %1419 = vmatpush.msrb.mxu2 %v1037_v61  ;;  %1435 = vmatpush.msrb.mxu3 %v1077_v6  ;;  %v991_v39 = vld [vmem:[%s6638_s3 + $0x118] sm:$0xff]  ;;  %v1061_v41 = vld [vmem:[%s6638_s3 + $0x348] sm:$0xff] }
 0x1af   : > { %1368 = vmatmul.f32.vlgmr.msra.gmra.mxu3 %v4833_v9  ;;  %1383 = vmatpush.msrb.mxu0 %v965_v10  ;;  %v1109_v45 = vld [vmem:[%s6638_s3 + $0x4c8] sm:$0xff]  ;;  %v1179_v46 = vld [vmem:[%s6638_s3 + $0x6f8] sm:$0xff] }
 0x1b0   : > { %1399 = vmatpush.msrb.mxu1 %v1005_v11  ;;  %1420 = vmatpush.msrb.mxu2 %v1035_v12  ;;  %v989_v47 = vld [vmem:[%s6638_s3 + $0x108] sm:$0xff]  ;;  %v1059_v49 = vld [vmem:[%s6638_s3 + $0x338] sm:$0xff] }
 0x1b1   : > { %1436 = vmatpush.msrb.mxu3 %v1075_v15  ;;  %1384 = vmatpush.msrb.mxu0 %v963_v16  ;;  %v1107_v50 = vld [vmem:[%s6638_s3 + $0x4b8] sm:$0xff]  ;;  %v1177_v52 = vld [vmem:[%s6638_s3 + $0x6e8] sm:$0xff] }
 0x1b2   : > { %1400 = vmatpush.msrb.mxu1 %v1003_v17  ;;  %1421 = vmatpush.msrb.mxu2 %v1033_v18  ;;  %v1147_v51 = vld [vmem:[%s6638_s3 + $0x5f8] sm:$0xff]  ;;  %v1057_v42 = vld [vmem:[%s6638_s3 + $0x328] sm:$0xff] }
 0x1b3   : > { %1437 = vmatpush.msrb.mxu3 %v1073_v19  ;;  %1385 = vmatpush.msrb.mxu0 %v961_v20  ;;  %v1145_v53 = vld [vmem:[%s6638_s3 + $0x5e8] sm:$0xff]  ;;  %v1175_v54 = vld [vmem:[%s6638_s3 + $0x6d8] sm:$0xff] }
 0x1b4   : > { %1401 = vmatpush.msrb.mxu1 %v1001_v22  ;;  %1422 = vmatpush.msrb.mxu2 %v1031_v23  ;;  %v1055_v56 = vld [vmem:[%s6638_s3 + $0x318] sm:$0xff]  ;;  %v1173_v58 = vld [vmem:[%s6638_s3 + $0x6c8] sm:$0xff] }
 0x1b5   : > { %1438 = vmatpush.msrb.mxu3 %v1071_v24  ;;  %1386 = vmatpush.msrb.mxu0 %v959_v25  ;;  %v1143_v57 = vld [vmem:[%s6638_s3 + $0x5d8] sm:$0xff]  ;;  %v1053_v59 = vld [vmem:[%s6638_s3 + $0x308] sm:$0xff] }
 0x1b6   : > { %1402 = vmatpush.msrb.mxu1 %v999_v26  ;;  %1423 = vmatpush.msrb.mxu2 %v1029_v27  ;;  %v1101_v60 = vld [vmem:[%s6638_s3 + $0x488] sm:$0xff]  ;;  %v1171_v63 = vld [vmem:[%s6638_s3 + $0x6b8] sm:$0xff] }
 0x1b7   : > { %1439 = vmatpush.msrb.mxu3 %v1069_v28  ;;  %1387 = vmatpush.msrb.mxu0 %v957_v29  ;;  %v1141_v62 = vld [vmem:[%s6638_s3 + $0x5c8] sm:$0xff]  ;;  %v1211_v0 = vld [vmem:[%s6638_s3 + $0x7f8] sm:$0xff] }
 0x1b8   : > { %1403 = vmatpush.msrb.mxu1 %v997_v13  ;;  %1424 = vmatpush.msrb.mxu2 %v1027_v30  ;;  %v1099_v1 = vld [vmem:[%s6638_s3 + $0x478] sm:$0xff]  ;;  %v1169_v3 = vld [vmem:[%s6638_s3 + $0x6a8] sm:$0xff] }
 0x1b9   : > { %1440 = vmatpush.msrb.mxu3 %v1067_v31  ;;  %1388 = vmatmul.f32.vlgmr.msrb.gmra.mxu0 %v4628_v43  ;;  %v1111_v43 = vld [vmem:[%s6638_s3 + $0x4d8] sm:$0xff]  ;;  %v1209_v5 = vld [vmem:[%s6638_s3 + $0x7e8] sm:$0xff] }
 0x1ba   : > { %1452 = vmatpush.msra.mxu0 %v1115_v34  ;;  %1404 = vmatpush.msrb.mxu1 %v995_v8  ;;  %v1139_v2 = vld [vmem:[%s6638_s3 + $0x5b8] sm:$0xff]  ;;  %v1097_v61 = vld [vmem:[%s6638_s3 + $0x468] sm:$0xff] }
 0x1bb   : > { %1425 = vmatpush.msrb.mxu2 %v1025_v35  ;;  %1441 = vmatpush.msrb.mxu3 %v1065_v36  ;;  %v1167_v6 = vld [vmem:[%s6638_s3 + $0x698] sm:$0xff]  ;;  %v1165_v12 = vld [vmem:[%s6638_s3 + $0x688] sm:$0xff] }
 0x1bc   : > { %1453 = vmatpush.msra.mxu0 %v1113_v37  ;;  %1405 = vmatpush.msrb.mxu1 %v993_v38  ;;  %v1207_v7 = vld [vmem:[%s6638_s3 + $0x7d8] sm:$0xff]  ;;  %v1205_v15 = vld [vmem:[%s6638_s3 + $0x7c8] sm:$0xff] }
 0x1bd   : > { %1426 = vmatpush.msrb.mxu2 %v1023_v33  ;;  %1442 = vmatpush.msrb.mxu3 %v1063_v32  ;;  %v1095_v10 = vld [vmem:[%s6638_s3 + $0x458] sm:$0xff]  ;;  %v1093_v16 = vld [vmem:[%s6638_s3 + $0x448] sm:$0xff] }
 0x1be   : > { %1454 = vmatpush.msra.mxu0 %v1111_v43  ;;  %1406 = vmatpush.msrb.mxu1 %v991_v39  ;;  %v1135_v11 = vld [vmem:[%s6638_s3 + $0x598] sm:$0xff]  ;;  %v1133_v17 = vld [vmem:[%s6638_s3 + $0x588] sm:$0xff] }
 0x1bf   : > { %1427 = vmatpush.msrb.mxu2 %v1021_v40  ;;  %1443 = vmatpush.msrb.mxu3 %v1061_v41  ;;  %v1163_v18 = vld [vmem:[%s6638_s3 + $0x678] sm:$0xff]  ;;  %v1161_v23 = vld [vmem:[%s6638_s3 + $0x668] sm:$0xff] }
 0x1c0   : > { %1428 = vmatmul.f32.vlgmr.msrb.gmra.mxu2 %v4679_v4  ;;  %1455 = vmatpush.msra.mxu0 %v1109_v45  ;;  %v1105_v4 = vld [vmem:[%s6638_s3 + $0x4a8] sm:$0xff]  ;;  %v1203_v19 = vld [vmem:[%s6638_s3 + $0x7b8] sm:$0xff] }
 0x1c1   : > { %1492 = vmatpush.msra.mxu2 %v1179_v46  ;;  %1407 = vmatpush.msrb.mxu1 %v989_v47  ;;  %v1091_v20 = vld [vmem:[%s6638_s3 + $0x438] sm:$0xff]  ;;  %v1201_v24 = vld [vmem:[%s6638_s3 + $0x7a8] sm:$0xff] }
 0x1c2   : > { %1444 = vmatpush.msrb.mxu3 %v1059_v49  ;;  %1408 = vmatmul.f32.vlgmr.msrb.gmra.mxu1 %v4715_v21  ;;  %v1103_v21 = vld [vmem:[%s6638_s3 + $0x498] sm:$0xff]  ;;  %v1089_v25 = vld [vmem:[%s6638_s3 + $0x428] sm:$0xff] }
 0x1c3   : > { %1456 = vmatpush.msra.mxu0 %v1107_v50  ;;  %1472 = vmatpush.msra.mxu1 %v1147_v51  ;;  %v1131_v22 = vld [vmem:[%s6638_s3 + $0x578] sm:$0xff]  ;;  %v1129_v26 = vld [vmem:[%s6638_s3 + $0x568] sm:$0xff] }
 0x1c4   : > { %1493 = vmatpush.msra.mxu2 %v1177_v52  ;;  %1445 = vmatpush.msrb.mxu3 %v1057_v42  ;;  %v1159_v27 = vld [vmem:[%s6638_s3 + $0x658] sm:$0xff]  ;;  %v1157_v30 = vld [vmem:[%s6638_s3 + $0x648] sm:$0xff] }
 0x1c5   : > { %1457 = vmatpush.msra.mxu0 %v1105_v4  ;;  %1473 = vmatpush.msra.mxu1 %v1145_v53  ;;  %v1199_v28 = vld [vmem:[%s6638_s3 + $0x798] sm:$0xff]  ;;  %v1197_v31 = vld [vmem:[%s6638_s3 + $0x788] sm:$0xff] }
 0x1c6   : > { %1494 = vmatpush.msra.mxu2 %v1175_v54  ;;  %1446 = vmatpush.msrb.mxu3 %v1055_v56  ;;  %v1087_v29 = vld [vmem:[%s6638_s3 + $0x418] sm:$0xff]  ;;  %v1085_v34 = vld [vmem:[%s6638_s3 + $0x408] sm:$0xff] }
 0x1c7   : > { %1458 = vmatpush.msra.mxu0 %v1103_v21  ;;  %1474 = vmatpush.msra.mxu1 %v1143_v57  ;;  %v1127_v13 = vld [vmem:[%s6638_s3 + $0x558] sm:$0xff]  ;;  %v1125_v8 = vld [vmem:[%s6638_s3 + $0x548] sm:$0xff] }
 0x1c8   : > { %1495 = vmatpush.msra.mxu2 %v1173_v58  ;;  %1447 = vmatpush.msrb.mxu3 %v1053_v59  ;;  %v1155_v35 = vld [vmem:[%s6638_s3 + $0x638] sm:$0xff]  ;;  %v1153_v38 = vld [vmem:[%s6638_s3 + $0x628] sm:$0xff] }
 0x1c9   : > { %1448 = vmatmul.f32.vlgmr.msrb.gmra.mxu3 %v4775_v48  ;;  %1459 = vmatpush.msra.mxu0 %v1101_v60  ;;  %v1137_v48 = vld [vmem:[%s6638_s3 + $0x5a8] sm:$0xff]  ;;  %v1195_v36 = vld [vmem:[%s6638_s3 + $0x778] sm:$0xff] }
 0x1ca   : > { %1475 = vmatpush.msra.mxu1 %v1141_v62  ;;  %1496 = vmatpush.msra.mxu2 %v1171_v63  ;;  %v1123_v37 = vld [vmem:[%s6638_s3 + $0x538] sm:$0xff]  ;;  %v1193_v33 = vld [vmem:[%s6638_s3 + $0x768] sm:$0xff] }
 0x1cb   : > { %1512 = vmatpush.msra.mxu3 %v1211_v0  ;;  %1460 = vmatpush.msra.mxu0 %v1099_v1  ;;  %v1121_v32 = vld [vmem:[%s6638_s3 + $0x528] sm:$0xff]  ;;  %v1151_v43 = vld [vmem:[%s6638_s3 + $0x618] sm:$0xff] }
 0x1cc   : > { %1476 = vmatpush.msra.mxu1 %v1139_v2  ;;  %1497 = vmatpush.msra.mxu2 %v1169_v3  ;;  %v1191_v39 = vld [vmem:[%s6638_s3 + $0x758] sm:$0xff]  ;;  %v1189_v41 = vld [vmem:[%s6638_s3 + $0x748] sm:$0xff] }
 0x1cd   : > { %1513 = vmatpush.msra.mxu3 %v1209_v5  ;;  %1461 = vmatpush.msra.mxu0 %v1097_v61  ;;  %v1119_v40 = vld [vmem:[%s6638_s3 + $0x518] sm:$0xff]  ;;  %v1117_v45 = vld [vmem:[%s6638_s3 + $0x508] sm:$0xff] }
 0x1ce   : > { %1477 = vmatpush.msra.mxu1 %v1137_v48  ;;  %1498 = vmatpush.msra.mxu2 %v1167_v6  ;;  %v1187_v46 = vld [vmem:[%s6638_s3 + $0x738] sm:$0xff]  ;;  %v1185_v47 = vld [vmem:[%s6638_s3 + $0x728] sm:$0xff] }
 0x1cf   : > { %1514 = vmatpush.msra.mxu3 %v1207_v7  ;;  %1462 = vmatpush.msra.mxu0 %v1095_v10  ;;  %v1183_v49 = vld [vmem:[%s6638_s3 + $0x718] sm:$0xff]  ;;  %v1181_v50 = vld [vmem:[%s6638_s3 + $0x708] sm:$0xff] }
 0x1d0   : > { %1478 = vmatpush.msra.mxu1 %v1135_v11  ;;  %1499 = vmatpush.msra.mxu2 %v1165_v12 }
 0x1d1   : > { %1515 = vmatpush.msra.mxu3 %v1205_v15  ;;  %1463 = vmatpush.msra.mxu0 %v1093_v16 }
 0x1d2   : > { %1479 = vmatpush.msra.mxu1 %v1133_v17  ;;  %1500 = vmatpush.msra.mxu2 %v1163_v18 }
 0x1d3   : > { %1516 = vmatpush.msra.mxu3 %v1203_v19  ;;  %1464 = vmatpush.msra.mxu0 %v1091_v20 }
 0x1d4   : > { %1480 = vmatpush.msra.mxu1 %v1131_v22  ;;  %1501 = vmatpush.msra.mxu2 %v1161_v23 }
 0x1d5   : > { %1517 = vmatpush.msra.mxu3 %v1201_v24  ;;  %1465 = vmatpush.msra.mxu0 %v1089_v25 }
 0x1d6   : > { %1481 = vmatpush.msra.mxu1 %v1129_v26  ;;  %1502 = vmatpush.msra.mxu2 %v1159_v27 }
 0x1d7   : > { %1518 = vmatpush.msra.mxu3 %v1199_v28  ;;  %1466 = vmatpush.msra.mxu0 %v1087_v29 }
 0x1d8   : > { %1482 = vmatpush.msra.mxu1 %v1127_v13  ;;  %1503 = vmatpush.msra.mxu2 %v1157_v30 }
 0x1d9   : > { %1519 = vmatpush.msra.mxu3 %v1197_v31  ;;  %1467 = vmatpush.msra.mxu0 %v1085_v34 }
 0x1da   : > { %1483 = vmatpush.msra.mxu1 %v1125_v8  ;;  %1504 = vmatpush.msra.mxu2 %v1155_v35 }
 0x1db   : > { %1520 = vmatpush.msra.mxu3 %v1195_v36  ;;  %1468 = vmatmul.f32.vlgmr.msra.gmra.mxu0 %v4701_v14  ;;  %v1149_v14 = vld [vmem:[%s6638_s3 + $0x608] sm:$0xff] }
 0x1dc   : > { %1484 = vmatpush.msra.mxu1 %v1123_v37  ;;  %1505 = vmatpush.msra.mxu2 %v1153_v38 }
 0x1dd   : > { %1521 = vmatpush.msra.mxu3 %v1193_v33 }
 0x1de   : > { %1485 = vmatpush.msra.mxu1 %v1121_v32  ;;  %1506 = vmatpush.msra.mxu2 %v1151_v43 }
 0x1df   : > { %1522 = vmatpush.msra.mxu3 %v1191_v39 }
 0x1e0   : > { %1486 = vmatpush.msra.mxu1 %v1119_v40  ;;  %1507 = vmatpush.msra.mxu2 %v1149_v14 }
 0x1e1   : > { %1523 = vmatpush.msra.mxu3 %v1189_v41  ;;  %1508 = vmatmul.f32.vlgmr.msra.gmra.mxu2 %v4765_v44 }
 0x1e2   : > { %1487 = vmatpush.msra.mxu1 %v1117_v45 }
 0x1e3   : > { %1524 = vmatpush.msra.mxu3 %v1187_v46  ;;  %1488 = vmatmul.f32.vlgmr.msra.gmra.mxu1 %v4792_v55 }
 0x1e5   : > { %1525 = vmatpush.msra.mxu3 %v1185_v47 }
 0x1e7   : > { %1526 = vmatpush.msra.mxu3 %v1183_v49 }
 0x1e9   : > { %1527 = vmatpush.msra.mxu3 %v1181_v50 }
 0x1ea   : > { %1528 = vmatmul.f32.vlgmr.msra.gmra.mxu3 %v4833_v9 }
 0x213   : > { %v1229_v44 = vpop.f32.mrf.mxu0 }
 0x21b   : > { %v1309_v4 = vpop.f32.mrf.mxu0 }
 0x21d   : > { %v1249_v51 = vpop.f32.mrf.mxu1 }
 0x21e   : > { %v1250_v54 = vadd.f32 %v1249_v51, %v1229_v44 }
 0x21f   : > { %v1269_v52 = vpop.f32.mrf.mxu2 }
 0x220   : > { %v1270_v21 = vadd.f32 %v1269_v52, %v1250_v54 }
 0x225   : > { %v1329_v53 = vpop.f32.mrf.mxu1 }
 0x228   : > { %v1349_v55 = vpop.f32.mrf.mxu2 }
 0x229   : > { %v1289_v42 = vpop.f32.mrf.mxu3 }
 0x22a   : > { %v1290_v58 = vadd.f32 %v1289_v42, %v1270_v21 }
 0x22c   : > { %v1310_v62 = vadd.f32 %v1309_v4, %v1290_v58 }
 0x22e   : > { %v1330_v9 = vadd.f32 %v1329_v53, %v1310_v62 }
 0x230   : > { %v1350_v6 = vadd.f32 %v1349_v55, %v1330_v9 }
 0x232   : > { %v1369_v56 = vpop.f32.mrf.mxu3 }
 0x233   : > { %v5138_v12 = vadd.f32 %v1369_v56, %v1350_v6 }
 0x236   : > { %v1389_v57 = vpop.f32.mrf.mxu0 }
 0x23f   : > { %v1409_v59 = vpop.f32.mrf.mxu1 }
 0x240   : > { %v1410_v63 = vadd.f32 %v1409_v59, %v1389_v57 }
 0x243   : > { %v1429_v60 = vpop.f32.mrf.mxu2 }
 0x244   : > { %v1430_v1 = vadd.f32 %v1429_v60, %v1410_v63 }
 0x24c   : > { %v1449_v0 = vpop.f32.mrf.mxu3 }
 0x24d   : > { %v1450_v3 = vadd.f32 %v1449_v0, %v1430_v1 }
 0x258   : > { %v1469_v2 = vpop.f32.mrf.mxu0 }
 0x259   : > { %v1470_v61 = vadd.f32 %v1469_v2, %v1450_v3 }
 0x260   : > { %v1489_v5 = vpop.f32.mrf.mxu1 }
 0x261   : > { %v1490_v7 = vadd.f32 %v1489_v5, %v1470_v61 }
 0x264   : > { %v1509_v48 = vpop.f32.mrf.mxu2 }
 0x265   : > { %v1510_v10 = vadd.f32 %v1509_v48, %v1490_v7 }
 0x26d   : > { %v1529_v11 = vpop.f32.mrf.mxu3 }
 0x26e   : > { %v5140_v15 = vadd.f32 %v1529_v11, %v1510_v10 }
 0x270   : > { %v3700_v16 = vpack.i.bf16 %v5138_v12, %v5140_v15 }
 0x272   : > { %3701 = vrot.lane.b32.xlu2 %v3700_v16, %s3944_s10  ;;  %3696 = vrot.lane.b32.xlu1 %v3700_v16, %s3945_s12  ;;  %s3953_s10 = smov 100   ;;  %s6660_s12 = smov 124  }
 0x273   : > { %3691 = vrot.lane.b32.xlu0 %v3700_v16, %s3946_s17 }
 0x27a   : > { %3716 = vrot.lane.b32.xlu2 %v3700_v16, %s3926_s25  ;;  %3711 = vrot.lane.b32.xlu1 %v3700_v16, %s3947_s18  ;;  %s3954_s25 = smov 99  }
 0x27b   : > { %3706 = vrot.lane.b32.xlu0 %v3700_v16, %s3948_s19 }
 0x282   : > { %3731 = vrot.lane.b32.xlu2 %v3700_v16, %s3949_s20  ;;  %3726 = vrot.lane.b32.xlu1 %v3700_v16, %s3923_s22  ;;  %s3955_s22 = smov 85  }
 0x283   : > { %3721 = vrot.lane.b32.xlu0 %v3700_v16, %s3925_s24 }
 0x28a   : > { %3746 = vrot.lane.b32.xlu2 %v3700_v16, %s3950_s21  ;;  %3741 = vrot.lane.b32.xlu1 %v3700_v16, %s3951_s26  ;;  %s3879_s26 = scalar_lea.hbm %s6643_s8, 2 }
 0x28b   : > { %3736 = vrot.lane.b32.xlu0 %v3700_v16, %s6659_s23 }
 0x292   : > { %3761 = vrot.lane.b32.xlu2 %v3700_v16, %s3952_s13  ;;  %3756 = vrot.lane.b32.xlu1 %v3700_v16, %s3953_s10  ;;  %s294_s13 = sand.u32 1, %s3913_s28  }
 0x293   : > { %3751 = vrot.lane.b32.xlu0 %v3700_v16, %s3954_s25  ;;  %s3112_s18 = scalar_lea.sflag [#allocation4], %s294_s13 }
 0x29a   : > { %1557 = vrot.lane.b32.xlu2 %v5140_v15, %s6660_s12 }
 0x2cc   : > { %v3702_v17 = vpop.permute.xlu2 %3701 }
 0x2cd   : > { %v5162_v34 = vunpack.i.l.bf16 %v3702_v17  ;;  %v3704_v37 = vunpack.i.h.bf16 %v3702_v17 }
 0x2cf   : > { %v5174_v40 = vsel %vm1574_vm0, %v3704_v37, %v5162_v34  ;;  %vm1936_vm0 = vcmask 556032  }
 0x2d0   : > { %v3790_v44 = vpack.i.bf16 %v5140_v15, %v5174_v40 }
 0x2d4   : > { %v5150_v18 = vpop.permute.xlu2 %3716 }
 0x2d5   : > { %v5160_v13 = vunpack.i.l.bf16 %v5150_v18  ;;  %v3719_v42 = vunpack.i.h.bf16 %v5150_v18  ;;  %v1723_v18 = vld [vmem:[%s6640_s5] sm:$0xff] }
 0x2d7   : > { %v5202_v1 = vsel %vm348_vm5, %v3719_v42, %v5160_v13  ;;  %vm1614_vm5 = vcmask 809984  }
 0x2dc   : > { %v3732_v19 = vpop.permute.xlu2 %3731 }
 0x2dd   : > { %v3734_v20 = vunpack.i.h.bf16 %v3732_v19  ;;  %v3733_v22 = vunpack.i.l.bf16 %v3732_v19 }
 0x2df   : > { %1788 = vmatpush.msrb.mxu2 %v3733_v22  ;;  %v1646_v23 = vsel %vm1645_vm9, %v3734_v20, %v3733_v22 }
 0x2e0   : > { %1742 = vmatpush.msrb.mxu0 %v1646_v23 }
 0x2e4   : > { %v3697_v24 = vpop.permute.xlu1 %3696  ;;  %v3747_v52 = vpop.permute.xlu2 %3746 }
 0x2e5   : > { %v5152_v25 = vunpack.i.l.bf16 %v3697_v24  ;;  %v3692_v26 = vpop.permute.xlu0 %3691  ;;  %v3699_v38 = vunpack.i.h.bf16 %v3697_v24  ;;  %v3749_v62 = vunpack.i.h.bf16 %v3747_v52  ;;  %v3748_v63 = vunpack.i.l.bf16 %v3747_v52 }
 0x2e6   : > { %v5154_v27 = vunpack.i.l.bf16 %v3692_v26  ;;  %v3694_v33 = vunpack.i.h.bf16 %v3692_v26 }
 0x2e7   : > { %v5179_v41 = vsel %vm1582_vm10, %v3699_v38, %v5152_v25 }
 0x2e8   : > { %v3765_v28 = vpack.i.bf16 %v5152_v25, %v5154_v27  ;;  %v5184_v46 = vsel %vm1590_vm11, %v3694_v33, %v5154_v27 }
 0x2ea   : > { %3766 = vrot.lane.b32.xlu0 %v3765_v28, %s3955_s22 }
 0x2ec   : > { %v3712_v29 = vpop.permute.xlu1 %3711  ;;  %v3762_v48 = vpop.permute.xlu2 %3761 }
 0x2ed   : > { %v3713_v30 = vunpack.i.l.bf16 %v3712_v29  ;;  %v3707_v31 = vpop.permute.xlu0 %3706  ;;  %v3714_v47 = vunpack.i.h.bf16 %v3712_v29  ;;  %v3764_v19 = vunpack.i.h.bf16 %v3762_v48  ;;  %v3763_v20 = vunpack.i.l.bf16 %v3762_v48  ;;  %v1926_v48 = vld [vmem:[%s6641_s6 + $0x78] sm:$0xff] }
 0x2ee   : > { %v5164_v8 = vunpack.i.l.bf16 %v3707_v31  ;;  %v3709_v49 = vunpack.i.h.bf16 %v3707_v31 }
 0x2ef   : > { %v3775_v35 = vpack.i.bf16 %v5160_v13, %v3713_v30  ;;  %v1654_v55 = vsel %vm1653_vm13, %v3714_v47, %v3713_v30  ;;  %v1720_v47 = vld [vmem:[%s6639_s4 + $0x8] sm:$0xff] }
 0x2f0   : > { %v3770_v36 = vpack.i.bf16 %v5164_v8, %v5162_v34  ;;  %v1567_v53 = vsel %vm1566_vm12, %v3709_v49, %v5164_v8 }
 0x2f1   : > { %v3795_v60 = vpack.i.bf16 %v1654_v55, %v1567_v53 }
 0x2f2   : > { %3771 = vrot.lane.b32.xlu1 %v3770_v36, %s3955_s22  ;;  %3776 = vrot.lane.b32.xlu0 %v3775_v35, %s3955_s22 }
 0x2f4   : > { %v3727_v32 = vpop.permute.xlu1 %3726  ;;  %v1558_v28 = vpop.permute.xlu2 %1557 }
 0x2f5   : > { %v5171_v43 = vunpack.i.l.bf16 %v3727_v32  ;;  %v3722_v39 = vpop.permute.xlu0 %3721  ;;  %v3729_v2 = vunpack.i.h.bf16 %v3727_v32 }
 0x2f6   : > { %v5176_v14 = vunpack.i.l.bf16 %v3722_v39  ;;  %v3724_v51 = vunpack.i.h.bf16 %v3722_v39 }
 0x2f7   : > { %v3785_v45 = vpack.i.bf16 %v5171_v43, %v5179_v41  ;;  %v5212_v7 = vsel %vm322_vm3, %v3729_v2, %v5171_v43  ;;  %vm1598_vm3 = vcmask 900096   ;;  %v1934_v2 = vld [vmem:[%s6641_s6 + $0xb8] sm:$0xff] }
 0x2f8   : > { %v3780_v50 = vpack.i.bf16 %v5176_v14, %v5184_v46  ;;  %v5197_v56 = vsel %vm335_vm2, %v3724_v51, %v5176_v14  ;;  %vm1622_vm2 = vcmask 801792   ;;  %v3805_v23 = vpack.i.bf16 %v5138_v12, %v5212_v7 }
 0x2f9   : > { %3786 = vrot.lane.b32.xlu2 %v3785_v45, %s3955_s22  ;;  %v3800_v9 = vpack.i.bf16 %v5197_v56, %v5202_v1  ;;  %v1623_v61 = vsel %vm1622_vm2, %v3749_v62, %v3748_v63  ;;  %v1599_v26 = vsel %vm1598_vm3, %v3764_v19, %v3763_v20  ;;  %v3229_v19 = vld [vmem:[%s6641_s6 + $0x168] sm:$0xff] }
 0x2fa   : > { %3781 = vrot.lane.b32.xlu1 %v3780_v50, %s3955_s22  ;;  %3791 = vrot.lane.b32.xlu0 %v3790_v44, %s3955_s22 }
 0x2fc   : > { %v3742_v4 = vpop.permute.xlu1 %3741 }
 0x2fd   : > { %v3737_v54 = vpop.permute.xlu0 %3736  ;;  %v3744_v21 = vunpack.i.h.bf16 %v3742_v4  ;;  %v3743_v57 = vunpack.i.l.bf16 %v3742_v4 }
 0x2fe   : > { %v3739_v58 = vunpack.i.h.bf16 %v3737_v54  ;;  %v3738_v59 = vunpack.i.l.bf16 %v3737_v54 }
 0x2ff   : > { %v1631_v3 = vsel %vm1630_vm14, %v3744_v21, %v3743_v57 }
 0x300   : > { %1789 = vmatpush.msrb.mxu2 %v3738_v59  ;;  %v1638_v0 = vsel %vm374_vm8, %v3739_v58, %v3738_v59  ;;  %vm1606_vm8 = vcmask 818176  }
 0x301   : > { %1743 = vmatpush.msrb.mxu0 %v1638_v0  ;;  %3796 = vrot.lane.b32.xlu2 %v3795_v60, %s3955_s22  ;;  %v1722_v0 = vld [vmem:[%s6639_s4 + $0x18] sm:$0xff] }
 0x302   : > { %1790 = vmatpush.msrb.mxu2 %v3743_v57  ;;  %1555 = vrot.lane.b32.xlu1 %v5138_v12, %s6660_s12  ;;  %s3120_s12 = scalar_lea.hbm %s6643_s8, %s4022_s9 }
 0x303   : > { %3801 = vrot.lane.b32.xlu0 %v3800_v9, %s3955_s22  ;;  %1744 = vmatpush.msrb.mxu0 %v1631_v3  ;;  %v3233_v9 = vld [vmem:[%s6641_s6 + $0x188] sm:$0xf]  ;;  %v3232_v3 = vld [vmem:[%s6641_s6 + $0x180] sm:$0xff]  ;;  %s3124_s17 = sshll.u32 %s3120_s12, 4  ;;  %s3125_s17 = int_to_ptr.hbm [resolvable:$true] %s3124_s17 }
 0x304   : > { %1791 = vmatpush.msrb.mxu2 %v3748_v63  ;;  %v3757_v5 = vpop.permute.xlu1 %3756  ;;  %s3873_s19 = sshra.s32 %s3125_s17, 4  ;;  %s3874_s19 = int_to_ptr.hbm [resolvable:$true] %s3873_s19 }
 0x305   : > { %v3752_v6 = vpop.permute.xlu0 %3751  ;;  %1745 = vmatpush.msrb.mxu0 %v1623_v61  ;;  %v3759_v10 = vunpack.i.h.bf16 %v3757_v5  ;;  %v3758_v11 = vunpack.i.l.bf16 %v3757_v5  ;;  %v1933_v5 = vld [vmem:[%s6641_s6 + $0xb0] sm:$0xff]  ;;  %v3231_v61 = vld [vmem:[%s6641_s6 + $0x178] sm:$0xff]  ;;  %s3875_s20 = scalar_lea.hbm %s3874_s19, 1  ;;  %p3880_p0 = scmp.lt.s32.totalorder %s3874_s19, %s6643_s8 }
 0x306   : > { %v3754_v16 = vunpack.i.h.bf16 %v3752_v6  ;;  %v3753_v17 = vunpack.i.l.bf16 %v3752_v6  ;;  %v1932_v6 = vld [vmem:[%s6641_s6 + $0xa8] sm:$0xff]  ;;  %p3876_p11 = scmp.ne.s32.totalorder %s3874_s19, %s3875_s20  ;;  %p3881_p1 = scmp.lt.s32.totalorder %s3879_s26, %s3875_s20 }
 0x307   : > { %v1607_v24 = vsel %vm1606_vm8, %v3759_v10, %v3758_v11  ;;  %v3224_v10 = vld [vmem:[%s6641_s6 + $0x140] sm:$0xff] }
 0x308   : > { %1792 = vmatpush.msrb.mxu2 %v3753_v17  ;;  %v1615_v22 = vsel %vm1614_vm5, %v3754_v16, %v3753_v17  ;;  %v1924_v16 = vld [vmem:[%s6641_s6 + $0x68] sm:$0xff]  ;;  %v1931_v17 = vld [vmem:[%s6641_s6 + $0xa0] sm:$0xff]  ;;  %p3877_p12 = pnand %p3876_p11, %p4039_p5  ;;  %p3882_p2 = por %p3881_p1, %p3880_p0 }
 0x309   : > { %1746 = vmatpush.msrb.mxu0 %v1615_v22  ;;  %1727 = vperm.xlu2 %3689, %v1723_v18   ;;  %v3223_v18 = vld [vmem:[%s6641_s6 + $0x138] sm:$0xff] }
 0x30a   : > { %1793 = vmatpush.msrb.mxu2 %v3758_v11  ;;  %3806 = vrot.lane.b32.xlu1 %v3805_v23, %s3955_s22  ;;  %v3230_v11 = vld [vmem:[%s6641_s6 + $0x170] sm:$0xff]  ;;  %v1930_v22 = vld [vmem:[%s6641_s6 + $0x98] sm:$0xff]  ;;  %s295_s22 = scalar_lea.vmem [#allocation3], %s294_s13  ;;  %p3878_p13 = pneg %p3877_p12 }
 0x30b   : > { %1747 = vmatpush.msrb.mxu0 %v1607_v24  ;;  %v3222_v23 = vld [vmem:[%s6641_s6 + $0x130] sm:$0xff]  ;;  %v3228_v24 = vld [vmem:[%s6641_s6 + $0x160] sm:$0xff]  ;;  %s3122_s24 = sshll.u32 %s295_s22, 4  ;;  %s3123_s24 = int_to_ptr.vmem [resolvable:$true] %s3122_s24 }
 0x30c   : > { %1794 = vmatpush.msrb.mxu2 %v3763_v20  ;;  %v1923_v20 = vld [vmem:[%s6641_s6 + $0x60] sm:$0xff]  ;;  %p3883_p3 = pnand %p3882_p2, %p3878_p13 }
 0x30d   : > { %1748 = vmatpush.msrb.mxu0 %v1599_v26  ;;  %v1929_v26 = vld [vmem:[%s6641_s6 + $0x90] sm:$0xff] }
 0x30e   : > { %1795 = vmatpush.msrb.mxu2 %v5154_v27 }
 0x30f   : > { %1749 = vmatpush.msrb.mxu0 %v5184_v46 }
 0x310   : > { %1796 = vmatpush.msrb.mxu2 %v5152_v25  ;;  %v5233_v25 = vld [vmem:[%s6639_s4] sm:$0xff] }
 0x311   : > { %1750 = vmatpush.msrb.mxu0 %v5179_v41 }
 0x312   : > { %1797 = vmatpush.msrb.mxu2 %v5162_v34 }
 0x313   : > { %1751 = vmatpush.msrb.mxu0 %v5174_v40 }
 0x314   : > { %1798 = vmatpush.msrb.mxu2 %v5164_v8 }
 0x315   : > { %1752 = vmatpush.msrb.mxu0 %v1567_v53 }
 0x316   : > { %1799 = vmatpush.msrb.mxu2 %v1558_v28 }
 0x318   : > { %1800 = vmatpush.msrb.mxu2 %v5160_v13 }
 0x31a   : > { %1801 = vmatpush.msrb.mxu2 %v5176_v14 }
 0x31c   : > { %1802 = vmatpush.msrb.mxu2 %v5171_v43 }
 0x31e   : > { %1803 = vmatpush.msrb.mxu2 %v5140_v15 }
 0x31f   : > { %1804 = vmatmul.f32.vlgmr.msrb.gmra.mxu2 %v5233_v25 }
 0x353   : > { %v3787_v8 = vpop.permute.xlu2 %3786 }
 0x354   : > { %v3789_v43 = vunpack.i.h.bf16 %v3787_v8  ;;  %v3788_v39 = vunpack.i.l.bf16 %v3787_v8  ;;  %v1921_v8 = vld [vmem:[%s6641_s6 + $0x50] sm:$0xff] }
 0x35b   : > { %v3797_v41 = vpop.permute.xlu2 %3796 }
 0x35c   : > { %v3767_v27 = vpop.permute.xlu0 %3766  ;;  %v3798_v49 = vunpack.i.l.bf16 %v3797_v41  ;;  %v3799_v51 = vunpack.i.h.bf16 %v3797_v41  ;;  %v1918_v41 = vld [vmem:[%s6641_s6 + $0x38] sm:$0xff] }
 0x35d   : > { %v3768_v29 = vunpack.i.l.bf16 %v3767_v27  ;;  %v3769_v30 = vunpack.i.h.bf16 %v3767_v27  ;;  %v3226_v27 = vld [vmem:[%s6641_s6 + $0x150] sm:$0xff] }
 0x35f   : > { %1818 = vmatpush.msrb.mxu3 %v3768_v29  ;;  %v1699_v46 = vsel %vm1691_vm15, %v3788_v39, %v3769_v30  ;;  %v3218_v39 = vld [vmem:[%s6641_s6 + $0x110] sm:$0xff] }
 0x361   : > { %1819 = vmatpush.msrb.mxu3 %v3769_v30  ;;  %v1922_v30 = vld [vmem:[%s6641_s6 + $0x58] sm:$0xff] }
 0x364   : > { %v3772_v31 = vpop.permute.xlu1 %3771  ;;  %v3777_v13 = vpop.permute.xlu0 %3776 }
 0x365   : > { %v3773_v34 = vunpack.i.l.bf16 %v3772_v31  ;;  %v3774_v35 = vunpack.i.h.bf16 %v3772_v31  ;;  %v3778_v36 = vunpack.i.l.bf16 %v3777_v13  ;;  %v3779_v37 = vunpack.i.h.bf16 %v3777_v13  ;;  %v3221_v31 = vld [vmem:[%s6641_s6 + $0x128] sm:$0xff] }
 0x366   : > { %v3251_v13 = vld [vmem:[%s6641_s6 + $0x208] sm:$0xff] }
 0x367   : > { %1820 = vmatpush.msrb.mxu3 %v3773_v34  ;;  %v1697_v4 = vsel %vm1691_vm15, %v3798_v49, %v3774_v35  ;;  %v1696_v54 = vsel %vm1691_vm15, %v3799_v51, %v3778_v36  ;;  %v1917_v49 = vld [vmem:[%s6641_s6 + $0x30] sm:$0xff] }
 0x368   : > { %v3274_v51 = vld [vmem:[%s6641_s6 + $0x2b0] sm:$0xff] }
 0x369   : > { %1821 = vmatpush.msrb.mxu3 %v3774_v35  ;;  %v3220_v35 = vld [vmem:[%s6641_s6 + $0x120] sm:$0xff] }
 0x36b   : > { %1822 = vmatpush.msrb.mxu3 %v3778_v36  ;;  %v3250_v36 = vld [vmem:[%s6641_s6 + $0x200] sm:$0xff] }
 0x36c   : > { %v3782_v38 = vpop.permute.xlu1 %3781  ;;  %v3792_v33 = vpop.permute.xlu0 %3791 }
 0x36d   : > { %v3784_v15 = vunpack.i.h.bf16 %v3782_v38  ;;  %v3783_v32 = vunpack.i.l.bf16 %v3782_v38  ;;  %1823 = vmatpush.msrb.mxu3 %v3779_v37  ;;  %v3793_v40 = vunpack.i.l.bf16 %v3792_v33  ;;  %v3794_v45 = vunpack.i.h.bf16 %v3792_v33  ;;  %v1920_v38 = vld [vmem:[%s6641_s6 + $0x48] sm:$0xff]  ;;  %v3219_v33 = vld [vmem:[%s6641_s6 + $0x118] sm:$0xff] }
 0x36f   : > { %1824 = vmatpush.msrb.mxu3 %v3784_v15  ;;  %v1700_v14 = vsel %vm1691_vm15, %v3783_v32, %v3768_v29  ;;  %v1698_v50 = vsel %vm1691_vm15, %v3793_v40, %v3773_v34  ;;  %v1927_v29 = vld [vmem:[%s6641_s6 + $0x80] sm:$0xff]  ;;  %v3225_v34 = vld [vmem:[%s6641_s6 + $0x148] sm:$0xff]  ;;  %v3248_v40 = vld [vmem:[%s6641_s6 + $0x1f0] sm:$0xff] }
 0x370   : > { %1772 = vmatpush.msrb.mxu1 %v1700_v14  ;;  %v3277_v32 = vld [vmem:[%s6641_s6 + $0x2c8] sm:$0xff]  ;;  %v3276_v14 = vld [vmem:[%s6641_s6 + $0x2c0] sm:$0xff] }
 0x371   : > { %1825 = vmatpush.msrb.mxu3 %v3789_v43 }
 0x372   : > { %1773 = vmatpush.msrb.mxu1 %v1699_v46  ;;  %v3247_v46 = vld [vmem:[%s6641_s6 + $0x1e8] sm:$0xff] }
 0x373   : > { %1826 = vmatpush.msrb.mxu3 %v3794_v45 }
 0x374   : > { %v1556_v44 = vpop.permute.xlu1 %1555  ;;  %1774 = vmatpush.msrb.mxu1 %v1698_v50  ;;  %3201 = vmatmul.msk.f32.vlgmr.msrb.gmra.mxu3 %vm1735_vm1, %v1720_v47  ;;  %v3216_v50 = vld [vmem:[%s6641_s6 + $0x100] sm:$0xff] }
 0x375   : > { %v3802_v52 = vpop.permute.xlu0 %3801  ;;  %v1559_v42 = vsel %vm361_vm4, %v1556_v44, %v1558_v28  ;;  %vm1940_vm4 = vcmask 1043456   ;;  %v3227_v28 = vld [vmem:[%s6641_s6 + $0x158] sm:$0xff]  ;;  %v3246_v44 = vld [vmem:[%s6641_s6 + $0x1e0] sm:$0xff] }
 0x376   : > { %v3803_v53 = vunpack.i.l.bf16 %v3802_v52  ;;  %1753 = vmatpush.msrb.mxu0 %v1559_v42  ;;  %1775 = vmatpush.msrb.mxu1 %v1697_v4  ;;  %v3804_v55 = vunpack.i.h.bf16 %v3802_v52  ;;  %v1916_v52 = vld [vmem:[%s6641_s6 + $0x28] sm:$0xff]  ;;  %v3215_v42 = vld [vmem:[%s6641_s6 + $0xf8] sm:$0xff] }
 0x377   : > { %3234 = vmatpush.msk.msra.mxu2 %vm1940_vm4, %v3233_v9  ;;  %v3245_v4 = vld [vmem:[%s6641_s6 + $0x1d8] sm:$0xff] }
 0x378   : > { %1754 = vmatpush.msrb.mxu0 %v5202_v1  ;;  %1776 = vmatpush.msrb.mxu1 %v1696_v54  ;;  %v1695_v21 = vsel %vm1691_vm15, %v3803_v53, %v3779_v37  ;;  %v1694_v57 = vsel %vm1691_vm15, %v3804_v55, %v3784_v15  ;;  %v1935_v1 = vld [vmem:[%s6641_s6 + $0xc0] sm:$0xf]  ;;  %v3278_v37 = vld [vmem:[%s6641_s6 + $0x2d0] sm:$0xff]  ;;  %v3249_v15 = vld [vmem:[%s6641_s6 + $0x1f8] sm:$0xff] }
 0x379   : > { %3207 = vmatpush.msk.msra.mxu3 %vm1940_vm4, %v1935_v1  ;;  %2048 = vmatpush.msra.mxu2 %v3232_v3  ;;  %v3273_v53 = vld [vmem:[%s6641_s6 + $0x2a8] sm:$0xff]  ;;  %v1915_v55 = vld [vmem:[%s6641_s6 + $0x20] sm:$0xff]  ;;  %v3214_v54 = vld [vmem:[%s6641_s6 + $0xf0] sm:$0xff] }
 0x37a   : > { %1755 = vmatpush.msrb.mxu0 %v5197_v56  ;;  %1777 = vmatpush.msrb.mxu1 %v1695_v21  ;;  %v1721_v56 = vld [vmem:[%s6639_s4 + $0x10] sm:$0xff]  ;;  %v1912_v1 = vld [vmem:[%s6641_s6 + $0x8] sm:$0xff]  ;;  %v3241_v9 = vld [vmem:[%s6641_s6 + $0x1b8] sm:$0xff] }
 0x37b   : > { %1807 = vmatmul.f32.gmra.mxu2 %v1721_v56  ;;  %1972 = vmatpush.msra.mxu3 %v1934_v2  ;;  %v3244_v21 = vld [vmem:[%s6641_s6 + $0x1d0] sm:$0xff]  ;;  %v3211_v2 = vld [vmem:[%s6641_s6 + $0xd8] sm:$0xff]  ;;  %v3269_v3 = vld [vmem:[%s6641_s6 + $0x288] sm:$0xff] }
 0x37c   : > { %v3807_v58 = vpop.permute.xlu1 %3806  ;;  %1756 = vmatpush.msrb.mxu0 %v5212_v7  ;;  %1778 = vmatpush.msrb.mxu1 %v1694_v57  ;;  %v1925_v7 = vld [vmem:[%s6641_s6 + $0x70] sm:$0xff]  ;;  %v3272_v57 = vld [vmem:[%s6641_s6 + $0x2a0] sm:$0xff] }
 0x37d   : > { %v3809_v59 = vunpack.i.h.bf16 %v3807_v58  ;;  %v3808_v60 = vunpack.i.l.bf16 %v3807_v58  ;;  %3202 = vmatmul.msk.f32.gmra.mxu3 %vm1735_vm1, %v1722_v0  ;;  %2049 = vmatpush.msra.mxu2 %v3231_v61  ;;  %v1914_v58 = vld [vmem:[%s6641_s6 + $0x18] sm:$0xff]  ;;  %v3210_v61 = vld [vmem:[%s6641_s6 + $0xd0] sm:$0xff] }
 0x37e   : > { %1757 = vmatpush.msrb.mxu0 %v5138_v12  ;;  %v1724_v12 = vld [vmem:[%s6640_s5 + $0x8] sm:$0xff]  ;;  %1973 = vmatpush.msra.mxu3 %v1933_v5  ;;  %v1911_v5 = vld [vmem:[%s6641_s6] sm:$0xff] }
 0x37f   : > { %1758 = vmatmul.f32.vlgmr.msrb.gmra.mxu0 %v5233_v25  ;;  %v1693_v62 = vsel %vm1691_vm15, %v3808_v60, %v3789_v43  ;;  %v1692_v63 = vsel %vm1691_vm15, %v3809_v59, %v3794_v45  ;;  %1732 = vperm.xlu0 %3810, %v1724_v12   ;;  %v1928_v25 = vld [vmem:[%s6641_s6 + $0x88] sm:$0xff]  ;;  %v1919_v43 = vld [vmem:[%s6641_s6 + $0x40] sm:$0xff]  ;;  %v3270_v12 = vld [vmem:[%s6641_s6 + $0x290] sm:$0xff] }
 0x380   : > { %1779 = vmatpush.msrb.mxu1 %v1693_v62  ;;  %2020 = vmatpush.msra.mxu0 %v3224_v10  ;;  %v3217_v45 = vld [vmem:[%s6641_s6 + $0x108] sm:$0xff]  ;;  %v3271_v62 = vld [vmem:[%s6641_s6 + $0x298] sm:$0xff] }
 0x381   : > { %1974 = vmatpush.msra.mxu3 %v1932_v6  ;;  %2050 = vmatpush.msra.mxu2 %v3230_v11  ;;  %v3213_v59 = vld [vmem:[%s6641_s6 + $0xe8] sm:$0xff]  ;;  %v3268_v6 = vld [vmem:[%s6641_s6 + $0x280] sm:$0xff] }
 0x382   : > { %1780 = vmatpush.msrb.mxu1 %v1692_v63  ;;  %2021 = vmatpush.msra.mxu0 %v3223_v18  ;;  %v3243_v60 = vld [vmem:[%s6641_s6 + $0x1c8] sm:$0xff]  ;;  %v1913_v63 = vld [vmem:[%s6641_s6 + $0x10] sm:$0xff]  ;;  %v3287_v18 = vld [vmem:[%s6641_s6 + $0x318] sm:$0xf] }
 0x383   : > { %3199 = vmatmul.msk.f32.vlgmr.msrb.gmra.mxu1 %vm1735_vm1, %v1720_v47  ;;  %1975 = vmatpush.msra.mxu3 %v1931_v17  ;;  %v3275_v47 = vld [vmem:[%s6641_s6 + $0x2b8] sm:$0xff]  ;;  %v3209_v10 = vld [vmem:[%s6641_s6 + $0xc8] sm:$0xff] }
 0x384   : > { %1944 = vmatpush.msra.mxu1 %v1926_v48  ;;  %2051 = vmatpush.msra.mxu2 %v3229_v19  ;;  %v3240_v48 = vld [vmem:[%s6641_s6 + $0x1b0] sm:$0xff]  ;;  %v3239_v11 = vld [vmem:[%s6641_s6 + $0x1a8] sm:$0xff]  ;;  %v3238_v19 = vld [vmem:[%s6641_s6 + $0x1a0] sm:$0xff] }
 0x385   : > { %1976 = vmatpush.msra.mxu3 %v1930_v22  ;;  %2022 = vmatpush.msra.mxu0 %v3222_v23  ;;  %v3259_v17 = vld [vmem:[%s6641_s6 + $0x248] sm:$0xff]  ;;  %v3258_v23 = vld [vmem:[%s6641_s6 + $0x240] sm:$0xff] }
 0x386   : > { %1945 = vmatpush.msra.mxu1 %v1925_v7  ;;  %2052 = vmatpush.msra.mxu2 %v3228_v24  ;;  %v3260_v7 = vld [vmem:[%s6641_s6 + $0x250] sm:$0xf] }
 0x387   : > { %1761 = vmatmul.f32.gmra.mxu0 %v1721_v56  ;;  %1977 = vmatpush.msra.mxu3 %v1929_v26  ;;  %v3212_v56 = vld [vmem:[%s6641_s6 + $0xe0] sm:$0xff]  ;;  %v3286_v24 = vld [vmem:[%s6641_s6 + $0x310] sm:$0xff]  ;;  %v3237_v26 = vld [vmem:[%s6641_s6 + $0x198] sm:$0xff] }
 0x388   : > { %1946 = vmatpush.msra.mxu1 %v1924_v16  ;;  %2053 = vmatpush.msra.mxu2 %v3227_v28  ;;  %v3267_v16 = vld [vmem:[%s6641_s6 + $0x278] sm:$0xff]  ;;  %v3265_v28 = vld [vmem:[%s6641_s6 + $0x268] sm:$0xff] }
 0x389   : > { %1978 = vmatpush.msra.mxu3 %v1928_v25  ;;  %2023 = vmatpush.msra.mxu0 %v3221_v31  ;;  %v1728_v25 = vpop.permute.xlu2 %1727  ;;  %v3236_v31 = vld [vmem:[%s6641_s6 + $0x190] sm:$0xff] }
 0x38a   : > { %1947 = vmatpush.msra.mxu1 %v1923_v20  ;;  %2054 = vmatpush.msra.mxu2 %v3226_v27  ;;  %v3266_v20 = vld [vmem:[%s6641_s6 + $0x270] sm:$0xff]  ;;  %v3257_v27 = vld [vmem:[%s6641_s6 + $0x238] sm:$0xff] }
 0x38b   : > { %3200 = vmatmul.msk.f32.gmra.mxu1 %vm1735_vm1, %v1722_v0  ;;  %1979 = vmatpush.msra.mxu3 %v1927_v29  ;;  %v3242_v0 = vld [vmem:[%s6641_s6 + $0x1c0] sm:$0xff]  ;;  %v3285_v29 = vld [vmem:[%s6641_s6 + $0x308] sm:$0xff] }
 0x38c   : > { %1948 = vmatpush.msra.mxu1 %v1922_v30  ;;  %2055 = vmatpush.msra.mxu2 %v3225_v34 }
 0x38d   : > { %2095 = vmatpush.msrb.mxu3 %v3251_v13  ;;  %2024 = vmatpush.msra.mxu0 %v3220_v35  ;;  %v3264_v13 = vld [vmem:[%s6641_s6 + $0x260] sm:$0xff] }
 0x38e   : > { %1949 = vmatpush.msra.mxu1 %v1921_v8  ;;  %2170 = vmatpush.msrb.mxu2 %v3278_v37  ;;  %v3256_v8 = vld [vmem:[%s6641_s6 + $0x230] sm:$0xff]  ;;  %v3284_v35 = vld [vmem:[%s6641_s6 + $0x300] sm:$0xff]  ;;  %v3263_v37 = vld [vmem:[%s6641_s6 + $0x258] sm:$0xff] }
 0x38f   : > { %2096 = vmatpush.msrb.mxu3 %v3250_v36  ;;  %2025 = vmatpush.msra.mxu0 %v3219_v33  ;;  %v3283_v33 = vld [vmem:[%s6641_s6 + $0x2f8] sm:$0xff] }
 0x390   : > { %1950 = vmatpush.msra.mxu1 %v1920_v38  ;;  %2171 = vmatpush.msrb.mxu2 %v3277_v32  ;;  %v3255_v38 = vld [vmem:[%s6641_s6 + $0x228] sm:$0xff]  ;;  %v3254_v32 = vld [vmem:[%s6641_s6 + $0x220] sm:$0xff] }
 0x391   : > { %2097 = vmatpush.msrb.mxu3 %v3249_v15  ;;  %2026 = vmatpush.msra.mxu0 %v3218_v39 }
 0x392   : > { %1951 = vmatpush.msra.mxu1 %v1919_v43  ;;  %2172 = vmatpush.msrb.mxu2 %v3276_v14  ;;  %v3282_v43 = vld [vmem:[%s6641_s6 + $0x2f0] sm:$0xff]  ;;  %v3281_v14 = vld [vmem:[%s6641_s6 + $0x2e8] sm:$0xff] }
 0x393   : > { %2098 = vmatpush.msrb.mxu3 %v3248_v40  ;;  %2027 = vmatpush.msra.mxu0 %v3217_v45  ;;  %v3253_v40 = vld [vmem:[%s6641_s6 + $0x218] sm:$0xff]  ;;  %v3280_v45 = vld [vmem:[%s6641_s6 + $0x2e0] sm:$0xff] }
 0x394   : > { %1952 = vmatpush.msra.mxu1 %v1918_v41  ;;  %2173 = vmatpush.msrb.mxu2 %v3275_v47  ;;  %v3252_v41 = vld [vmem:[%s6641_s6 + $0x210] sm:$0xff] }
 0x395   : > { %2099 = vmatpush.msrb.mxu3 %v3247_v46  ;;  %2028 = vmatpush.msra.mxu0 %v3216_v50  ;;  %v3279_v50 = vld [vmem:[%s6641_s6 + $0x2d8] sm:$0xff] }
 0x396   : > { %1953 = vmatpush.msra.mxu1 %v1917_v49  ;;  %2174 = vmatpush.msrb.mxu2 %v3274_v51 }
 0x397   : > { %2100 = vmatpush.msrb.mxu3 %v3246_v44  ;;  %2029 = vmatpush.msra.mxu0 %v3215_v42 }
 0x398   : > { %1954 = vmatpush.msra.mxu1 %v1916_v52  ;;  %2175 = vmatpush.msrb.mxu2 %v3273_v53 }
 0x399   : > { %2101 = vmatpush.msrb.mxu3 %v3245_v4  ;;  %2030 = vmatpush.msra.mxu0 %v3214_v54 }
 0x39a   : > { %1955 = vmatpush.msra.mxu1 %v1915_v55  ;;  %2176 = vmatpush.msrb.mxu2 %v3272_v57 }
 0x39b   : > { %2102 = vmatpush.msrb.mxu3 %v3244_v21  ;;  %2031 = vmatpush.msra.mxu0 %v3213_v59 }
 0x39c   : > { %1956 = vmatpush.msra.mxu1 %v1914_v58  ;;  %2177 = vmatpush.msrb.mxu2 %v3271_v62 }
 0x39d   : > { %2103 = vmatpush.msrb.mxu3 %v3243_v60  ;;  %2032 = vmatpush.msra.mxu0 %v3212_v56 }
 0x39e   : > { %1957 = vmatpush.msra.mxu1 %v1913_v63  ;;  %2178 = vmatpush.msrb.mxu2 %v3270_v12  ;;  %v3314_v63 = vld [vmem:[%s6641_s6 + $0x3e0] sm:$0xf] }
 0x39f   : > { %2104 = vmatpush.msrb.mxu3 %v3242_v0  ;;  %2033 = vmatpush.msra.mxu0 %v3211_v2  ;;  %v3313_v2 = vld [vmem:[%s6641_s6 + $0x3d8] sm:$0xff] }
 0x3a0   : > { %1958 = vmatpush.msra.mxu1 %v1912_v1  ;;  %2179 = vmatpush.msrb.mxu2 %v3269_v3 }
 0x3a1   : > { %2105 = vmatpush.msrb.mxu3 %v3241_v9  ;;  %2034 = vmatpush.msra.mxu0 %v3210_v61  ;;  %v3341_v9 = vld [vmem:[%s6641_s6 + $0x4a8] sm:$0xf]  ;;  %v3340_v61 = vld [vmem:[%s6641_s6 + $0x4a0] sm:$0xff] }
 0x3a2   : > { %1959 = vmatpush.msra.mxu1 %v1911_v5  ;;  %2180 = vmatpush.msrb.mxu2 %v3268_v6  ;;  %v1805_v22 = vpop.f32.mrf.mxu2  ;;  %v3312_v5 = vld [vmem:[%s6641_s6 + $0x3d0] sm:$0xff] }
 0x3a3   : > { %2106 = vmatpush.msrb.mxu3 %v3240_v48  ;;  %2035 = vmatpush.msra.mxu0 %v3209_v10  ;;  %v1806_v30 = vadd.f32 %v1805_v22, %v1728_v25  ;;  %v3311_v10 = vld [vmem:[%s6641_s6 + $0x3c8] sm:$0xff]  ;;  %v3305_v22 = vld [vmem:[%s6641_s6 + $0x398] sm:$0xff] }
 0x3a4   : > { %3261 = vmatpush.msk.msrb.mxu1 %vm1940_vm4, %v3260_v7  ;;  %2181 = vmatpush.msrb.mxu2 %v3267_v16 }
 0x3a5   : > { %2107 = vmatpush.msrb.mxu3 %v3239_v11  ;;  %3288 = vmatpush.msk.msrb.mxu0 %vm1940_vm4, %v3287_v18  ;;  %v3339_v11 = vld [vmem:[%s6641_s6 + $0x498] sm:$0xff]  ;;  %v3338_v18 = vld [vmem:[%s6641_s6 + $0x490] sm:$0xff] }
 0x3a6   : > { %2123 = vmatpush.msrb.mxu1 %v3259_v17  ;;  %2182 = vmatpush.msrb.mxu2 %v3266_v20  ;;  %v3310_v17 = vld [vmem:[%s6641_s6 + $0x3c0] sm:$0xff] }
 0x3a7   : > { %2108 = vmatpush.msrb.mxu3 %v3238_v19  ;;  %2198 = vmatpush.msrb.mxu0 %v3286_v24 }
 0x3a8   : > { %2124 = vmatpush.msrb.mxu1 %v3258_v23  ;;  %2183 = vmatpush.msrb.mxu2 %v3265_v28  ;;  %v3309_v23 = vld [vmem:[%s6641_s6 + $0x3b8] sm:$0xff] }
 0x3a9   : > { %2109 = vmatpush.msrb.mxu3 %v3237_v26  ;;  %2199 = vmatpush.msrb.mxu0 %v3285_v29  ;;  %v3337_v26 = vld [vmem:[%s6641_s6 + $0x488] sm:$0xff]  ;;  %v3304_v29 = vld [vmem:[%s6641_s6 + $0x390] sm:$0xff] }
 0x3aa   : > { %2125 = vmatpush.msrb.mxu1 %v3257_v27  ;;  %2184 = vmatpush.msrb.mxu2 %v3264_v13  ;;  %v3336_v13 = vld [vmem:[%s6641_s6 + $0x480] sm:$0xff] }
 0x3ab   : > { %2110 = vmatpush.msrb.mxu3 %v3236_v31  ;;  %2200 = vmatpush.msrb.mxu0 %v3284_v35  ;;  %v3308_v31 = vld [vmem:[%s6641_s6 + $0x3b0] sm:$0xff]  ;;  %v3307_v35 = vld [vmem:[%s6641_s6 + $0x3a8] sm:$0xff] }
 0x3ac   : > { %2126 = vmatpush.msrb.mxu1 %v3256_v8  ;;  %2185 = vmatpush.msrb.mxu2 %v3263_v37  ;;  %v3331_v8 = vld [vmem:[%s6641_s6 + $0x458] sm:$0xff]  ;;  %v3302_v37 = vld [vmem:[%s6641_s6 + $0x380] sm:$0xff] }
 0x3ad   : > { %2201 = vmatpush.msrb.mxu0 %v3283_v33  ;;  %v3306_v33 = vld [vmem:[%s6641_s6 + $0x3a0] sm:$0xff] }
 0x3ae   : > { %2127 = vmatpush.msrb.mxu1 %v3255_v38  ;;  %v3330_v38 = vld [vmem:[%s6641_s6 + $0x450] sm:$0xff] }
 0x3af   : > { %2202 = vmatpush.msrb.mxu0 %v3282_v43 }
 0x3b0   : > { %2128 = vmatpush.msrb.mxu1 %v3254_v32  ;;  %v3329_v32 = vld [vmem:[%s6641_s6 + $0x448] sm:$0xff] }
 0x3b1   : > { %2203 = vmatpush.msrb.mxu0 %v3281_v14  ;;  %v3333_v14 = vld [vmem:[%s6641_s6 + $0x468] sm:$0xff] }
 0x3b2   : > { %2129 = vmatpush.msrb.mxu1 %v3253_v40  ;;  %v3359_v40 = vld [vmem:[%s6641_s6 + $0x528] sm:$0xff] }
 0x3b3   : > { %2204 = vmatpush.msrb.mxu0 %v3280_v45  ;;  %v3300_v45 = vld [vmem:[%s6641_s6 + $0x370] sm:$0xff] }
 0x3b4   : > { %2130 = vmatpush.msrb.mxu1 %v3252_v41 }
 0x3b5   : > { %2205 = vmatpush.msrb.mxu0 %v3279_v50  ;;  %v3358_v50 = vld [vmem:[%s6641_s6 + $0x520] sm:$0xff] }
 0x3f7   : > { %v1828_v34 = vpop.f32.mrf.mxu3 }
 0x3f8   : > { %v1829_v36 = vadd.f32 %v1828_v34, %v1806_v30  ;;  %v3332_v30 = vld [vmem:[%s6641_s6 + $0x460] sm:$0xff]  ;;  %v3303_v34 = vld [vmem:[%s6641_s6 + $0x388] sm:$0xff] }
 0x3fa   : > { %v3204_v15 = vmul.f32 -1.442695, %v1829_v36  ;;  %v3335_v36 = vld [vmem:[%s6641_s6 + $0x478] sm:$0xff] }
 0x3fc   : > { %3843 = vpow2.f32 %v3204_v15  ;;  %v1759_v39 = vpop.f32.mrf.mxu0  ;;  %v3334_v15 = vld [vmem:[%s6641_s6 + $0x470] sm:$0xff] }
 0x3fd   : > { %v1760_v46 = vadd.f32 %v1759_v39, %v1728_v25  ;;  %v3301_v39 = vld [vmem:[%s6641_s6 + $0x378] sm:$0xff] }
 0x400   : > { %v1782_v47 = vpop.f32.mrf.mxu1 }
 0x401   : > { %v1783_v49 = vadd.f32 %v1782_v47, %v1760_v46  ;;  %v3328_v47 = vld [vmem:[%s6641_s6 + $0x440] sm:$0xff] }
 0x402   : > { %v3844_v44 = vpop.eup %3843 }
 0x403   : > { %v1847_v51 = vadd.f32 1.0, %v3844_v44  ;;  %v3203_v52 = vmul.f32 -1.442695, %v1783_v49  ;;  %v3386_v44 = vld [vmem:[%s6641_s6 + $0x5f0] sm:$0xff] }
 0x405   : > { %3845 = vrcp.f32 %v1847_v51  ;;  %v1876_v21 = vand.u32 2147483648, %v1847_v51  ;;  %v1874_v58 = vand.u32 2147483647, %v1847_v51  ;;  %vm1870_vm7 = vweird.f32 %v1847_v51 }
 0x406   : > { %3847 = vpow2.f32 %v3203_v52  ;;  %v3327_v52 = vld [vmem:[%s6641_s6 + $0x438] sm:$0xff] }
 0x407   : > { %v1877_v60 = vor.u32 1.1754944e-38, %v1876_v21  ;;  %vm1875_vm10 = vcmp.eq.f32.partialorder %v1874_v58, 8.507059e+37  ;;  %v3384_v21 = vld [vmem:[%s6641_s6 + $0x5e0] sm:$0xff]  ;;  %v3325_v58 = vld [vmem:[%s6641_s6 + $0x428] sm:$0xff] }
 0x40b   : > { %v3846_v42 = vpop.eup %3845 }
 0x40c   : > { %v3848_v4 = vpop.eup %3847  ;;  %v1866_v53 = vmul.f32 %v3846_v42, %v1847_v51  ;;  %vm1871_vm6 = vweird.f32 %v3846_v42  ;;  %v3299_v51 = vld [vmem:[%s6641_s6 + $0x368] sm:$0xff] }
 0x40d   : > { %v1846_v55 = vadd.f32 1.0, %v3848_v4  ;;  %vm1872_vm9 = vmor %vm1870_vm7, %vm1871_vm6  ;;  %v3385_v4 = vld [vmem:[%s6641_s6 + $0x5e8] sm:$0xff] }
 0x40e   : > { %v1867_v54 = vsub.f32 1.0, %v1866_v53  ;;  %v3298_v53 = vld [vmem:[%s6641_s6 + $0x360] sm:$0xff] }
 0x40f   : > { %3849 = vrcp.f32 %v1846_v55  ;;  %v1861_v48 = vand.u32 2147483648, %v1846_v55  ;;  %v1859_v7 = vand.u32 2147483647, %v1846_v55  ;;  %vm1855_vm12 = vweird.f32 %v1846_v55 }
 0x410   : > { %v1868_v57 = vmul.f32 %v3846_v42, %v1867_v54  ;;  %v3356_v54 = vld [vmem:[%s6641_s6 + $0x510] sm:$0xff] }
 0x411   : > { %v1862_v19 = vor.u32 1.1754944e-38, %v1861_v48  ;;  %vm1860_vm14 = vcmp.eq.f32.partialorder %v1859_v7, 8.507059e+37  ;;  %v1808_v48 = vpop.f32.mrf.mxu2  ;;  %v3352_v7 = vld [vmem:[%s6641_s6 + $0x4f0] sm:$0xff] }
 0x412   : > { %v1869_v59 = vadd.f32 %v3846_v42, %v1868_v57  ;;  %v3297_v57 = vld [vmem:[%s6641_s6 + $0x358] sm:$0xff] }
 0x414   : > { %v1873_v62 = vsel %vm1872_vm9, %v3846_v42, %v1869_v59  ;;  %v3357_v42 = vld [vmem:[%s6641_s6 + $0x518] sm:$0xff]  ;;  %v3355_v59 = vld [vmem:[%s6641_s6 + $0x508] sm:$0xff] }
 0x415   : > { %v3850_v56 = vpop.eup %3849  ;;  %v5575_v0 = vsel %vm1875_vm10, %v1877_v60, %v1873_v62  ;;  %v3383_v60 = vld [vmem:[%s6641_s6 + $0x5d8] sm:$0xff]  ;;  %v3296_v62 = vld [vmem:[%s6641_s6 + $0x350] sm:$0xff] }
 0x416   : > { %v1851_v12 = vmul.f32 %v3850_v56, %v1846_v55  ;;  %3208 = vmatmul.msk.f32.vlgmr.msra.gmra.mxu3 %vm1936_vm0, %v5575_v0  ;;  %v2013_v1 = vrot.slane %v5575_v0, 1  ;;  %vm1856_vm11 = vweird.f32 %v3850_v56  ;;  %v2088_v43 = vrot.slane %v5575_v0, 2  ;;  %v3326_v55 = vld [vmem:[%s6641_s6 + $0x430] sm:$0xff] }
 0x417   : > { %3315 = vmatpush.msk.msra.mxu3 %vm1940_vm4, %v3314_v63  ;;  %vm1857_vm13 = vmor %vm1855_vm12, %vm1856_vm11  ;;  %v2163_v41 = vrot.slane %v5575_v0, 3  ;;  %v2238_v46 = vrot.slane %v5575_v0, 4  ;;  %v2313_v49 = vrot.slane %v5575_v0, 5  ;;  %v3324_v63 = vld [vmem:[%s6641_s6 + $0x420] sm:$0xff] }
 0x418   : > { %v1852_v3 = vsub.f32 1.0, %v1851_v12  ;;  %3235 = vmatmul.msk.f32.vlgmr.msra.gmra.mxu2 %vm1936_vm0, %v2013_v1  ;;  %v3382_v12 = vld [vmem:[%s6641_s6 + $0x5d0] sm:$0xff]  ;;  %v3295_v1 = vld [vmem:[%s6641_s6 + $0x348] sm:$0xff] }
 0x419   : > { %2273 = vmatpush.msra.mxu3 %v3313_v2  ;;  %3342 = vmatpush.msk.msra.mxu2 %vm1940_vm4, %v3341_v9  ;;  %v3323_v2 = vld [vmem:[%s6641_s6 + $0x418] sm:$0xff] }
 0x41a   : > { %v1853_v6 = vmul.f32 %v3850_v56, %v1852_v3  ;;  %v3353_v9 = vld [vmem:[%s6641_s6 + $0x4f8] sm:$0xff]  ;;  %v3381_v3 = vld [vmem:[%s6641_s6 + $0x5c8] sm:$0xff] }
 0x41b   : > { %2274 = vmatpush.msra.mxu3 %v3312_v5  ;;  %2348 = vmatpush.msra.mxu2 %v3340_v61  ;;  %v3294_v5 = vld [vmem:[%s6641_s6 + $0x340] sm:$0xff]  ;;  %v3322_v61 = vld [vmem:[%s6641_s6 + $0x410] sm:$0xff] }
 0x41c   : > { %v1854_v16 = vadd.f32 %v3850_v56, %v1853_v6  ;;  %v1733_v6 = vpop.permute.xlu0 %1732 }
 0x41d   : > { %2275 = vmatpush.msra.mxu3 %v3311_v10  ;;  %2349 = vmatpush.msra.mxu2 %v3339_v11  ;;  %v3380_v10 = vld [vmem:[%s6641_s6 + $0x5c0] sm:$0xff]  ;;  %v3293_v11 = vld [vmem:[%s6641_s6 + $0x338] sm:$0xff] }
 0x41e   : > { %v1858_v20 = vsel %vm1857_vm13, %v3850_v56, %v1854_v16  ;;  %v3354_v56 = vld [vmem:[%s6641_s6 + $0x500] sm:$0xff]  ;;  %v3321_v16 = vld [vmem:[%s6641_s6 + $0x408] sm:$0xff] }
 0x41f   : > { %2276 = vmatpush.msra.mxu3 %v3310_v17  ;;  %2350 = vmatpush.msra.mxu2 %v3338_v18  ;;  %v5613_v24 = vsel %vm1860_vm14, %v1862_v19, %v1858_v20  ;;  %v3351_v17 = vld [vmem:[%s6641_s6 + $0x4e8] sm:$0xff]  ;;  %v3379_v18 = vld [vmem:[%s6641_s6 + $0x5b8] sm:$0xff]  ;;  %v1809_v19 = vadd.f32 %v1808_v48, %v1733_v6  ;;  %v3292_v20 = vld [vmem:[%s6641_s6 + $0x330] sm:$0xff] }
 0x420   : > { %1960 = vmatmul.f32.vlgmr.msra.gmra.mxu1 %v5613_v24  ;;  %v2012_v28 = vrot.slane %v5613_v24, 1  ;;  %v2087_v25 = vrot.slane %v5613_v24, 2  ;;  %v2162_v27 = vrot.slane %v5613_v24, 3  ;;  %v3361_v48 = vld [vmem:[%s6641_s6 + $0x538] sm:$0xff] }
 0x421   : > { %2245 = vmatpush.msra.mxu1 %v3305_v22  ;;  %2277 = vmatpush.msra.mxu3 %v3309_v23  ;;  %v3320_v22 = vld [vmem:[%s6641_s6 + $0x400] sm:$0xff]  ;;  %v1831_v23 = vpop.f32.mrf.mxu3 }
 0x422   : > { %2351 = vmatpush.msra.mxu2 %v3337_v26  ;;  %2036 = vmatmul.f32.vlgmr.msra.gmra.mxu0 %v2012_v28  ;;  %v3350_v26 = vld [vmem:[%s6641_s6 + $0x4e0] sm:$0xff]  ;;  %v3378_v28 = vld [vmem:[%s6641_s6 + $0x5b0] sm:$0xff] }
 0x423   : > { %2111 = vmatmul.f32.vlgmr.msrb.gmra.mxu3 %v2087_v25  ;;  %2186 = vmatmul.f32.vlgmr.msrb.gmra.mxu2 %v2162_v27  ;;  %v3291_v25 = vld [vmem:[%s6641_s6 + $0x328] sm:$0xff]  ;;  %v3319_v27 = vld [vmem:[%s6641_s6 + $0x3f8] sm:$0xff] }
 0x424   : > { %2246 = vmatpush.msra.mxu1 %v3304_v29  ;;  %2320 = vmatpush.msra.mxu0 %v3332_v30  ;;  %v3349_v29 = vld [vmem:[%s6641_s6 + $0x4d8] sm:$0xff]  ;;  %v3377_v30 = vld [vmem:[%s6641_s6 + $0x5a8] sm:$0xff] }
 0x425   : > { %2278 = vmatpush.msra.mxu3 %v3308_v31  ;;  %2352 = vmatpush.msra.mxu2 %v3336_v13  ;;  %v1832_v31 = vadd.f32 %v1831_v23, %v1809_v19  ;;  %v3290_v13 = vld [vmem:[%s6641_s6 + $0x320] sm:$0xff]  ;;  %v3446_v19 = vld [vmem:[%s6641_s6 + $0x7b0] sm:$0xff]  ;;  %v3413_v23 = vld [vmem:[%s6641_s6 + $0x6b8] sm:$0xff] }
 0x426   : > { %2247 = vmatpush.msra.mxu1 %v3303_v34  ;;  %2321 = vmatpush.msra.mxu0 %v3331_v8  ;;  %v3318_v34 = vld [vmem:[%s6641_s6 + $0x3f0] sm:$0xff]  ;;  %v1762_v8 = vpop.f32.mrf.mxu0 }
 0x427   : > { %2279 = vmatpush.msra.mxu3 %v3307_v35  ;;  %2353 = vmatpush.msra.mxu2 %v3335_v36  ;;  %v3348_v35 = vld [vmem:[%s6641_s6 + $0x4d0] sm:$0xff]  ;;  %v3376_v36 = vld [vmem:[%s6641_s6 + $0x5a0] sm:$0xff] }
 0x428   : > { %2248 = vmatpush.msra.mxu1 %v3302_v37  ;;  %2322 = vmatpush.msra.mxu0 %v3330_v38  ;;  %v3317_v37 = vld [vmem:[%s6641_s6 + $0x3e8] sm:$0xff]  ;;  %v2237_v38 = vrot.slane %v5613_v24, 4 }
 0x429   : > { %2280 = vmatpush.msra.mxu3 %v3306_v33  ;;  %2354 = vmatpush.msra.mxu2 %v3334_v15  ;;  %v3368_v33 = vld [vmem:[%s6641_s6 + $0x570] sm:$0xf]  ;;  %v3347_v15 = vld [vmem:[%s6641_s6 + $0x4c8] sm:$0xff] }
 0x42a   : > { %3262 = vmatmul.msk.f32.vlgmr.msrb.gmra.mxu1 %vm1936_vm0, %v2088_v43  ;;  %2323 = vmatpush.msra.mxu0 %v3329_v32  ;;  %v3206_v32 = vmul.f32 -1.442695, %v1832_v31  ;;  %v1763_v43 = vadd.f32 %v1762_v8, %v1733_v6  ;;  %v3389_v6 = vld [vmem:[%s6641_s6 + $0x608] sm:$0xff]  ;;  %v3439_v8 = vld [vmem:[%s6641_s6 + $0x778] sm:$0xff] }
 0x42b   : > { %2249 = vmatpush.msra.mxu1 %v3301_v39  ;;  %2395 = vmatpush.msrb.mxu3 %v3359_v40  ;;  %v3375_v39 = vld [vmem:[%s6641_s6 + $0x598] sm:$0xff]  ;;  %v1785_v40 = vpop.f32.mrf.mxu1 }
 0x42c   : > { %2355 = vmatpush.msra.mxu2 %v3333_v14  ;;  %3289 = vmatmul.msk.f32.vlgmr.msrb.gmra.mxu0 %vm1936_vm0, %v2163_v41  ;;  %v2312_v14 = vrot.slane %v5613_v24, 5  ;;  %v3367_v41 = vld [vmem:[%s6641_s6 + $0x568] sm:$0xff]  ;;  %3851 = vpow2.f32 %v3206_v32  ;;  %v3442_v32 = vld [vmem:[%s6641_s6 + $0x790] sm:$0xff] }
 0x42d   : > { %2250 = vmatpush.msra.mxu1 %v3300_v45  ;;  %3316 = vmatmul.msk.f32.vlgmr.msra.gmra.mxu3 %vm1936_vm0, %v2238_v46  ;;  %v3395_v45 = vld [vmem:[%s6641_s6 + $0x638] sm:$0xf]  ;;  %v3346_v46 = vld [vmem:[%s6641_s6 + $0x4c0] sm:$0xff] }
 0x42e   : > { %2324 = vmatpush.msra.mxu0 %v3328_v47  ;;  %3343 = vmatmul.msk.f32.vlgmr.msra.gmra.mxu2 %vm1936_vm0, %v2313_v49  ;;  %v3374_v47 = vld [vmem:[%s6641_s6 + $0x590] sm:$0xff]  ;;  %v3366_v49 = vld [vmem:[%s6641_s6 + $0x560] sm:$0xff] }
 0x42f   : > { %2396 = vmatpush.msrb.mxu3 %v3358_v50  ;;  %2470 = vmatpush.msrb.mxu2 %v3386_v44  ;;  %v3394_v50 = vld [vmem:[%s6641_s6 + $0x630] sm:$0xff]  ;;  %v1786_v44 = vadd.f32 %v1785_v40, %v1763_v43  ;;  %v3409_v43 = vld [vmem:[%s6641_s6 + $0x698] sm:$0xff]  ;;  %v3467_v40 = vld [vmem:[%s6641_s6 + $0x848] sm:$0xff] }
 0x430   : > { %2251 = vmatpush.msra.mxu1 %v3299_v51  ;;  %2325 = vmatpush.msra.mxu0 %v3327_v52  ;;  %v3345_v51 = vld [vmem:[%s6641_s6 + $0x4b8] sm:$0xff]  ;;  %v3373_v52 = vld [vmem:[%s6641_s6 + $0x588] sm:$0xff] }
 0x431   : > { %2397 = vmatpush.msrb.mxu3 %v3357_v42  ;;  %2471 = vmatpush.msrb.mxu2 %v3385_v4  ;;  %v3365_v42 = vld [vmem:[%s6641_s6 + $0x558] sm:$0xff]  ;;  %v3393_v4 = vld [vmem:[%s6641_s6 + $0x628] sm:$0xff] }
 0x432   : > { %2252 = vmatpush.msra.mxu1 %v3298_v53  ;;  %2326 = vmatpush.msra.mxu0 %v3326_v55  ;;  %v3344_v53 = vld [vmem:[%s6641_s6 + $0x4b0] sm:$0xff]  ;;  %v3372_v55 = vld [vmem:[%s6641_s6 + $0x580] sm:$0xff] }
 0x433   : > { %2398 = vmatpush.msrb.mxu3 %v3356_v54  ;;  %2472 = vmatpush.msrb.mxu2 %v3384_v21  ;;  %v3364_v54 = vld [vmem:[%s6641_s6 + $0x550] sm:$0xff]  ;;  %v3205_v21 = vmul.f32 -1.442695, %v1786_v44  ;;  %v3407_v44 = vld [vmem:[%s6641_s6 + $0x688] sm:$0xff] }
 0x434   : > { %2253 = vmatpush.msra.mxu1 %v3297_v57  ;;  %2327 = vmatpush.msra.mxu0 %v3325_v58  ;;  %v2387_v57 = vrot.slane %v5613_v24, 6  ;;  %v3392_v58 = vld [vmem:[%s6641_s6 + $0x620] sm:$0xff] }
 0x435   : > { %2399 = vmatpush.msrb.mxu3 %v3355_v59  ;;  %2473 = vmatpush.msrb.mxu2 %v3383_v60  ;;  %v3422_v59 = vld [vmem:[%s6641_s6 + $0x700] sm:$0xf]  ;;  %v3852_v60 = vpop.eup %3851  ;;  %3853 = vpow2.f32 %v3205_v21  ;;  %v3464_v21 = vld [vmem:[%s6641_s6 + $0x830] sm:$0xff] }
 0x436   : > { %2254 = vmatpush.msra.mxu1 %v3296_v62  ;;  %2328 = vmatpush.msra.mxu0 %v3324_v63  ;;  %v3371_v62 = vld [vmem:[%s6641_s6 + $0x578] sm:$0xff]  ;;  %v3363_v63 = vld [vmem:[%s6641_s6 + $0x548] sm:$0xff] }
 0x437   : > { %2400 = vmatpush.msrb.mxu3 %v3354_v56  ;;  %2474 = vmatpush.msrb.mxu2 %v3382_v12  ;;  %v3391_v56 = vld [vmem:[%s6641_s6 + $0x618] sm:$0xff]  ;;  %v2462_v12 = vrot.slane %v5613_v24, 7  ;;  %v3390_v24 = vld [vmem:[%s6641_s6 + $0x610] sm:$0xff] }
 0x438   : > { %2255 = vmatpush.msra.mxu1 %v3295_v1  ;;  %2329 = vmatpush.msra.mxu0 %v3323_v2  ;;  %v3421_v1 = vld [vmem:[%s6641_s6 + $0x6f8] sm:$0xff]  ;;  %v3449_v2 = vld [vmem:[%s6641_s6 + $0x7c8] sm:$0xf] }
 0x439   : > { %2401 = vmatpush.msrb.mxu3 %v3353_v9  ;;  %2475 = vmatpush.msrb.mxu2 %v3381_v3  ;;  %v5889_v9 = vadd.f32 1.0, %v3852_v60  ;;  %v3362_v3 = vld [vmem:[%s6641_s6 + $0x540] sm:$0xff] }
 0x43a   : > { %2256 = vmatpush.msra.mxu1 %v3294_v5  ;;  %2330 = vmatpush.msra.mxu0 %v3322_v61  ;;  %v3420_v5 = vld [vmem:[%s6641_s6 + $0x6f0] sm:$0xff]  ;;  %v3448_v61 = vld [vmem:[%s6641_s6 + $0x7c0] sm:$0xff] }
 0x43b   : > { %2402 = vmatpush.msrb.mxu3 %v3352_v7  ;;  %2476 = vmatpush.msrb.mxu2 %v3380_v10  ;;  %v3419_v7 = vld [vmem:[%s6641_s6 + $0x6e8] sm:$0xff]  ;;  %v3447_v10 = vld [vmem:[%s6641_s6 + $0x7b8] sm:$0xff]  ;;  %3855 = vrcp.f32 %v5889_v9  ;;  %vm1900_vm2 = vweird.f32 %v5889_v9  ;;  %v1906_v60 = vand.u32 2147483648, %v5889_v9 }
 0x43c   : > { %2257 = vmatpush.msra.mxu1 %v3293_v11  ;;  %2331 = vmatpush.msra.mxu0 %v3321_v16  ;;  %v3360_v11 = vld [vmem:[%s6641_s6 + $0x530] sm:$0xff]  ;;  %v3388_v16 = vld [vmem:[%s6641_s6 + $0x600] sm:$0xff] }
 0x43d   : > { %2403 = vmatpush.msrb.mxu3 %v3351_v17  ;;  %2477 = vmatpush.msrb.mxu2 %v3379_v18  ;;  %v3854_v17 = vpop.eup %3853  ;;  %v3418_v18 = vld [vmem:[%s6641_s6 + $0x6e0] sm:$0xff] }
 0x43e   : > { %2258 = vmatpush.msra.mxu1 %v3292_v20  ;;  %2332 = vmatpush.msra.mxu0 %v3320_v22  ;;  %v3387_v20 = vld [vmem:[%s6641_s6 + $0x5f8] sm:$0xff]  ;;  %v2388_v22 = vrot.slane %v5575_v0, 6 }
 0x43f   : > { %2404 = vmatpush.msrb.mxu3 %v3350_v26  ;;  %2478 = vmatpush.msrb.mxu2 %v3378_v28  ;;  %v3417_v26 = vld [vmem:[%s6641_s6 + $0x6d8] sm:$0xff]  ;;  %v5939_v28 = vadd.f32 1.0, %v3854_v17  ;;  %v3402_v17 = vld [vmem:[%s6641_s6 + $0x660] sm:$0xff] }
 0x440   : > { %2259 = vmatpush.msra.mxu1 %v3291_v25  ;;  %2333 = vmatpush.msra.mxu0 %v3319_v27  ;;  %v3445_v25 = vld [vmem:[%s6641_s6 + $0x7a8] sm:$0xff]  ;;  %v2463_v27 = vrot.slane %v5575_v0, 7  ;;  %v3444_v0 = vld [vmem:[%s6641_s6 + $0x7a0] sm:$0xff] }
 0x441   : > { %2405 = vmatpush.msrb.mxu3 %v3349_v29  ;;  %2479 = vmatpush.msrb.mxu2 %v3377_v30  ;;  %v3412_v29 = vld [vmem:[%s6641_s6 + $0x6b0] sm:$0xff]  ;;  %v3440_v30 = vld [vmem:[%s6641_s6 + $0x780] sm:$0xff]  ;;  %v5952_v31 = vpop.eup %3855  ;;  %3857 = vrcp.f32 %v5939_v28  ;;  %vm1885_vm15 = vweird.f32 %v5939_v28 }
 0x442   : > { %2260 = vmatpush.msra.mxu1 %v3290_v13  ;;  %2334 = vmatpush.msra.mxu0 %v3318_v34  ;;  %v3416_v13 = vld [vmem:[%s6641_s6 + $0x6d0] sm:$0xff]  ;;  %v3411_v34 = vld [vmem:[%s6641_s6 + $0x6a8] sm:$0xff]  ;;  %vm1901_vm5 = vweird.f32 %v5952_v31 }
 0x443   : > { %2406 = vmatpush.msrb.mxu3 %v3348_v35  ;;  %2480 = vmatpush.msrb.mxu2 %v3376_v36  ;;  %v3415_v35 = vld [vmem:[%s6641_s6 + $0x6c8] sm:$0xff]  ;;  %v3443_v36 = vld [vmem:[%s6641_s6 + $0x798] sm:$0xff]  ;;  %vm6068_vm8 = vmor %vm1900_vm2, %vm1901_vm5 }
 0x444   : > { %2261 = vmatmul.f32.vlgmr.msra.gmra.mxu1 %v2237_v38  ;;  %2335 = vmatpush.msra.mxu0 %v3317_v37  ;;  %v1896_v37 = vmul.f32 %v5952_v31, %v5889_v9  ;;  %v3410_v38 = vld [vmem:[%s6641_s6 + $0x6a0] sm:$0xff] }
 0x445   : > { %3369 = vmatpush.msk.msrb.mxu1 %vm1940_vm4, %v3368_v33  ;;  %2407 = vmatpush.msrb.mxu3 %v3347_v15  ;;  %v3438_v33 = vld [vmem:[%s6641_s6 + $0x770] sm:$0xff]  ;;  %v3414_v15 = vld [vmem:[%s6641_s6 + $0x6c0] sm:$0xff] }
 0x446   : > { %2481 = vmatpush.msrb.mxu2 %v3375_v39  ;;  %2336 = vmatmul.f32.vlgmr.msra.gmra.mxu0 %v2312_v14  ;;  %v3437_v39 = vld [vmem:[%s6641_s6 + $0x768] sm:$0xff] }
 0x447   : > { %2423 = vmatpush.msrb.mxu1 %v3367_v41  ;;  %3396 = vmatpush.msk.msrb.mxu0 %vm1940_vm4, %v3395_v45  ;;  %v3441_v14 = vld [vmem:[%s6641_s6 + $0x788] sm:$0xff]  ;;  %v1897_v41 = vsub.f32 1.0, %v1896_v37  ;;  %v3408_v45 = vld [vmem:[%s6641_s6 + $0x690] sm:$0xff] }
 0x448   : > { %2408 = vmatpush.msrb.mxu3 %v3346_v46  ;;  %2482 = vmatpush.msrb.mxu2 %v3374_v47  ;;  %v3436_v46 = vld [vmem:[%s6641_s6 + $0x760] sm:$0xff]  ;;  %v6006_v47 = vpop.eup %3857  ;;  %v3399_v37 = vld [vmem:[%s6641_s6 + $0x648] sm:$0xff] }
 0x449   : > { %2424 = vmatpush.msrb.mxu1 %v3366_v49  ;;  %2498 = vmatpush.msrb.mxu0 %v3394_v50  ;;  %v3466_v49 = vld [vmem:[%s6641_s6 + $0x840] sm:$0xff]  ;;  %v3494_v50 = vld [vmem:[%s6641_s6 + $0x910] sm:$0xff]  ;;  %vm1886_vm1 = vweird.f32 %v6006_v47 }
 0x44a   : > { %2409 = vmatpush.msrb.mxu3 %v3345_v51  ;;  %2483 = vmatpush.msrb.mxu2 %v3373_v52  ;;  %v3435_v51 = vld [vmem:[%s6641_s6 + $0x758] sm:$0xff]  ;;  %vm6138_vm6 = vmor %vm1885_vm15, %vm1886_vm1 }
 0x44b   : > { %2425 = vmatpush.msrb.mxu1 %v3365_v42  ;;  %2499 = vmatpush.msrb.mxu0 %v3393_v4  ;;  %v3465_v52 = vld [vmem:[%s6641_s6 + $0x838] sm:$0xff]  ;;  %v3493_v42 = vld [vmem:[%s6641_s6 + $0x908] sm:$0xff]  ;;  %v1898_v4 = vmul.f32 %v5952_v31, %v1897_v41  ;;  %v3456_v41 = vld [vmem:[%s6641_s6 + $0x7f0] sm:$0xff] }
 0x44c   : > { %2410 = vmatpush.msrb.mxu3 %v3344_v53  ;;  %2484 = vmatpush.msrb.mxu2 %v3372_v55  ;;  %v1881_v53 = vmul.f32 %v6006_v47, %v5939_v28  ;;  %v3406_v55 = vld [vmem:[%s6641_s6 + $0x680] sm:$0xff] }
 0x44d   : > { %2411 = vmatmul.f32.vlgmr.msrb.gmra.mxu3 %v2387_v57  ;;  %2426 = vmatpush.msrb.mxu1 %v3364_v54  ;;  %v3434_v54 = vld [vmem:[%s6641_s6 + $0x750] sm:$0xff]  ;;  %v3492_v57 = vld [vmem:[%s6641_s6 + $0x900] sm:$0xff] }
 0x44e   : > { %2500 = vmatpush.msrb.mxu0 %v3392_v58  ;;  %3423 = vmatpush.msk.msra.mxu3 %vm1940_vm4, %v3422_v59  ;;  %v3405_v58 = vld [vmem:[%s6641_s6 + $0x678] sm:$0xff]  ;;  %v3433_v59 = vld [vmem:[%s6641_s6 + $0x748] sm:$0xff] }
 0x44f   : > { %2485 = vmatpush.msrb.mxu2 %v3371_v62  ;;  %2427 = vmatpush.msrb.mxu1 %v3363_v63  ;;  %v3463_v62 = vld [vmem:[%s6641_s6 + $0x828] sm:$0xff]  ;;  %v3491_v63 = vld [vmem:[%s6641_s6 + $0x8f8] sm:$0xff] }
 0x450   : > { %2486 = vmatmul.f32.vlgmr.msrb.gmra.mxu2 %v2462_v12  ;;  %2501 = vmatpush.msrb.mxu0 %v3391_v56  ;;  %v1899_v56 = vadd.f32 %v5952_v31, %v1898_v4  ;;  %v1904_v12 = vand.u32 2147483647, %v5889_v9  ;;  %v3403_v9 = vld [vmem:[%s6641_s6 + $0x668] sm:$0xff]  ;;  %v3454_v4 = vld [vmem:[%s6641_s6 + $0x7e0] sm:$0xff] }
 0x451   : > { %2571 = vmatpush.msra.mxu3 %v3421_v1  ;;  %3450 = vmatpush.msk.msra.mxu2 %vm1940_vm4, %v3449_v2  ;;  %v1882_v1 = vsub.f32 1.0, %v1881_v53  ;;  %v3404_v2 = vld [vmem:[%s6641_s6 + $0x670] sm:$0xff] }
 0x452   : > { %2428 = vmatpush.msrb.mxu1 %v3362_v3  ;;  %2502 = vmatpush.msrb.mxu0 %v3390_v24  ;;  %v3432_v3 = vld [vmem:[%s6641_s6 + $0x740] sm:$0xff]  ;;  %vm6090_vm3 = vcmp.eq.f32.partialorder %v1904_v12, 8.507059e+37  ;;  %v3482_v53 = vld [vmem:[%s6641_s6 + $0x8b0] sm:$0xff]  ;;  %v3499_v24 = vld [vmem:[%s6641_s6 + $0x938] sm:$0xff] }
 0x453   : > { %2572 = vmatpush.msra.mxu3 %v3420_v5  ;;  %2647 = vmatpush.msra.mxu2 %v3448_v61  ;;  %v3462_v5 = vld [vmem:[%s6641_s6 + $0x820] sm:$0xff]  ;;  %v3490_v61 = vld [vmem:[%s6641_s6 + $0x8f0] sm:$0xff] }
 0x454   : > { %2429 = vmatpush.msrb.mxu1 %v3361_v48  ;;  %2503 = vmatpush.msrb.mxu0 %v3389_v6  ;;  %v3431_v48 = vld [vmem:[%s6641_s6 + $0x738] sm:$0xff]  ;;  %v1907_v6 = vor.u32 1.1754944e-38, %v1906_v60  ;;  %v3452_v60 = vld [vmem:[%s6641_s6 + $0x7d0] sm:$0xff]  ;;  %v3500_v12 = vld [vmem:[%s6641_s6 + $0x940] sm:$0xff] }
 0x455   : > { %2573 = vmatpush.msra.mxu3 %v3419_v7  ;;  %2648 = vmatpush.msra.mxu2 %v3447_v10  ;;  %v3461_v7 = vld [vmem:[%s6641_s6 + $0x818] sm:$0xff]  ;;  %v3489_v10 = vld [vmem:[%s6641_s6 + $0x8e8] sm:$0xff] }
 0x456   : > { %2430 = vmatpush.msrb.mxu1 %v3360_v11  ;;  %2504 = vmatpush.msrb.mxu0 %v3388_v16  ;;  %v1883_v16 = vmul.f32 %v6006_v47, %v1882_v1  ;;  %v3530_v1 = vld [vmem:[%s6641_s6 + $0xa20] sm:$0xf]  ;;  %v3469_v11 = vld [vmem:[%s6641_s6 + $0x858] sm:$0xff] }
 0x457   : > { %2574 = vmatpush.msra.mxu3 %v3418_v18  ;;  %2649 = vmatpush.msra.mxu2 %v3446_v19  ;;  %v3430_v18 = vld [vmem:[%s6641_s6 + $0x730] sm:$0xff]  ;;  %v1903_v19 = vsel %vm6068_vm8, %v5952_v31, %v1899_v56 }
 0x458   : > { %3370 = vmatmul.msk.f32.vlgmr.msrb.gmra.mxu1 %vm1936_vm0, %v2388_v22  ;;  %2505 = vmatpush.msrb.mxu0 %v3387_v20  ;;  %v3460_v20 = vld [vmem:[%s6641_s6 + $0x810] sm:$0xff]  ;;  %v3488_v22 = vld [vmem:[%s6641_s6 + $0x8e0] sm:$0xff]  ;;  %v1884_v31 = vadd.f32 %v6006_v47, %v1883_v16  ;;  %v3497_v16 = vld [vmem:[%s6641_s6 + $0x928] sm:$0xff] }
 0x459   : > { %2543 = vmatpush.msra.mxu1 %v3413_v23  ;;  %2575 = vmatpush.msra.mxu3 %v3417_v26  ;;  %v3401_v23 = vld [vmem:[%s6641_s6 + $0x658] sm:$0xff]  ;;  %v3429_v26 = vld [vmem:[%s6641_s6 + $0x728] sm:$0xff] }
 0x45a   : > { %2650 = vmatpush.msra.mxu2 %v3445_v25  ;;  %3397 = vmatmul.msk.f32.vlgmr.msrb.gmra.mxu0 %vm1936_vm0, %v2463_v27  ;;  %v1891_v25 = vand.u32 2147483648, %v5939_v28  ;;  %v3459_v27 = vld [vmem:[%s6641_s6 + $0x808] sm:$0xff] }
 0x45b   : > { %2544 = vmatpush.msra.mxu1 %v3412_v29  ;;  %2619 = vmatpush.msra.mxu0 %v3440_v30  ;;  %v3487_v29 = vld [vmem:[%s6641_s6 + $0x8d8] sm:$0xff]  ;;  %v6127_v30 = vsel %vm6090_vm3, %v1907_v6, %v1903_v19  ;;  %v3498_v6 = vld [vmem:[%s6641_s6 + $0x930] sm:$0xff] }
 0x45c   : > { %2576 = vmatpush.msra.mxu3 %v3416_v13  ;;  %2651 = vmatpush.msra.mxu2 %v3444_v0  ;;  %v1889_v13 = vand.u32 2147483647, %v5939_v28  ;;  %v3400_v0 = vld [vmem:[%s6641_s6 + $0x650] sm:$0xff] }
 0x45d   : > { %2545 = vmatpush.msra.mxu1 %v3411_v34  ;;  %2620 = vmatpush.msra.mxu0 %v3439_v8  ;;  %v3428_v8 = vld [vmem:[%s6641_s6 + $0x720] sm:$0xff]  ;;  %v3486_v28 = vld [vmem:[%s6641_s6 + $0x8d0] sm:$0xff] }
 0x45e   : > { %2577 = vmatpush.msra.mxu3 %v3415_v35  ;;  %2652 = vmatpush.msra.mxu2 %v3443_v36  ;;  %v3458_v35 = vld [vmem:[%s6641_s6 + $0x800] sm:$0xff]  ;;  %v2612_v36 = vrot.slane %v6127_v30, 1  ;;  %vm6160_vm7 = vcmp.eq.f32.partialorder %v1889_v13, 8.507059e+37  ;;  %v3468_v19 = vld [vmem:[%s6641_s6 + $0x850] sm:$0xff]  ;;  %v2762_v13 = vrot.slane %v6127_v30, 3 }
 0x45f   : > { %2546 = vmatpush.msra.mxu1 %v3410_v38  ;;  %2621 = vmatpush.msra.mxu0 %v3438_v33  ;;  %v1892_v38 = vor.u32 1.1754944e-38, %v1891_v25  ;;  %v3427_v33 = vld [vmem:[%s6641_s6 + $0x718] sm:$0xff]  ;;  %v2687_v25 = vrot.slane %v6127_v30, 2  ;;  %v3548_v34 = vld [vmem:[%s6641_s6 + $0xaa0] sm:$0xff] }
 0x460   : > { %2578 = vmatpush.msra.mxu3 %v3414_v15  ;;  %2653 = vmatpush.msra.mxu2 %v3442_v32  ;;  %v3457_v32 = vld [vmem:[%s6641_s6 + $0x7f8] sm:$0xff]  ;;  %v3546_v15 = vld [vmem:[%s6641_s6 + $0xa90] sm:$0xff] }
 0x461   : > { %2547 = vmatpush.msra.mxu1 %v3409_v43  ;;  %2622 = vmatpush.msra.mxu0 %v3437_v39  ;;  %v3485_v43 = vld [vmem:[%s6641_s6 + $0x8c8] sm:$0xff]  ;;  %v1888_v39 = vsel %vm6138_vm6, %v6006_v47, %v1884_v31 }
 0x462   : > { %2694 = vmatpush.msrb.mxu3 %v3467_v40  ;;  %2654 = vmatpush.msra.mxu2 %v3441_v14  ;;  %v3398_v40 = vld [vmem:[%s6641_s6 + $0x640] sm:$0xff]  ;;  %v3426_v14 = vld [vmem:[%s6641_s6 + $0x710] sm:$0xff]  ;;  %v3425_v47 = vld [vmem:[%s6641_s6 + $0x708] sm:$0xff] }
 0x463   : > { %2548 = vmatpush.msra.mxu1 %v3408_v45  ;;  %2623 = vmatpush.msra.mxu0 %v3436_v46  ;;  %v3484_v45 = vld [vmem:[%s6641_s6 + $0x8c0] sm:$0xff]  ;;  %v6188_v46 = vsel %vm6160_vm7, %v1892_v38, %v1888_v39  ;;  %v3553_v31 = vld [vmem:[%s6641_s6 + $0xac8] sm:$0xff]  ;;  %v3551_v38 = vld [vmem:[%s6641_s6 + $0xab8] sm:$0xff] }
 0x464   : > { %2695 = vmatpush.msrb.mxu3 %v3466_v49  ;;  %2769 = vmatpush.msrb.mxu2 %v3494_v50  ;;  %v3476_v49 = vld [vmem:[%s6641_s6 + $0x890] sm:$0xf]  ;;  %v3455_v50 = vld [vmem:[%s6641_s6 + $0x7e8] sm:$0xff]  ;;  %v2686_v56 = vrot.slane %v6188_v46, 2  ;;  %v3517_v39 = vld [vmem:[%s6641_s6 + $0x9b8] sm:$0xff] }
 0x465   : > { %2549 = vmatpush.msra.mxu1 %v3407_v44  ;;  %2624 = vmatpush.msra.mxu0 %v3435_v51  ;;  %v3483_v44 = vld [vmem:[%s6641_s6 + $0x8b8] sm:$0xff]  ;;  %v2611_v51 = vrot.slane %v6188_v46, 1 }
 0x466   : > { %2696 = vmatpush.msrb.mxu3 %v3465_v52  ;;  %2770 = vmatpush.msrb.mxu2 %v3493_v42  ;;  %v3475_v52 = vld [vmem:[%s6641_s6 + $0x888] sm:$0xff]  ;;  %v3503_v42 = vld [vmem:[%s6641_s6 + $0x958] sm:$0xf] }
 0x467   : > { %2550 = vmatpush.msra.mxu1 %v3406_v55  ;;  %2625 = vmatpush.msra.mxu0 %v3434_v54  ;;  %v3474_v55 = vld [vmem:[%s6641_s6 + $0x880] sm:$0xff]  ;;  %v3502_v54 = vld [vmem:[%s6641_s6 + $0x950] sm:$0xff] }
 0x468   : > { %2697 = vmatpush.msrb.mxu3 %v3464_v21  ;;  %2771 = vmatpush.msrb.mxu2 %v3492_v57  ;;  %v3453_v21 = vld [vmem:[%s6641_s6 + $0x7d8] sm:$0xff]  ;;  %v3481_v57 = vld [vmem:[%s6641_s6 + $0x8a8] sm:$0xff] }
 0x469   : > { %2551 = vmatpush.msra.mxu1 %v3405_v58  ;;  %2626 = vmatpush.msra.mxu0 %v3433_v59  ;;  %v3473_v58 = vld [vmem:[%s6641_s6 + $0x878] sm:$0xff]  ;;  %v3501_v59 = vld [vmem:[%s6641_s6 + $0x948] sm:$0xff] }
 0x46a   : > { %2698 = vmatpush.msrb.mxu3 %v3463_v62  ;;  %2772 = vmatpush.msrb.mxu2 %v3491_v63  ;;  %v3480_v62 = vld [vmem:[%s6641_s6 + $0x8a0] sm:$0xff]  ;;  %v3472_v63 = vld [vmem:[%s6641_s6 + $0x870] sm:$0xff] }
 0x46b   : > { %2552 = vmatpush.msra.mxu1 %v3404_v2  ;;  %2627 = vmatpush.msra.mxu0 %v3432_v3  ;;  %v3479_v2 = vld [vmem:[%s6641_s6 + $0x898] sm:$0xff]  ;;  %v3471_v3 = vld [vmem:[%s6641_s6 + $0x868] sm:$0xff] }
 0x46c   : > { %2699 = vmatpush.msrb.mxu3 %v3462_v5  ;;  %2773 = vmatpush.msrb.mxu2 %v3490_v61  ;;  %v2761_v5 = vrot.slane %v6188_v46, 3  ;;  %v3529_v61 = vld [vmem:[%s6641_s6 + $0xa18] sm:$0xff] }
 0x46d   : > { %2553 = vmatpush.msra.mxu1 %v3403_v9  ;;  %2628 = vmatpush.msra.mxu0 %v3431_v48  ;;  %v3557_v9 = vld [vmem:[%s6641_s6 + $0xae8] sm:$0xf]  ;;  %v3470_v48 = vld [vmem:[%s6641_s6 + $0x860] sm:$0xff] }
 0x46e   : > { %2700 = vmatpush.msrb.mxu3 %v3461_v7  ;;  %2774 = vmatpush.msrb.mxu2 %v3489_v10  ;;  %v3528_v7 = vld [vmem:[%s6641_s6 + $0xa10] sm:$0xff]  ;;  %v3556_v10 = vld [vmem:[%s6641_s6 + $0xae0] sm:$0xff] }
 0x46f   : > { %2554 = vmatpush.msra.mxu1 %v3402_v17  ;;  %2629 = vmatpush.msra.mxu0 %v3430_v18  ;;  %v3527_v17 = vld [vmem:[%s6641_s6 + $0xa08] sm:$0xff]  ;;  %v3555_v18 = vld [vmem:[%s6641_s6 + $0xad8] sm:$0xff] }
 0x470   : > { %2701 = vmatpush.msrb.mxu3 %v3460_v20  ;;  %2775 = vmatpush.msrb.mxu2 %v3488_v22  ;;  %v3496_v20 = vld [vmem:[%s6641_s6 + $0x920] sm:$0xff] }
 0x471   : > { %2555 = vmatpush.msra.mxu1 %v3401_v23  ;;  %2630 = vmatpush.msra.mxu0 %v3429_v26  ;;  %v3526_v22 = vld [vmem:[%s6641_s6 + $0xa00] sm:$0xff]  ;;  %v3554_v23 = vld [vmem:[%s6641_s6 + $0xad0] sm:$0xff]  ;;  %v3495_v26 = vld [vmem:[%s6641_s6 + $0x918] sm:$0xff] }
 0x472   : > { %2702 = vmatpush.msrb.mxu3 %v3459_v27  ;;  %2776 = vmatpush.msrb.mxu2 %v3487_v29  ;;  %v3521_v27 = vld [vmem:[%s6641_s6 + $0x9d8] sm:$0xff] }
 0x473   : > { %3424 = vmatmul.msk.f32.vlgmr.msra.gmra.mxu3 %vm1936_vm0, %v6127_v30  ;;  %2556 = vmatpush.msra.mxu1 %v3400_v0  ;;  %v3525_v29 = vld [vmem:[%s6641_s6 + $0x9f8] sm:$0xff]  ;;  %v3520_v0 = vld [vmem:[%s6641_s6 + $0x9d0] sm:$0xff] }
 0x474   : > { %2631 = vmatpush.msra.mxu0 %v3428_v8  ;;  %2703 = vmatpush.msrb.mxu3 %v3458_v35  ;;  %v3524_v8 = vld [vmem:[%s6641_s6 + $0x9f0] sm:$0xff]  ;;  %v3552_v35 = vld [vmem:[%s6641_s6 + $0xac0] sm:$0xff] }
 0x475   : > { %2777 = vmatpush.msrb.mxu2 %v3486_v28  ;;  %2557 = vmatpush.msra.mxu1 %v3399_v37  ;;  %v3519_v28 = vld [vmem:[%s6641_s6 + $0x9c8] sm:$0xff] }
 0x476   : > { %3451 = vmatmul.msk.f32.vlgmr.msra.gmra.mxu2 %vm1936_vm0, %v2612_v36  ;;  %2632 = vmatpush.msra.mxu0 %v3427_v33  ;;  %v3547_v36 = vld [vmem:[%s6641_s6 + $0xa98] sm:$0xff]  ;;  %v3523_v37 = vld [vmem:[%s6641_s6 + $0x9e8] sm:$0xff]  ;;  %v3518_v33 = vld [vmem:[%s6641_s6 + $0x9c0] sm:$0xff] }
 0x477   : > { %2704 = vmatpush.msrb.mxu3 %v3457_v32  ;;  %2778 = vmatpush.msrb.mxu2 %v3485_v43  ;;  %v3522_v32 = vld [vmem:[%s6641_s6 + $0x9e0] sm:$0xff]  ;;  %v3550_v43 = vld [vmem:[%s6641_s6 + $0xab0] sm:$0xff] }
 0x478   : > { %2558 = vmatpush.msra.mxu1 %v3398_v40  ;;  %2633 = vmatpush.msra.mxu0 %v3426_v14  ;;  %v2837_v40 = vrot.slane %v6127_v30, 4  ;;  %v3545_v14 = vld [vmem:[%s6641_s6 + $0xa88] sm:$0xff] }
 0x479   : > { %2705 = vmatpush.msrb.mxu3 %v3456_v41  ;;  %2779 = vmatpush.msrb.mxu2 %v3484_v45  ;;  %v3575_v41 = vld [vmem:[%s6641_s6 + $0xb68] sm:$0xff] }
 0x47a   : > { %2559 = vmatmul.f32.vlgmr.msra.gmra.mxu1 %v6188_v46  ;;  %2634 = vmatpush.msra.mxu0 %v3425_v47  ;;  %v3549_v45 = vld [vmem:[%s6641_s6 + $0xaa8] sm:$0xff]  ;;  %v3516_v47 = vld [vmem:[%s6641_s6 + $0x9b0] sm:$0xff] }
 0x47b   : > { %3477 = vmatpush.msk.msrb.mxu1 %vm1940_vm4, %v3476_v49  ;;  %2706 = vmatpush.msrb.mxu3 %v3455_v50  ;;  %v3544_v49 = vld [vmem:[%s6641_s6 + $0xa80] sm:$0xff]  ;;  %v2912_v50 = vrot.slane %v6127_v30, 5 }
 0x47c   : > { %2780 = vmatpush.msrb.mxu2 %v3483_v44  ;;  %2635 = vmatmul.f32.vlgmr.msra.gmra.mxu0 %v2611_v51  ;;  %v3574_v44 = vld [vmem:[%s6641_s6 + $0xb60] sm:$0xff]  ;;  %v3602_v51 = vld [vmem:[%s6641_s6 + $0xc30] sm:$0xff] }
 0x47d   : > { %2722 = vmatpush.msrb.mxu1 %v3475_v52  ;;  %3504 = vmatpush.msk.msrb.mxu0 %vm1940_vm4, %v3503_v42  ;;  %v3515_v52 = vld [vmem:[%s6641_s6 + $0x9a8] sm:$0xff]  ;;  %v3543_v42 = vld [vmem:[%s6641_s6 + $0xa78] sm:$0xff] }
 0x47e   : > { %2707 = vmatpush.msrb.mxu3 %v3454_v4  ;;  %2781 = vmatpush.msrb.mxu2 %v3482_v53  ;;  %v3573_v4 = vld [vmem:[%s6641_s6 + $0xb58] sm:$0xff]  ;;  %v3601_v53 = vld [vmem:[%s6641_s6 + $0xc28] sm:$0xff] }
 0x47f   : > { %2723 = vmatpush.msrb.mxu1 %v3474_v55  ;;  %2797 = vmatpush.msrb.mxu0 %v3502_v54  ;;  %v3514_v55 = vld [vmem:[%s6641_s6 + $0x9a0] sm:$0xff]  ;;  %v3542_v54 = vld [vmem:[%s6641_s6 + $0xa70] sm:$0xff] }
 0x480   : > { %2708 = vmatpush.msrb.mxu3 %v3453_v21  ;;  %2782 = vmatpush.msrb.mxu2 %v3481_v57  ;;  %v3572_v21 = vld [vmem:[%s6641_s6 + $0xb50] sm:$0xff]  ;;  %v3600_v57 = vld [vmem:[%s6641_s6 + $0xc20] sm:$0xff] }
 0x481   : > { %2724 = vmatpush.msrb.mxu1 %v3473_v58  ;;  %2798 = vmatpush.msrb.mxu0 %v3501_v59  ;;  %v3513_v58 = vld [vmem:[%s6641_s6 + $0x998] sm:$0xff]  ;;  %v3541_v59 = vld [vmem:[%s6641_s6 + $0xa68] sm:$0xff] }
 0x482   : > { %2709 = vmatpush.msrb.mxu3 %v3452_v60  ;;  %2783 = vmatpush.msrb.mxu2 %v3480_v62  ;;  %v3571_v60 = vld [vmem:[%s6641_s6 + $0xb48] sm:$0xff]  ;;  %v3599_v62 = vld [vmem:[%s6641_s6 + $0xc18] sm:$0xff] }
 0x483   : > { %2710 = vmatmul.f32.vlgmr.msrb.gmra.mxu3 %v2686_v56  ;;  %2725 = vmatpush.msrb.mxu1 %v3472_v63  ;;  %v3512_v63 = vld [vmem:[%s6641_s6 + $0x990] sm:$0xff]  ;;  %v3540_v56 = vld [vmem:[%s6641_s6 + $0xa60] sm:$0xff] }
 0x484   : > { %2799 = vmatpush.msrb.mxu0 %v3500_v12  ;;  %3531 = vmatpush.msk.msra.mxu3 %vm1940_vm4, %v3530_v1  ;;  %v3570_v12 = vld [vmem:[%s6641_s6 + $0xb40] sm:$0xff]  ;;  %v3598_v1 = vld [vmem:[%s6641_s6 + $0xc10] sm:$0xff] }
 0x485   : > { %2784 = vmatpush.msrb.mxu2 %v3479_v2  ;;  %2726 = vmatpush.msrb.mxu1 %v3471_v3  ;;  %v3511_v2 = vld [vmem:[%s6641_s6 + $0x988] sm:$0xff]  ;;  %v3539_v3 = vld [vmem:[%s6641_s6 + $0xa58] sm:$0xff] }
 0x486   : > { %2785 = vmatmul.f32.vlgmr.msrb.gmra.mxu2 %v2761_v5  ;;  %2800 = vmatpush.msrb.mxu0 %v3499_v24  ;;  %v3569_v24 = vld [vmem:[%s6641_s6 + $0xb38] sm:$0xff]  ;;  %v3597_v5 = vld [vmem:[%s6641_s6 + $0xc08] sm:$0xff] }
 0x487   : > { %2872 = vmatpush.msra.mxu3 %v3529_v61  ;;  %3558 = vmatpush.msk.msra.mxu2 %vm1940_vm4, %v3557_v9  ;;  %v3510_v61 = vld [vmem:[%s6641_s6 + $0x980] sm:$0xff]  ;;  %v3538_v9 = vld [vmem:[%s6641_s6 + $0xa50] sm:$0xff] }
 0x488   : > { %2727 = vmatpush.msrb.mxu1 %v3470_v48  ;;  %2801 = vmatpush.msrb.mxu0 %v3498_v6  ;;  %v3568_v48 = vld [vmem:[%s6641_s6 + $0xb30] sm:$0xff]  ;;  %v3596_v6 = vld [vmem:[%s6641_s6 + $0xc00] sm:$0xff] }
 0x489   : > { %2873 = vmatpush.msra.mxu3 %v3528_v7  ;;  %2947 = vmatpush.msra.mxu2 %v3556_v10  ;;  %v3509_v7 = vld [vmem:[%s6641_s6 + $0x978] sm:$0xff]  ;;  %v3537_v10 = vld [vmem:[%s6641_s6 + $0xa48] sm:$0xff] }
 0x48a   : > { %2728 = vmatpush.msrb.mxu1 %v3469_v11  ;;  %2802 = vmatpush.msrb.mxu0 %v3497_v16  ;;  %v3567_v11 = vld [vmem:[%s6641_s6 + $0xb28] sm:$0xff]  ;;  %v3595_v16 = vld [vmem:[%s6641_s6 + $0xbf8] sm:$0xff] }
 0x48b   : > { %2874 = vmatpush.msra.mxu3 %v3527_v17  ;;  %2948 = vmatpush.msra.mxu2 %v3555_v18  ;;  %v3508_v17 = vld [vmem:[%s6641_s6 + $0x970] sm:$0xff]  ;;  %v3536_v18 = vld [vmem:[%s6641_s6 + $0xa40] sm:$0xff] }
 0x48c   : > { %2729 = vmatpush.msrb.mxu1 %v3468_v19  ;;  %2803 = vmatpush.msrb.mxu0 %v3496_v20  ;;  %v3566_v19 = vld [vmem:[%s6641_s6 + $0xb20] sm:$0xff]  ;;  %v3594_v20 = vld [vmem:[%s6641_s6 + $0xbf0] sm:$0xff] }
 0x48d   : > { %2875 = vmatpush.msra.mxu3 %v3526_v22  ;;  %2949 = vmatpush.msra.mxu2 %v3554_v23  ;;  %v3507_v22 = vld [vmem:[%s6641_s6 + $0x968] sm:$0xff]  ;;  %v3535_v23 = vld [vmem:[%s6641_s6 + $0xa38] sm:$0xff] }
 0x48e   : > { %3478 = vmatmul.msk.f32.vlgmr.msrb.gmra.mxu1 %vm1936_vm0, %v2687_v25  ;;  %2804 = vmatpush.msrb.mxu0 %v3495_v26  ;;  %v3565_v26 = vld [vmem:[%s6641_s6 + $0xb18] sm:$0xff]  ;;  %v3593_v25 = vld [vmem:[%s6641_s6 + $0xbe8] sm:$0xff] }
 0x48f   : > { %2844 = vmatpush.msra.mxu1 %v3521_v27  ;;  %2876 = vmatpush.msra.mxu3 %v3525_v29  ;;  %v3506_v27 = vld [vmem:[%s6641_s6 + $0x960] sm:$0xff]  ;;  %v3534_v29 = vld [vmem:[%s6641_s6 + $0xa30] sm:$0xff] }
 0x490   : > { %2950 = vmatpush.msra.mxu2 %v3553_v31  ;;  %3505 = vmatmul.msk.f32.vlgmr.msrb.gmra.mxu0 %vm1936_vm0, %v2762_v13  ;;  %v3564_v31 = vld [vmem:[%s6641_s6 + $0xb10] sm:$0xff]  ;;  %v3592_v13 = vld [vmem:[%s6641_s6 + $0xbe0] sm:$0xff] }
 0x491   : > { %2845 = vmatpush.msra.mxu1 %v3520_v0  ;;  %2919 = vmatpush.msra.mxu0 %v3548_v34  ;;  %v3533_v0 = vld [vmem:[%s6641_s6 + $0xa28] sm:$0xff]  ;;  %v2836_v34 = vrot.slane %v6188_v46, 4 }
 0x492   : > { %2877 = vmatpush.msra.mxu3 %v3524_v8  ;;  %2951 = vmatpush.msra.mxu2 %v3552_v35  ;;  %v3584_v8 = vld [vmem:[%s6641_s6 + $0xbb0] sm:$0xf]  ;;  %v3563_v35 = vld [vmem:[%s6641_s6 + $0xb08] sm:$0xff] }
 0x493   : > { %2846 = vmatpush.msra.mxu1 %v3519_v28  ;;  %2920 = vmatpush.msra.mxu0 %v3547_v36  ;;  %v3591_v28 = vld [vmem:[%s6641_s6 + $0xbd8] sm:$0xff]  ;;  %v2911_v36 = vrot.slane %v6188_v46, 5 }
 0x494   : > { %2878 = vmatpush.msra.mxu3 %v3523_v37  ;;  %2952 = vmatpush.msra.mxu2 %v3551_v38  ;;  %v3583_v37 = vld [vmem:[%s6641_s6 + $0xba8] sm:$0xff]  ;;  %v3611_v38 = vld [vmem:[%s6641_s6 + $0xc78] sm:$0xf] }
 0x495   : > { %2847 = vmatpush.msra.mxu1 %v3518_v33  ;;  %2921 = vmatpush.msra.mxu0 %v3546_v15  ;;  %v3562_v33 = vld [vmem:[%s6641_s6 + $0xb00] sm:$0xff]  ;;  %v3590_v15 = vld [vmem:[%s6641_s6 + $0xbd0] sm:$0xff] }
 0x496   : > { %2879 = vmatpush.msra.mxu3 %v3522_v32  ;;  %2953 = vmatpush.msra.mxu2 %v3550_v43  ;;  %v3582_v32 = vld [vmem:[%s6641_s6 + $0xba0] sm:$0xff]  ;;  %v3610_v43 = vld [vmem:[%s6641_s6 + $0xc70] sm:$0xff] }
 0x497   : > { %2848 = vmatpush.msra.mxu1 %v3517_v39  ;;  %3532 = vmatmul.msk.f32.vlgmr.msra.gmra.mxu3 %vm1936_vm0, %v2837_v40  ;;  %v3561_v39 = vld [vmem:[%s6641_s6 + $0xaf8] sm:$0xff]  ;;  %v3589_v40 = vld [vmem:[%s6641_s6 + $0xbc8] sm:$0xff] }
 0x498   : > { %2922 = vmatpush.msra.mxu0 %v3545_v14  ;;  %2994 = vmatpush.msrb.mxu3 %v3575_v41  ;;  %v3581_v14 = vld [vmem:[%s6641_s6 + $0xb98] sm:$0xff]  ;;  %v3609_v41 = vld [vmem:[%s6641_s6 + $0xc68] sm:$0xff] }
 0x499   : > { %2954 = vmatpush.msra.mxu2 %v3549_v45  ;;  %2849 = vmatpush.msra.mxu1 %v3516_v47  ;;  %v3560_v45 = vld [vmem:[%s6641_s6 + $0xaf0] sm:$0xff]  ;;  %v3588_v47 = vld [vmem:[%s6641_s6 + $0xbc0] sm:$0xff] }
 0x49a   : > { %2923 = vmatpush.msra.mxu0 %v3544_v49  ;;  %3559 = vmatmul.msk.f32.vlgmr.msra.gmra.mxu2 %vm1936_vm0, %v2912_v50  ;;  %v3580_v49 = vld [vmem:[%s6641_s6 + $0xb90] sm:$0xff]  ;;  %v2986_v50 = vrot.slane %v6188_v46, 6 }
 0x49b   : > { %2995 = vmatpush.msrb.mxu3 %v3574_v44  ;;  %3069 = vmatpush.msrb.mxu2 %v3602_v51  ;;  %v3608_v44 = vld [vmem:[%s6641_s6 + $0xc60] sm:$0xff]  ;;  %v3587_v51 = vld [vmem:[%s6641_s6 + $0xbb8] sm:$0xff] }
 0x49c   : > { %2850 = vmatpush.msra.mxu1 %v3515_v52  ;;  %2924 = vmatpush.msra.mxu0 %v3543_v42  ;;  %v3579_v52 = vld [vmem:[%s6641_s6 + $0xb88] sm:$0xff]  ;;  %v3061_v42 = vrot.slane %v6188_v46, 7  ;;  %v3577_v46 = vld [vmem:[%s6641_s6 + $0xb78] sm:$0xff] }
 0x49d   : > { %2996 = vmatpush.msrb.mxu3 %v3573_v4  ;;  %3070 = vmatpush.msrb.mxu2 %v3601_v53  ;;  %v3607_v4 = vld [vmem:[%s6641_s6 + $0xc58] sm:$0xff]  ;;  %v3578_v53 = vld [vmem:[%s6641_s6 + $0xb80] sm:$0xff] }
 0x49e   : > { %2851 = vmatpush.msra.mxu1 %v3514_v55  ;;  %2925 = vmatpush.msra.mxu0 %v3542_v54  ;;  %v3606_v55 = vld [vmem:[%s6641_s6 + $0xc50] sm:$0xff]  ;;  %v3605_v54 = vld [vmem:[%s6641_s6 + $0xc48] sm:$0xff] }
 0x49f   : > { %2997 = vmatpush.msrb.mxu3 %v3572_v21  ;;  %3071 = vmatpush.msrb.mxu2 %v3600_v57  ;;  %v3576_v21 = vld [vmem:[%s6641_s6 + $0xb70] sm:$0xff]  ;;  %v3604_v57 = vld [vmem:[%s6641_s6 + $0xc40] sm:$0xff] }
 0x4a0   : > { %2852 = vmatpush.msra.mxu1 %v3513_v58  ;;  %2926 = vmatpush.msra.mxu0 %v3541_v59  ;;  %v2987_v58 = vrot.slane %v6127_v30, 6  ;;  %v3603_v59 = vld [vmem:[%s6641_s6 + $0xc38] sm:$0xff] }
 0x4a1   : > { %2998 = vmatpush.msrb.mxu3 %v3571_v60  ;;  %3072 = vmatpush.msrb.mxu2 %v3599_v62  ;;  %v3062_v60 = vrot.slane %v6127_v30, 7  ;;  %v1961_v62 = vpop.f32.mrf.mxu1 }
 0x4a2   : > { %2853 = vmatpush.msra.mxu1 %v3512_v63  ;;  %2927 = vmatpush.msra.mxu0 %v3540_v56  ;;  %v1981_v63 = vpop.f32.mrf.mxu3  ;;  %v2057_v56 = vpop.f32.mrf.mxu2 }
 0x4a3   : > { %2999 = vmatpush.msrb.mxu3 %v3570_v12  ;;  %3073 = vmatpush.msrb.mxu2 %v3598_v1  ;;  %v2037_v12 = vpop.f32.mrf.mxu0 }
 0x4a4   : > { %2854 = vmatpush.msra.mxu1 %v3511_v2  ;;  %2928 = vmatpush.msra.mxu0 %v3539_v3  ;;  %v2058_v30 = vadd.f32 %v2057_v56, %v2037_v12 }
 0x4a5   : > { %3000 = vmatpush.msrb.mxu3 %v3569_v24  ;;  %3074 = vmatpush.msrb.mxu2 %v3597_v5  ;;  %v1982_v5 = vadd.f32 %v1981_v63, %v1961_v62 }
 0x4a6   : > { %2855 = vmatpush.msra.mxu1 %v3510_v61  ;;  %2929 = vmatpush.msra.mxu0 %v3538_v9  ;;  %v1910_v61 = vld [vmem:[%s6642_s7] sm:$0x1] }
 0x4a7   : > { %3001 = vmatpush.msrb.mxu3 %v3568_v48  ;;  %3075 = vmatpush.msrb.mxu2 %v3596_v6  ;;  %v1984_v6 = vadd.f32 %v1982_v5, %v1910_v61 }
 0x4a8   : > { %2856 = vmatpush.msra.mxu1 %v3509_v7  ;;  %2930 = vmatpush.msra.mxu0 %v3537_v10 }
 0x4a9   : > { %3002 = vmatpush.msrb.mxu3 %v3567_v11  ;;  %3076 = vmatpush.msrb.mxu2 %v3595_v16  ;;  %v2132_v2 = vpop.f32.mrf.mxu1  ;;  %v2060_v16 = vadd.f32 %v2058_v30, %v1984_v6 }
 0x4aa   : > { %2857 = vmatpush.msra.mxu1 %v3508_v17  ;;  %2931 = vmatpush.msra.mxu0 %v3536_v18  ;;  %v2112_v1 = vpop.f32.mrf.mxu3  ;;  %v2187_v3 = vpop.f32.mrf.mxu2 }
 0x4ab   : > { %3003 = vmatpush.msrb.mxu3 %v3566_v19  ;;  %3077 = vmatpush.msrb.mxu2 %v3594_v20  ;;  %v2207_v24 = vpop.f32.mrf.mxu0  ;;  %v2133_v10 = vadd.f32 %v2132_v2, %v2112_v1 }
 0x4ac   : > { %2858 = vmatpush.msra.mxu1 %v3507_v22  ;;  %2932 = vmatpush.msra.mxu0 %v3535_v23  ;;  %v2208_v19 = vadd.f32 %v2207_v24, %v2187_v3 }
 0x4ad   : > { %3004 = vmatpush.msrb.mxu3 %v3565_v26  ;;  %3078 = vmatpush.msrb.mxu2 %v3593_v25  ;;  %v2135_v18 = vadd.f32 %v2133_v10, %v2060_v16 }
 0x4ae   : > { %2859 = vmatpush.msra.mxu1 %v3506_v27  ;;  %2933 = vmatpush.msra.mxu0 %v3534_v29 }
 0x4af   : > { %3005 = vmatpush.msrb.mxu3 %v3564_v31  ;;  %3079 = vmatpush.msrb.mxu2 %v3592_v13  ;;  %v2210_v26 = vadd.f32 %v2208_v19, %v2135_v18 }
 0x4b0   : > { %2860 = vmatmul.f32.vlgmr.msra.gmra.mxu1 %v2836_v34  ;;  %2934 = vmatpush.msra.mxu0 %v3533_v0 }
 0x4b1   : > { %3585 = vmatpush.msk.msrb.mxu1 %vm1940_vm4, %v3584_v8  ;;  %3006 = vmatpush.msrb.mxu3 %v3563_v35 }
 0x4b2   : > { %3080 = vmatpush.msrb.mxu2 %v3591_v28  ;;  %2935 = vmatmul.f32.vlgmr.msra.gmra.mxu0 %v2911_v36  ;;  %v2282_v48 = vpop.f32.mrf.mxu3  ;;  %v2357_v11 = vpop.f32.mrf.mxu2 }
 0x4b3   : > { %3022 = vmatpush.msrb.mxu1 %v3583_v37  ;;  %3612 = vmatpush.msk.msrb.mxu0 %vm1940_vm4, %v3611_v38 }
 0x4b4   : > { %3007 = vmatpush.msrb.mxu3 %v3562_v33  ;;  %3081 = vmatpush.msrb.mxu2 %v3590_v15 }
 0x4b5   : > { %3023 = vmatpush.msrb.mxu1 %v3582_v32  ;;  %3097 = vmatpush.msrb.mxu0 %v3610_v43 }
 0x4b6   : > { %3008 = vmatpush.msrb.mxu3 %v3561_v39  ;;  %3082 = vmatpush.msrb.mxu2 %v3589_v40 }
 0x4b7   : > { %3024 = vmatpush.msrb.mxu1 %v3581_v14  ;;  %3098 = vmatpush.msrb.mxu0 %v3609_v41 }
 0x4b8   : > { %3009 = vmatpush.msrb.mxu3 %v3560_v45  ;;  %3083 = vmatpush.msrb.mxu2 %v3588_v47 }
 0x4b9   : > { %3010 = vmatmul.f32.vlgmr.msrb.gmra.mxu3 %v2986_v50  ;;  %3025 = vmatpush.msrb.mxu1 %v3580_v49 }
 0x4ba   : > { %3099 = vmatpush.msrb.mxu0 %v3608_v44  ;;  %3084 = vmatpush.msrb.mxu2 %v3587_v51 }
 0x4bb   : > { %3026 = vmatpush.msrb.mxu1 %v3579_v52  ;;  %3085 = vmatmul.f32.vlgmr.msrb.gmra.mxu2 %v3061_v42 }
 0x4bc   : > { %3100 = vmatpush.msrb.mxu0 %v3607_v4 }
 0x4bd   : > { %3027 = vmatpush.msrb.mxu1 %v3578_v53 }
 0x4be   : > { %3101 = vmatpush.msrb.mxu0 %v3606_v55 }
 0x4bf   : > { %3028 = vmatpush.msrb.mxu1 %v3577_v46 }
 0x4c0   : > { %3102 = vmatpush.msrb.mxu0 %v3605_v54 }
 0x4c1   : > { %3029 = vmatpush.msrb.mxu1 %v3576_v21  ;;  %v2262_v9 = vpop.f32.mrf.mxu1 }
 0x4c2   : > { %3103 = vmatpush.msrb.mxu0 %v3604_v57  ;;  %3586 = vmatmul.msk.f32.vlgmr.msrb.gmra.mxu1 %vm1936_vm0, %v2987_v58  ;;  %v2283_v22 = vadd.f32 %v2282_v48, %v2262_v9 }
 0x4c3   : > { %v2337_v7 = vpop.f32.mrf.mxu0 }
 0x4c4   : > { %3104 = vmatpush.msrb.mxu0 %v3603_v59  ;;  %v2285_v27 = vadd.f32 %v2283_v22, %v2210_v26  ;;  %v2358_v29 = vadd.f32 %v2357_v11, %v2337_v7 }
 0x4c5   : > { %3613 = vmatmul.msk.f32.vlgmr.msrb.gmra.mxu0 %vm1936_vm0, %v3062_v60 }
 0x4c6   : > { %v2360_v34 = vadd.f32 %v2358_v29, %v2285_v27 }
 0x4d0   : > { %v2412_v20 = vpop.f32.mrf.mxu3 }
 0x4d3   : > { %v2487_v25 = vpop.f32.mrf.mxu2 }
 0x4d5   : > { %v2432_v17 = vpop.f32.mrf.mxu1 }
 0x4d6   : > { %v2433_v13 = vadd.f32 %v2432_v17, %v2412_v20 }
 0x4d7   : > { %v2507_v23 = vpop.f32.mrf.mxu0 }
 0x4d8   : > { %v2435_v35 = vadd.f32 %v2433_v13, %v2360_v34  ;;  %v2508_v28 = vadd.f32 %v2507_v23, %v2487_v25 }
 0x4da   : > { %v2510_v33 = vadd.f32 %v2508_v28, %v2435_v35 }
 0x4f6   : > { %v2580_v0 = vpop.f32.mrf.mxu3 }
 0x4f7   : > { %v2560_v31 = vpop.f32.mrf.mxu1 }
 0x4f8   : > { %v2581_v37 = vadd.f32 %v2580_v0, %v2560_v31 }
 0x4f9   : > { %v2636_v8 = vpop.f32.mrf.mxu0  ;;  %v2656_v36 = vpop.f32.mrf.mxu2 }
 0x4fa   : > { %v2583_v32 = vadd.f32 %v2581_v37, %v2510_v33  ;;  %v2657_v43 = vadd.f32 %v2656_v36, %v2636_v8 }
 0x4fc   : > { %v2659_v41 = vadd.f32 %v2657_v43, %v2583_v32 }
 0x506   : > { %v2711_v15 = vpop.f32.mrf.mxu3 }
 0x509   : > { %v2786_v40 = vpop.f32.mrf.mxu2 }
 0x50b   : > { %v2731_v38 = vpop.f32.mrf.mxu1 }
 0x50c   : > { %v2732_v14 = vadd.f32 %v2731_v38, %v2711_v15 }
 0x50d   : > { %v2806_v39 = vpop.f32.mrf.mxu0 }
 0x50e   : > { %v2734_v47 = vadd.f32 %v2732_v14, %v2659_v41  ;;  %v2807_v49 = vadd.f32 %v2806_v39, %v2786_v40 }
 0x510   : > { %v2809_v52 = vadd.f32 %v2807_v49, %v2734_v47 }
 0x51a   : > { %v2881_v50 = vpop.f32.mrf.mxu3 }
 0x51d   : > { %v2956_v42 = vpop.f32.mrf.mxu2 }
 0x52d   : > { %v2861_v45 = vpop.f32.mrf.mxu1 }
 0x52e   : > { %v2882_v44 = vadd.f32 %v2881_v50, %v2861_v45 }
 0x52f   : > { %v2936_v51 = vpop.f32.mrf.mxu0 }
 0x530   : > { %v2884_v4 = vadd.f32 %v2882_v44, %v2809_v52  ;;  %v2957_v53 = vadd.f32 %v2956_v42, %v2936_v51 }
 0x532   : > { %v2959_v54 = vadd.f32 %v2957_v53, %v2884_v4 }
 0x53c   : > { %v3011_v55 = vpop.f32.mrf.mxu3 }
 0x53e   : > { %v3086_v57 = vpop.f32.mrf.mxu2 }
 0x53f   : > { %v3031_v46 = vpop.f32.mrf.mxu1 }
 0x540   : > { %v3032_v21 = vadd.f32 %v3031_v46, %v3011_v55 }
 0x542   : > { %v3034_v58 = vadd.f32 %v3032_v21, %v2959_v54  ;;  %v3106_v59 = vpop.f32.mrf.mxu0 }
 0x543   : > { %v3107_v60 = vadd.f32 %v3106_v59, %v3086_v57 }
 0x545   : > { %v3109_v62 = vadd.f32 %v3107_v60, %v3034_v58 }
 0x547   : > { %3110 = vst [vmem:[%s295_s22] sm:$0x1] %v3109_v62 }
 0x548   : > { %3886 = shalt.err (!%p3883_p3)
}
 0x549   : > { %3617 = dma.vmem_to_hbm [thread:$0]  (%p4039_p5), %s3123_s24, 16, %s3125_s17, %s3112_s18  }
 0x54a PF: > { %p3623_p4 = scmp.ge.s32.totalorder %s3921_s30, 2  ;;  %s3136_s13 = sand.u32 1, %s3909_s27  }
 0x54b   : > { %s3137_s25 = scalar_lea.sflag [#allocation4], %s3136_s13 }
 0x54c   : > { %p3620_p7 = pnand %p3623_p4, %p4043_p6 }
 0x54e   : > { %p3621_p8 = pneg %p3620_p7 }
 0x550   : > { %3904 = dma.done.wait (%p3621_p8), %s3137_s25, 16  }
 0x551   : > { %3906 = vsyncadd (%p3621_p8), %s3137_s25, 4294967280  ;;  %p18_p9 = scmp.ge.s32.totalorder %s4026_s11, 4   ;;  %s6669_s27 = smov %s3913_s28 }
 0x552   : > { %s6670_s28 = smov %s3917_s29  ;;  %s6671_s29 = smov %s4037_s14 }
 0x553   : > { %s6672_s30 = smov %s4026_s11  ;;  %20 = sbr.rel (!%p18_p9) target bundleno = 3 (0x3), region = 126 }
 0x558   :  { %3142 = vsyncpa [#allocation4], 1 }
 0x559   :  { %3144 = vsyncpa [#allocation4 + $0x1], 1 }

</bundles_post_ra>
